<compile_context>
chip_gen: v6e
topology: v6e:2x2x1
jax: 0.10.0
libtpu: 0.0.40
codegen_flags: <defaults>
</compile_context>

<pallas_src>
import jax
import jax.numpy as jnp
from jax.experimental import pallas as pl
from jax.experimental.pallas import tpu as pltpu

EPS = 1e-5


def _encoder_kernel(xf_ref, mask_ref, wb1_ref, wb2_ref,
                    g1_ref, be1_ref, g2_ref, be2_ref,
                    sel_ref, selt_ref,
                    enc_ref, pool_ref,
                    a1_ref):
    """Fused conv1+BN1+ReLU -> conv2+BN2+ReLU -> 2x2 maxpool.

    xf_ref   : (R, W*Cin)   row-folded input, R = N*(H+2); H-halo rows are zero
    mask_ref : (R-2, 1)     1.0 for real rows, 0.0 for halo rows
    wb*_ref  : (3, K, W*F)  banded conv weights (K = W*Cin for conv1, W*F for conv2)
    g*/be*   : (1, F)       BN gamma / beta
    sel_ref  : (W*F, F)     lane->channel one-hot  (per-channel reduction, MXU)
    selt_ref : (F, W*F)     channel->lane one-hot  (per-channel broadcast, MXU)
    enc_ref  : (N, H, W*F)  pre-pool activations (lane-dense output)
    pool_ref : (N, H//2, (W//2)*F)
    a1_ref   : VMEM scratch (R, W*F): row-padded conv1 activation feeding conv2
    """
    R, _ = xf_ref.shape
    _, WF = a1_ref.shape
    N, H, _ = enc_ref.shape
    F = g1_ref.shape[-1]
    W = WF // F
    Rm = R - 2
    inv_count = 1.0 / float(N * H * W)

    mask = mask_ref[...]                    # (Rm, 1) -> lane-broadcast in multiplies
    sel = sel_ref[...]                      # (WF, F)
    selt = selt_ref[...]                    # (F, WF)

    def banded_conv(src_ref, wb_ref):
        # 3 row-shifted slabs, each one wide MXU matmul; kw taps + W padding are
        # encoded inside the banded weight, so no per-tap reshapes are needed.
        acc = jnp.dot(src_ref[0:Rm, :], wb_ref[0],
                      preferred_element_type=jnp.float32)
        acc = acc + jnp.dot(src_ref[1:Rm + 1, :], wb_ref[1],
                            preferred_element_type=jnp.float32)
        acc = acc + jnp.dot(src_ref[2:Rm + 2, :], wb_ref[2],
                            preferred_element_type=jnp.float32)
        return acc                          # (Rm, WF)

    def bn_relu(y, g_ref, be_ref):
        # Training-mode BN: batch mean / biased variance over (N,H,W), one pass.
        ym = y * mask                                           # halo rows -> 0
        s1 = jnp.sum(ym, axis=0, keepdims=True)                 # (1, WF)
        s2 = jnp.sum(ym * ym, axis=0, keepdims=True)            # (1, WF)
        mean = jnp.dot(s1, sel, preferred_element_type=jnp.float32) * inv_count
        ex2 = jnp.dot(s2, sel, preferred_element_type=jnp.float32) * inv_count
        var = ex2 - mean * mean                                 # (1, F)
        scale = g_ref[...] * jax.lax.rsqrt(var + EPS)           # EUP rsqrt
        shift = be_ref[...] - mean * scale                      # folded affine
        scale_l = jnp.dot(scale, selt, preferred_element_type=jnp.float32)
        shift_l = jnp.dot(shift, selt, preferred_element_type=jnp.float32)
        return jnp.maximum(y * scale_l + shift_l, 0.0)          # (Rm, WF)

    # conv1 + BN1 + ReLU.  Conv bias is omitted: a per-channel constant added
    # before training-mode BN is exactly cancelled by the batch-mean subtraction.
    y1 = banded_conv(xf_ref, wb1_ref)
    a1 = bn_relu(y1, g1_ref, be1_ref) * mask    # re-zero halo rows = conv2 padding

    # Row-padded scratch for conv2: zero only the 2 outer halo rows.
    a1_ref[0:1, :] = jnp.zeros((1, WF), jnp.float32)
    a1_ref[R - 1:R, :] = jnp.zeros((1, WF), jnp.float32)
    a1_ref[1:R - 1, :] = a1

    # conv2 + BN2 + ReLU.
    y2 = banded_conv(a1_ref, wb2_ref)
    a2 = bn_relu(y2, g2_ref, be2_ref)           # (Rm, WF)

    # Epilogue: per image, extract the real rows (static slices), store the
    # lane-dense enc output, and fuse the 2x2/2 maxpool while a2 is resident.
    for n in range(N):
        rows = a2[n * (H + 2): n * (H + 2) + H, :]              # (H, WF)
        enc_ref[n, :, :] = rows
        r2 = rows.reshape(H // 2, 2, WF)
        hmax = jnp.maximum(r2[:, 0, :], r2[:, 1, :])            # pool over H pairs
        wpair = hmax.reshape(H // 2, W // 2, 2 * F)
        pooled = jnp.maximum(wpair[:, :, :F], wpair[:, :, F:])  # pool over W pairs
        pool_ref[n, :, :] = pooled.reshape(H // 2, (W // 2) * F)


def _banded_conv_weights(w_oihw, W):
    """OIHW 3x3 weight -> (3, W*Cin, W*F) banded matmul weights.

    wb[kh][wi*Cin+ci, wo*F+f] = w[f, ci, kh, wi-wo+1] if 0 <= wi-wo+1 <= 2 else 0.
    Encodes the kw taps and the width-dim zero padding directly in the band.
    """
    Fo, Cin, _, _ = w_oihw.shape
    w_k = jnp.transpose(w_oihw, (2, 3, 1, 0))            # (kh, kw, Cin, F)
    wi = jnp.arange(W)[:, None]
    wo = jnp.arange(W)[None, :]
    kw = wi - wo + 1                                     # (W, W)
    valid = ((kw >= 0) & (kw <= 2)).astype(w_oihw.dtype)
    taps = w_k[:, jnp.clip(kw, 0, 2)]                    # (3, W, W, Cin, F)
    taps = taps * valid[None, :, :, None, None]
    taps = jnp.transpose(taps, (0, 1, 3, 2, 4))          # (3, W, Cin, W, F)
    return taps.reshape(3, W * Cin, W * Fo)


@jax.jit
def encoder_block_forward(x_nchw, params):
    """Returns (encoder_pool, encoder) in NCHW, matching the PyTorch module."""
    w1, b1, g1, be1, w2, b2, g2, be2 = params
    del b1, b2  # conv bias before training-mode BN is exactly cancelled (see kernel)

    N, C, H, W = x_nchw.shape
    F = w1.shape[0]
    R = N * (H + 2)
    Rm = R - 2
    WF = W * F

    # --- wrapper-side glue: layout folding + constant prep (one-time / fused) ---
    x_nhwc = jnp.transpose(x_nchw, (0, 2, 3, 1))
    xf = jnp.pad(x_nhwc, ((0, 0), (1, 1), (0, 0), (0, 0))).reshape(R, W * C)

    hp = jnp.arange(R) % (H + 2)
    mask = ((hp >= 1) & (hp <= H)).astype(jnp.float32)[1:R - 1].reshape(Rm, 1)

    lane_ch = jnp.arange(WF) % F
    sel = (lane_ch[:, None] == jnp.arange(F)[None, :]).astype(jnp.float32)  # (WF, F)
    selt = sel.T                                                            # (F, WF)

    wb1 = _banded_conv_weights(w1, W)        # (3, W*C, W*F)
    wb2 = _banded_conv_weights(w2, W)        # (3, W*F, W*F)

    r1 = lambda v: v.reshape(1, -1)

    enc_fold, pool_fold = pl.pallas_call(
        _encoder_kernel,
        out_shape=(jax.ShapeDtypeStruct((N, H, WF), jnp.float32),
                   jax.ShapeDtypeStruct((N, H // 2, (W // 2) * F), jnp.float32)),
        scratch_shapes=[pltpu.VMEM((R, WF), jnp.float32)],
    )(xf, mask, wb1, wb2, r1(g1), r1(be1), r1(g2), r1(be2), sel, selt)

    enc = enc_fold.reshape(N, H, W, F)
    pooled = pool_fold.reshape(N, H // 2, W // 2, F)
    return (jnp.transpose(pooled, (0, 3, 1, 2)),     # NHWC -> NCHW
            jnp.transpose(enc, (0, 3, 1, 2)))


def init_params(key, num_channels, num_filters):
    """Deterministic synthetic parameters in PyTorch layouts (OIHW weights)."""
    k1, k2, k3, k4 = jax.random.split(key, 4)
    w1 = jax.random.normal(k1, (num_filters, num_channels, 3, 3), jnp.float32) * 0.1
    w2 = jax.random.normal(k2, (num_filters, num_filters, 3, 3), jnp.float32) * 0.1
    b1 = jax.random.normal(k3, (num_filters,), jnp.float32) * 0.1
    b2 = jax.random.normal(k4, (num_filters,), jnp.float32) * 0.1
    g1 = jnp.ones((num_filters,), jnp.float32)
    be1 = jnp.zeros((num_filters,), jnp.float32)
    g2 = jnp.ones((num_filters,), jnp.float32)
    be2 = jnp.zeros((num_filters,), jnp.float32)
    return (w1, b1, g1, be1, w2, b2, g2, be2)


def _reference(x_nchw, params):
    """Pure-JAX reference replicating the PyTorch forward (training-mode BN, with bias)."""
    w1, b1, g1, be1, w2, b2, g2, be2 = params
    x = jnp.transpose(x_nchw, (0, 2, 3, 1))

    def conv(z, w_oihw, b):
        w_hwio = jnp.transpose(w_oihw, (2, 3, 1, 0))
        y = jax.lax.conv_general_dilated(z, w_hwio, (1, 1), 'SAME',
                                         dimension_numbers=('NHWC', 'HWIO', 'NHWC'))
        return y + b

    def bn_relu(y, g, be):
        mean = jnp.mean(y, axis=(0, 1, 2), keepdims=True)
        var = jnp.mean((y - mean) ** 2, axis=(0, 1, 2), keepdims=True)
        return jnp.maximum((y - mean) / jnp.sqrt(var + EPS) * g + be, 0.0)

    a1 = bn_relu(conv(x, w1, b1), g1, be1)
    a2 = bn_relu(conv(a1, w2, b2), g2, be2)
    N, H, W, F = a2.shape
    pooled = a2.reshape(N, H // 2, 2, W // 2, 2, F).max(axis=(2, 4))
    return jnp.transpose(pooled, (0, 3, 1, 2)), jnp.transpose(a2, (0, 3, 1, 2))


if __name__ == "__main__":
    key = jax.random.PRNGKey(0)
    kx, kp = jax.random.split(key)

    N, C, H, W, F = 2, 4, 16, 16, 8          # batch, in-channels, spatial, num_filters
    x = jax.random.normal(kx, (N, C, H, W), jnp.float32)
    params = init_params(kp, C, F)

    pooled, enc = jax.block_until_ready(encoder_block_forward(x, params))

    pooled_ref, enc_ref = _reference(x, params)

    assert pooled.shape == (N, F, H // 2, W // 2) and enc.shape == (N, F, H, W)
    assert jnp.allclose(enc, enc_ref, atol=1e-4, rtol=1e-4)
    assert jnp.allclose(pooled, pooled_ref, atol=1e-4, rtol=1e-4)
    # TODO(synk): BatchNorm running_mean/running_var updates (training-time side
    # effect only; they do not affect the forward outputs) are not modeled.
    print("KERNEL_OK")
</pallas_src>

<mosaic_0001>
module attributes {stable_mosaic.version = 11 : i64} {
  func.func @_encoder_kernel(%arg0: memref<36x64xf32, #tpu.memory_space<vmem>>, %arg1: memref<34x1xf32, #tpu.memory_space<vmem>>, %arg2: memref<3x64x128xf32, #tpu.memory_space<vmem>>, %arg3: memref<3x128x128xf32, #tpu.memory_space<vmem>>, %arg4: memref<1x8xf32, #tpu.memory_space<vmem>>, %arg5: memref<1x8xf32, #tpu.memory_space<vmem>>, %arg6: memref<1x8xf32, #tpu.memory_space<vmem>>, %arg7: memref<1x8xf32, #tpu.memory_space<vmem>>, %arg8: memref<128x8xf32, #tpu.memory_space<vmem>>, %arg9: memref<8x128xf32, #tpu.memory_space<vmem>>, %arg10: memref<2x16x128xf32, #tpu.memory_space<vmem>>, %arg11: memref<2x8x64xf32, #tpu.memory_space<vmem>>, %arg12: memref<36x128xf32, #tpu.memory_space<vmem>>) attributes {dimension_semantics = [], scalar_prefetch = 0 : i64, scratch_operands = 1 : i64, tpu.core_type = #tpu.core_type<tc>} {
    %c0 = arith.constant 0 : index
    %c0_0 = arith.constant 0 : index
    %0 = vector.load %arg1[%c0, %c0_0] : memref<34x1xf32, #tpu.memory_space<vmem>>, vector<34x1xf32>
    %c0_1 = arith.constant 0 : index
    %c0_2 = arith.constant 0 : index
    %1 = vector.load %arg8[%c0_1, %c0_2] : memref<128x8xf32, #tpu.memory_space<vmem>>, vector<128x8xf32>
    %c0_3 = arith.constant 0 : index
    %c0_4 = arith.constant 0 : index
    %2 = vector.load %arg9[%c0_3, %c0_4] : memref<8x128xf32, #tpu.memory_space<vmem>>, vector<8x128xf32>
    %c0_5 = arith.constant 0 : index
    %c0_6 = arith.constant 0 : index
    %3 = vector.load %arg0[%c0_5, %c0_6] : memref<36x64xf32, #tpu.memory_space<vmem>>, vector<34x64xf32>
    %c0_7 = arith.constant 0 : index
    %c0_8 = arith.constant 0 : index
    %c0_9 = arith.constant 0 : index
    %4 = vector.load %arg2[%c0_7, %c0_8, %c0_9] : memref<3x64x128xf32, #tpu.memory_space<vmem>>, vector<1x64x128xf32>
    %5 = vector.shape_cast %4 : vector<1x64x128xf32> to vector<64x128xf32>
    %cst = arith.constant dense<0.000000e+00> : vector<34x128xf32>
    %6 = tpu.matmul %3, %5, %cst {dimension_numbers = #tpu.dot_dimension_numbers<[1], [0], [0], [1], [0, 0, 1, 1], [], []>} : vector<34x64xf32>, vector<64x128xf32>, vector<34x128xf32> -> vector<34x128xf32>
    %c1 = arith.constant 1 : index
    %c0_10 = arith.constant 0 : index
    %7 = vector.load %arg0[%c1, %c0_10] : memref<36x64xf32, #tpu.memory_space<vmem>>, vector<34x64xf32>
    %c1_11 = arith.constant 1 : index
    %c0_12 = arith.constant 0 : index
    %c0_13 = arith.constant 0 : index
    %8 = vector.load %arg2[%c1_11, %c0_12, %c0_13] : memref<3x64x128xf32, #tpu.memory_space<vmem>>, vector<1x64x128xf32>
    %9 = vector.shape_cast %8 : vector<1x64x128xf32> to vector<64x128xf32>
    %cst_14 = arith.constant dense<0.000000e+00> : vector<34x128xf32>
    %10 = tpu.matmul %7, %9, %cst_14 {dimension_numbers = #tpu.dot_dimension_numbers<[1], [0], [0], [1], [0, 0, 1, 1], [], []>} : vector<34x64xf32>, vector<64x128xf32>, vector<34x128xf32> -> vector<34x128xf32>
    %11 = arith.addf %6, %10 : vector<34x128xf32>
    %c2 = arith.constant 2 : index
    %c0_15 = arith.constant 0 : index
    %12 = vector.load %arg0[%c2, %c0_15] : memref<36x64xf32, #tpu.memory_space<vmem>>, vector<34x64xf32>
    %c2_16 = arith.constant 2 : index
    %c0_17 = arith.constant 0 : index
    %c0_18 = arith.constant 0 : index
    %13 = vector.load %arg2[%c2_16, %c0_17, %c0_18] : memref<3x64x128xf32, #tpu.memory_space<vmem>>, vector<1x64x128xf32>
    %14 = vector.shape_cast %13 : vector<1x64x128xf32> to vector<64x128xf32>
    %cst_19 = arith.constant dense<0.000000e+00> : vector<34x128xf32>
    %15 = tpu.matmul %12, %14, %cst_19 {dimension_numbers = #tpu.dot_dimension_numbers<[1], [0], [0], [1], [0, 0, 1, 1], [], []>} : vector<34x64xf32>, vector<64x128xf32>, vector<34x128xf32> -> vector<34x128xf32>
    %16 = arith.addf %11, %15 : vector<34x128xf32>
    %17 = vector.broadcast %0 : vector<34x1xf32> to vector<34x128xf32>
    %18 = arith.mulf %16, %17 : vector<34x128xf32>
    %cst_20 = arith.constant dense<0.000000e+00> : vector<128xf32>
    %19 = vector.multi_reduction <add>, %18, %cst_20 [0] : vector<34x128xf32> to vector<128xf32>
    %20 = vector.shape_cast %19 : vector<128xf32> to vector<1x128xf32>
    %21 = arith.mulf %18, %18 : vector<34x128xf32>
    %cst_21 = arith.constant dense<0.000000e+00> : vector<128xf32>
    %22 = vector.multi_reduction <add>, %21, %cst_21 [0] : vector<34x128xf32> to vector<128xf32>
    %23 = vector.shape_cast %22 : vector<128xf32> to vector<1x128xf32>
    %cst_22 = arith.constant dense<0.000000e+00> : vector<1x8xf32>
    %24 = tpu.matmul %20, %1, %cst_22 {dimension_numbers = #tpu.dot_dimension_numbers<[1], [0], [0], [1], [0, 0, 1, 1], [], []>} : vector<1x128xf32>, vector<128x8xf32>, vector<1x8xf32> -> vector<1x8xf32>
    %cst_23 = arith.constant 0.001953125 : f32
    %25 = vector.broadcast %cst_23 : f32 to vector<1x8xf32>
    %26 = arith.mulf %24, %25 : vector<1x8xf32>
    %cst_24 = arith.constant dense<0.000000e+00> : vector<1x8xf32>
    %27 = tpu.matmul %23, %1, %cst_24 {dimension_numbers = #tpu.dot_dimension_numbers<[1], [0], [0], [1], [0, 0, 1, 1], [], []>} : vector<1x128xf32>, vector<128x8xf32>, vector<1x8xf32> -> vector<1x8xf32>
    %cst_25 = arith.constant 0.001953125 : f32
    %28 = vector.broadcast %cst_25 : f32 to vector<1x8xf32>
    %29 = arith.mulf %27, %28 : vector<1x8xf32>
    %30 = arith.mulf %26, %26 : vector<1x8xf32>
    %31 = arith.subf %29, %30 : vector<1x8xf32>
    %c0_26 = arith.constant 0 : index
    %c0_27 = arith.constant 0 : index
    %32 = vector.load %arg4[%c0_26, %c0_27] : memref<1x8xf32, #tpu.memory_space<vmem>>, vector<1x8xf32>
    %cst_28 = arith.constant 9.99999974E-6 : f32
    %33 = vector.broadcast %cst_28 : f32 to vector<1x8xf32>
    %34 = arith.addf %31, %33 : vector<1x8xf32>
    %35 = math.rsqrt %34 : vector<1x8xf32>
    %36 = arith.mulf %32, %35 : vector<1x8xf32>
    %c0_29 = arith.constant 0 : index
    %c0_30 = arith.constant 0 : index
    %37 = vector.load %arg5[%c0_29, %c0_30] : memref<1x8xf32, #tpu.memory_space<vmem>>, vector<1x8xf32>
    %38 = arith.mulf %26, %36 : vector<1x8xf32>
    %39 = arith.subf %37, %38 : vector<1x8xf32>
    %cst_31 = arith.constant dense<0.000000e+00> : vector<1x128xf32>
    %40 = tpu.matmul %36, %2, %cst_31 {dimension_numbers = #tpu.dot_dimension_numbers<[1], [0], [0], [1], [0, 0, 1, 1], [], []>} : vector<1x8xf32>, vector<8x128xf32>, vector<1x128xf32> -> vector<1x128xf32>
    %cst_32 = arith.constant dense<0.000000e+00> : vector<1x128xf32>
    %41 = tpu.matmul %39, %2, %cst_32 {dimension_numbers = #tpu.dot_dimension_numbers<[1], [0], [0], [1], [0, 0, 1, 1], [], []>} : vector<1x8xf32>, vector<8x128xf32>, vector<1x128xf32> -> vector<1x128xf32>
    %42 = vector.broadcast %40 : vector<1x128xf32> to vector<34x128xf32>
    %43 = arith.mulf %16, %42 : vector<34x128xf32>
    %44 = vector.broadcast %41 : vector<1x128xf32> to vector<34x128xf32>
    %45 = arith.addf %43, %44 : vector<34x128xf32>
    %cst_33 = arith.constant 0.000000e+00 : f32
    %46 = vector.broadcast %cst_33 : f32 to vector<34x128xf32>
    %47 = arith.maximumf %45, %46 : vector<34x128xf32>
    %48 = vector.broadcast %0 : vector<34x1xf32> to vector<34x128xf32>
    %49 = arith.mulf %47, %48 : vector<34x128xf32>
    %cst_34 = arith.constant 0.000000e+00 : f32
    %50 = vector.broadcast %cst_34 : f32 to vector<1x128xf32>
    %c0_35 = arith.constant 0 : index
    %c0_36 = arith.constant 0 : index
    %51 = vector.load %arg12[%c0_35, %c0_36] : memref<36x128xf32, #tpu.memory_space<vmem>>, vector<1x128xf32>
    tpu.vector_store %arg12[%c0_35, %c0_36], %50 {strides = array<i32>} : memref<36x128xf32, #tpu.memory_space<vmem>>, vector<1x128xf32>,
    %cst_37 = arith.constant 0.000000e+00 : f32
    %52 = vector.broadcast %cst_37 : f32 to vector<1x128xf32>
    %c35 = arith.constant 35 : index
    %c0_38 = arith.constant 0 : index
    %53 = vector.load %arg12[%c35, %c0_38] : memref<36x128xf32, #tpu.memory_space<vmem>>, vector<1x128xf32>
    tpu.vector_store %arg12[%c35, %c0_38], %52 {strides = array<i32>} : memref<36x128xf32, #tpu.memory_space<vmem>>, vector<1x128xf32>,
    %c1_39 = arith.constant 1 : index
    %c0_40 = arith.constant 0 : index
    %54 = vector.load %arg12[%c1_39, %c0_40] : memref<36x128xf32, #tpu.memory_space<vmem>>, vector<34x128xf32>
    tpu.vector_store %arg12[%c1_39, %c0_40], %49 {strides = array<i32>} : memref<36x128xf32, #tpu.memory_space<vmem>>, vector<34x128xf32>,
    %c0_41 = arith.constant 0 : index
    %c0_42 = arith.constant 0 : index
    %55 = vector.load %arg12[%c0_41, %c0_42] : memref<36x128xf32, #tpu.memory_space<vmem>>, vector<34x128xf32>
    %c0_43 = arith.constant 0 : index
    %c0_44 = arith.constant 0 : index
    %c0_45 = arith.constant 0 : index
    %56 = vector.load %arg3[%c0_43, %c0_44, %c0_45] : memref<3x128x128xf32, #tpu.memory_space<vmem>>, vector<1x128x128xf32>
    %57 = vector.shape_cast %56 : vector<1x128x128xf32> to vector<128x128xf32>
    %cst_46 = arith.constant dense<0.000000e+00> : vector<34x128xf32>
    %58 = tpu.matmul %55, %57, %cst_46 {dimension_numbers = #tpu.dot_dimension_numbers<[1], [0], [0], [1], [0, 0, 1, 1], [], []>} : vector<34x128xf32>, vector<128x128xf32>, vector<34x128xf32> -> vector<34x128xf32>
    %c1_47 = arith.constant 1 : index
    %c0_48 = arith.constant 0 : index
    %59 = vector.load %arg12[%c1_47, %c0_48] : memref<36x128xf32, #tpu.memory_space<vmem>>, vector<34x128xf32>
    %c1_49 = arith.constant 1 : index
    %c0_50 = arith.constant 0 : index
    %c0_51 = arith.constant 0 : index
    %60 = vector.load %arg3[%c1_49, %c0_50, %c0_51] : memref<3x128x128xf32, #tpu.memory_space<vmem>>, vector<1x128x128xf32>
    %61 = vector.shape_cast %60 : vector<1x128x128xf32> to vector<128x128xf32>
    %cst_52 = arith.constant dense<0.000000e+00> : vector<34x128xf32>
    %62 = tpu.matmul %59, %61, %cst_52 {dimension_numbers = #tpu.dot_dimension_numbers<[1], [0], [0], [1], [0, 0, 1, 1], [], []>} : vector<34x128xf32>, vector<128x128xf32>, vector<34x128xf32> -> vector<34x128xf32>
    %63 = arith.addf %58, %62 : vector<34x128xf32>
    %c2_53 = arith.constant 2 : index
    %c0_54 = arith.constant 0 : index
    %64 = vector.load %arg12[%c2_53, %c0_54] : memref<36x128xf32, #tpu.memory_space<vmem>>, vector<34x128xf32>
    %c2_55 = arith.constant 2 : index
    %c0_56 = arith.constant 0 : index
    %c0_57 = arith.constant 0 : index
    %65 = vector.load %arg3[%c2_55, %c0_56, %c0_57] : memref<3x128x128xf32, #tpu.memory_space<vmem>>, vector<1x128x128xf32>
    %66 = vector.shape_cast %65 : vector<1x128x128xf32> to vector<128x128xf32>
    %cst_58 = arith.constant dense<0.000000e+00> : vector<34x128xf32>
    %67 = tpu.matmul %64, %66, %cst_58 {dimension_numbers = #tpu.dot_dimension_numbers<[1], [0], [0], [1], [0, 0, 1, 1], [], []>} : vector<34x128xf32>, vector<128x128xf32>, vector<34x128xf32> -> vector<34x128xf32>
    %68 = arith.addf %63, %67 : vector<34x128xf32>
    %69 = vector.broadcast %0 : vector<34x1xf32> to vector<34x128xf32>
    %70 = arith.mulf %68, %69 : vector<34x128xf32>
    %cst_59 = arith.constant dense<0.000000e+00> : vector<128xf32>
    %71 = vector.multi_reduction <add>, %70, %cst_59 [0] : vector<34x128xf32> to vector<128xf32>
    %72 = vector.shape_cast %71 : vector<128xf32> to vector<1x128xf32>
    %73 = arith.mulf %70, %70 : vector<34x128xf32>
    %cst_60 = arith.constant dense<0.000000e+00> : vector<128xf32>
    %74 = vector.multi_reduction <add>, %73, %cst_60 [0] : vector<34x128xf32> to vector<128xf32>
    %75 = vector.shape_cast %74 : vector<128xf32> to vector<1x128xf32>
    %cst_61 = arith.constant dense<0.000000e+00> : vector<1x8xf32>
    %76 = tpu.matmul %72, %1, %cst_61 {dimension_numbers = #tpu.dot_dimension_numbers<[1], [0], [0], [1], [0, 0, 1, 1], [], []>} : vector<1x128xf32>, vector<128x8xf32>, vector<1x8xf32> -> vector<1x8xf32>
    %cst_62 = arith.constant 0.001953125 : f32
    %77 = vector.broadcast %cst_62 : f32 to vector<1x8xf32>
    %78 = arith.mulf %76, %77 : vector<1x8xf32>
    %cst_63 = arith.constant dense<0.000000e+00> : vector<1x8xf32>
    %79 = tpu.matmul %75, %1, %cst_63 {dimension_numbers = #tpu.dot_dimension_numbers<[1], [0], [0], [1], [0, 0, 1, 1], [], []>} : vector<1x128xf32>, vector<128x8xf32>, vector<1x8xf32> -> vector<1x8xf32>
    %cst_64 = arith.constant 0.001953125 : f32
    %80 = vector.broadcast %cst_64 : f32 to vector<1x8xf32>
    %81 = arith.mulf %79, %80 : vector<1x8xf32>
    %82 = arith.mulf %78, %78 : vector<1x8xf32>
    %83 = arith.subf %81, %82 : vector<1x8xf32>
    %c0_65 = arith.constant 0 : index
    %c0_66 = arith.constant 0 : index
    %84 = vector.load %arg6[%c0_65, %c0_66] : memref<1x8xf32, #tpu.memory_space<vmem>>, vector<1x8xf32>
    %cst_67 = arith.constant 9.99999974E-6 : f32
    %85 = vector.broadcast %cst_67 : f32 to vector<1x8xf32>
    %86 = arith.addf %83, %85 : vector<1x8xf32>
    %87 = math.rsqrt %86 : vector<1x8xf32>
    %88 = arith.mulf %84, %87 : vector<1x8xf32>
    %c0_68 = arith.constant 0 : index
    %c0_69 = arith.constant 0 : index
    %89 = vector.load %arg7[%c0_68, %c0_69] : memref<1x8xf32, #tpu.memory_space<vmem>>, vector<1x8xf32>
    %90 = arith.mulf %78, %88 : vector<1x8xf32>
    %91 = arith.subf %89, %90 : vector<1x8xf32>
    %cst_70 = arith.constant dense<0.000000e+00> : vector<1x128xf32>
    %92 = tpu.matmul %88, %2, %cst_70 {dimension_numbers = #tpu.dot_dimension_numbers<[1], [0], [0], [1], [0, 0, 1, 1], [], []>} : vector<1x8xf32>, vector<8x128xf32>, vector<1x128xf32> -> vector<1x128xf32>
    %cst_71 = arith.constant dense<0.000000e+00> : vector<1x128xf32>
    %93 = tpu.matmul %91, %2, %cst_71 {dimension_numbers = #tpu.dot_dimension_numbers<[1], [0], [0], [1], [0, 0, 1, 1], [], []>} : vector<1x8xf32>, vector<8x128xf32>, vector<1x128xf32> -> vector<1x128xf32>
    %94 = vector.broadcast %92 : vector<1x128xf32> to vector<34x128xf32>
    %95 = arith.mulf %68, %94 : vector<34x128xf32>
    %96 = vector.broadcast %93 : vector<1x128xf32> to vector<34x128xf32>
    %97 = arith.addf %95, %96 : vector<34x128xf32>
    %cst_72 = arith.constant 0.000000e+00 : f32
    %98 = vector.broadcast %cst_72 : f32 to vector<34x128xf32>
    %99 = arith.maximumf %97, %98 : vector<34x128xf32>
    %100 = vector.extract_strided_slice %99 {offsets = [0, 0], sizes = [16, 128], strides = [1, 1]} : vector<34x128xf32> to vector<16x128xf32>
    %c0_73 = arith.constant 0 : index
    %c0_74 = arith.constant 0 : index
    %c0_75 = arith.constant 0 : index
    %101 = vector.load %arg10[%c0_73, %c0_74, %c0_75] : memref<2x16x128xf32, #tpu.memory_space<vmem>>, vector<1x16x128xf32>
    %102 = vector.shape_cast %101 : vector<1x16x128xf32> to vector<16x128xf32>
    %103 = vector.shape_cast %100 : vector<16x128xf32> to vector<1x16x128xf32>
    tpu.vector_store %arg10[%c0_73, %c0_74, %c0_75], %103 {strides = array<i32>} : memref<2x16x128xf32, #tpu.memory_space<vmem>>, vector<1x16x128xf32>,
    %104 = vector.shape_cast %100 : vector<16x128xf32> to vector<8x2x128xf32>
    %105 = vector.extract_strided_slice %104 {offsets = [0, 0, 0], sizes = [8, 1, 128], strides = [1, 1, 1]} : vector<8x2x128xf32> to vector<8x1x128xf32>
    %106 = vector.shape_cast %105 : vector<8x1x128xf32> to vector<8x128xf32>
    %107 = vector.extract_strided_slice %104 {offsets = [0, 1, 0], sizes = [8, 1, 128], strides = [1, 1, 1]} : vector<8x2x128xf32> to vector<8x1x128xf32>
    %108 = vector.shape_cast %107 : vector<8x1x128xf32> to vector<8x128xf32>
    %109 = arith.maximumf %106, %108 : vector<8x128xf32>
    %110 = vector.shape_cast %109 : vector<8x128xf32> to vector<8x8x16xf32>
    %111 = vector.extract_strided_slice %110 {offsets = [0, 0, 0], sizes = [8, 8, 8], strides = [1, 1, 1]} : vector<8x8x16xf32> to vector<8x8x8xf32>
    %112 = vector.extract_strided_slice %110 {offsets = [0, 0, 8], sizes = [8, 8, 8], strides = [1, 1, 1]} : vector<8x8x16xf32> to vector<8x8x8xf32>
    %113 = arith.maximumf %111, %112 : vector<8x8x8xf32>
    %114 = vector.shape_cast %113 : vector<8x8x8xf32> to vector<8x64xf32>
    %c0_76 = arith.constant 0 : index
    %c0_77 = arith.constant 0 : index
    %c0_78 = arith.constant 0 : index
    %115 = vector.load %arg11[%c0_76, %c0_77, %c0_78] : memref<2x8x64xf32, #tpu.memory_space<vmem>>, vector<1x8x64xf32>
    %116 = vector.shape_cast %115 : vector<1x8x64xf32> to vector<8x64xf32>
    %117 = vector.shape_cast %114 : vector<8x64xf32> to vector<1x8x64xf32>
    tpu.vector_store %arg11[%c0_76, %c0_77, %c0_78], %117 {strides = array<i32>} : memref<2x8x64xf32, #tpu.memory_space<vmem>>, vector<1x8x64xf32>,
    %118 = vector.extract_strided_slice %99 {offsets = [18, 0], sizes = [16, 128], strides = [1, 1]} : vector<34x128xf32> to vector<16x128xf32>
    %c1_79 = arith.constant 1 : index
    %c0_80 = arith.constant 0 : index
    %c0_81 = arith.constant 0 : index
    %119 = vector.load %arg10[%c1_79, %c0_80, %c0_81] : memref<2x16x128xf32, #tpu.memory_space<vmem>>, vector<1x16x128xf32>
    %120 = vector.shape_cast %119 : vector<1x16x128xf32> to vector<16x128xf32>
    %121 = vector.shape_cast %118 : vector<16x128xf32> to vector<1x16x128xf32>
    tpu.vector_store %arg10[%c1_79, %c0_80, %c0_81], %121 {strides = array<i32>} : memref<2x16x128xf32, #tpu.memory_space<vmem>>, vector<1x16x128xf32>,
    %122 = vector.shape_cast %118 : vector<16x128xf32> to vector<8x2x128xf32>
    %123 = vector.extract_strided_slice %122 {offsets = [0, 0, 0], sizes = [8, 1, 128], strides = [1, 1, 1]} : vector<8x2x128xf32> to vector<8x1x128xf32>
    %124 = vector.shape_cast %123 : vector<8x1x128xf32> to vector<8x128xf32>
    %125 = vector.extract_strided_slice %122 {offsets = [0, 1, 0], sizes = [8, 1, 128], strides = [1, 1, 1]} : vector<8x2x128xf32> to vector<8x1x128xf32>
    %126 = vector.shape_cast %125 : vector<8x1x128xf32> to vector<8x128xf32>
    %127 = arith.maximumf %124, %126 : vector<8x128xf32>
    %128 = vector.shape_cast %127 : vector<8x128xf32> to vector<8x8x16xf32>
    %129 = vector.extract_strided_slice %128 {offsets = [0, 0, 0], sizes = [8, 8, 8], strides = [1, 1, 1]} : vector<8x8x16xf32> to vector<8x8x8xf32>
    %130 = vector.extract_strided_slice %128 {offsets = [0, 0, 8], sizes = [8, 8, 8], strides = [1, 1, 1]} : vector<8x8x16xf32> to vector<8x8x8xf32>
    %131 = arith.maximumf %129, %130 : vector<8x8x8xf32>
    %132 = vector.shape_cast %131 : vector<8x8x8xf32> to vector<8x64xf32>
    %c1_82 = arith.constant 1 : index
    %c0_83 = arith.constant 0 : index
    %c0_84 = arith.constant 0 : index
    %133 = vector.load %arg11[%c1_82, %c0_83, %c0_84] : memref<2x8x64xf32, #tpu.memory_space<vmem>>, vector<1x8x64xf32>
    %134 = vector.shape_cast %133 : vector<1x8x64xf32> to vector<8x64xf32>
    %135 = vector.shape_cast %132 : vector<8x64xf32> to vector<1x8x64xf32>
    tpu.vector_store %arg11[%c1_82, %c0_83, %c0_84], %135 {strides = array<i32>} : memref<2x8x64xf32, #tpu.memory_space<vmem>>, vector<1x8x64xf32>,
    return
  }
}

</mosaic_0001>

<bundles_post_ra>
// kernel: encoder_block_forward.1
= control target key start
LH: loop header
LB: loop body
LE: loop exit
PB: predicated region body
PF: predicated region fallthrough
CT: control target
= control target key end

     0   :  { %v6747_v0 = vmov 0.0   ;;  %vm86_vm0 = vcmask 523264   ;;  %vm4434_vm1 = vmmov 0   ;;  %v4435_v38 = vmov 0   ;;  %s4437_s23 = smov 112   ;;  %s4440_s24 = smov 64   ;;  %s6735_s2 = inlined_call_operand.vmem [shape: f32[3,64,128], index: 2, kind: input, shape index: {}]   ;;  %s6736_s0 = inlined_call_operand.vmem [shape: f32[36,64], index: 0, kind: input, shape index: {}]   ;;  %s6737_s1 = inlined_call_operand.vmem [shape: f32[34,1], index: 1, kind: input, shape index: {}]   ;;  %s6738_s8 = inlined_call_operand.vmem [shape: f32[128,8], index: 8, kind: input, shape index: {}]   ;;  %s6739_s9 = inlined_call_operand.vmem [shape: f32[8,128], index: 9, kind: input, shape index: {}]   ;;  %s6740_s4 = inlined_call_operand.vmem [shape: f32[1,8], index: 4, kind: input, shape index: {}]   ;;  %s6741_s5 = inlined_call_operand.vmem [shape: f32[1,8], index: 5, kind: input, shape index: {}]   ;;  %s6742_s3 = inlined_call_operand.vmem [shape: f32[3,128,128], index: 3, kind: input, shape index: {}]   ;;  %s6743_s6 = inlined_call_operand.vmem [shape: f32[1,8], index: 6, kind: input, shape index: {}]   ;;  %s6744_s7 = inlined_call_operand.vmem [shape: f32[1,8], index: 7, kind: input, shape index: {}]   ;;  %s6745_s10 = inlined_call_operand.vmem [shape: f32[2,16,128], index: 10, kind: output, shape index: {0}]   ;;  %s6746_s11 = inlined_call_operand.vmem [shape: f32[2,8,64], index: 11, kind: output, shape index: {1}]  }
   0x1   :  { %4016 = vmatprep.subr.mxu0 %v6747_v0  ;;  %805 = vst [vmem:[#allocation2] sm:$0x1] %v6747_v0  ;;  %806 = vst [vmem:[#allocation2 + $0x23] sm:$0x1] %v6747_v0  ;;  %v3742_v1 = vld [vmem:[%s6735_s2 + $0x78] sm:$0xff]  ;;  %4047 = vmatprep.subr.mxu1 %v6747_v0  ;;  %v3741_v3 = vld [vmem:[%s6735_s2 + $0x70] sm:$0xff] }
   0x2   :  { %v71_v2 = vld [vmem:[%s6735_s2 + $0x38] sm:$0xff]  ;;  %4017 = vmatpush3.msra.mxu0 %v3742_v1  ;;  %v70_v4 = vld [vmem:[%s6735_s2 + $0x30] sm:$0xff]  ;;  %v3740_v5 = vld [vmem:[%s6735_s2 + $0x68] sm:$0xff]  ;;  %4032 = vmatprep.mubr.msk.f32.mxu0 %vm4434_vm1, %v6747_v0  ;;  %vm454_vm2 = vcmask 1041408   ;;  %vm630_vm3 = vcmask 64512   ;;  %s4441_s25 = smov 48  }
   0x3   :  { %4048 = vmatpush3.msra.mxu1 %v71_v2  ;;  %4018 = vmatprep.subr.mxu0 %v6747_v0  ;;  %v69_v6 = vld [vmem:[%s6735_s2 + $0x28] sm:$0xff]  ;;  %v3739_v7 = vld [vmem:[%s6735_s2 + $0x60] sm:$0xff]  ;;  %v3738_v9 = vld [vmem:[%s6735_s2 + $0x58] sm:$0xff]  ;;  %vm1707_vm4 = vcmask 1041409   ;;  %vm1709_vm5 = vcmask 1043459   ;;  %vm1711_vm6 = vcmask 1045509  }
   0x4   :  { %4049 = vmatprep.subr.mxu1 %v6747_v0  ;;  %4019 = vmatpush3.msra.mxu0 %v3741_v3  ;;  %v68_v8 = vld [vmem:[%s6735_s2 + $0x20] sm:$0xff]  ;;  %v67_v10 = vld [vmem:[%s6735_s2 + $0x18] sm:$0xff]  ;;  %v3737_v11 = vld [vmem:[%s6735_s2 + $0x50] sm:$0xff]  ;;  %vm1713_vm7 = vcmask 1047559   ;;  %s4445_s26 = smov 120   ;;  %s4446_s27 = smov 8  }
   0x5   :  { %4050 = vmatpush3.msra.mxu1 %v70_v4  ;;  %4020 = vmatprep.subr.mxu0 %v6747_v0  ;;  %v66_v12 = vld [vmem:[%s6735_s2 + $0x10] sm:$0xff]  ;;  %v3736_v13 = vld [vmem:[%s6735_s2 + $0x48] sm:$0xff]  ;;  %v3735_v15 = vld [vmem:[%s6735_s2 + $0x40] sm:$0xff]  ;;  %s4447_s28 = smov 24   ;;  %s4448_s29 = smov 40   ;;  %vm2603_vm8 = vcmask 130048  }
   0x6   :  { %4051 = vmatprep.subr.mxu1 %v6747_v0  ;;  %4021 = vmatpush3.msra.mxu0 %v3740_v5  ;;  %v65_v14 = vld [vmem:[%s6735_s2 + $0x8] sm:$0xff]  ;;  %v64_v17 = vld [vmem:[%s6735_s2] sm:$0xff]  ;;  %v3760_v19 = vld [vmem:[%s6735_s2 + $0xb8] sm:$0xff]  ;;  %vm2605_vm9 = vcmask 195584   ;;  %vm2607_vm10 = vcmask 261120   ;;  %vm2609_vm11 = vcmask 326656  }
   0x7   :  { %4052 = vmatpush3.msra.mxu1 %v69_v6  ;;  %4022 = vmatprep.subr.mxu0 %v6747_v0  ;;  %v72_v16 = vld [vmem:[%s6736_s0 + $0x1] sm:$0xff]  ;;  %v73_v20 = vld [vmem:[%s6736_s0 + $0x9] sm:$0xff]  ;;  %v74_v24 = vld [vmem:[%s6736_s0 + $0x11] sm:$0xff]  ;;  %vm2611_vm12 = vcmask 392192   ;;  %vm2613_vm13 = vcmask 457728  }
   0x8   :  { %4053 = vmatprep.subr.mxu1 %v6747_v0  ;;  %4023 = vmatpush3.msra.mxu0 %v3739_v7  ;;  %v59_v18 = vld [vmem:[%s6736_s0] sm:$0xff]  ;;  %v3759_v21 = vld [vmem:[%s6735_s2 + $0xb0] sm:$0xff]  ;;  %v60_v22 = vld [vmem:[%s6736_s0 + $0x8] sm:$0xff] }
   0x9   :  { %4054 = vmatpush3.msra.mxu1 %v68_v8  ;;  %4024 = vmatprep.subr.mxu0 %v6747_v0  ;;  %v3758_v23 = vld [vmem:[%s6735_s2 + $0xa8] sm:$0xff]  ;;  %v3757_v25 = vld [vmem:[%s6735_s2 + $0xa0] sm:$0xff]  ;;  %v61_v26 = vld [vmem:[%s6736_s0 + $0x10] sm:$0xff] }
   0xa   :  { %4055 = vmatprep.subr.mxu1 %v6747_v0  ;;  %4025 = vmatpush3.msra.mxu0 %v3738_v9  ;;  %v3756_v27 = vld [vmem:[%s6735_s2 + $0x98] sm:$0xff]  ;;  %v3755_v29 = vld [vmem:[%s6735_s2 + $0x90] sm:$0xff]  ;;  %v3754_v31 = vld [vmem:[%s6735_s2 + $0x88] sm:$0xff] }
   0xb   :  { %4056 = vmatpush3.msra.mxu1 %v67_v10  ;;  %4026 = vmatprep.subr.mxu0 %v6747_v0  ;;  %v75_v28 = vld [vmem:[%s6736_s0 + $0x19] sm:$0xff]  ;;  %v76_v32 = vld [vmem:[%s6736_s0 + $0x21] sm:$0x3]  ;;  %v39_v37 = vld [vmem:[%s6737_s1 + $0x10] sm:$0xff] }
   0xc   :  { %4057 = vmatprep.subr.mxu1 %v6747_v0  ;;  %4027 = vmatpush3.msra.mxu0 %v3737_v11  ;;  %v62_v30 = vld [vmem:[%s6736_s0 + $0x18] sm:$0xff]  ;;  %v3753_v33 = vld [vmem:[%s6735_s2 + $0x80] sm:$0xff]  ;;  %v38_v39 = vld [vmem:[%s6737_s1 + $0x8] sm:$0xff]  ;;  %s4449_s2 = smov 56  }
   0xd   :  { %4058 = vmatpush3.msra.mxu1 %v66_v12  ;;  %4028 = vmatprep.subr.mxu0 %v6747_v0  ;;  %v63_v34 = vld [vmem:[%s6736_s0 + $0x20] sm:$0x3]  ;;  %v297_v36 = vld [vmem:[%s6736_s0 + $0x2] sm:$0xff]  ;;  %v298_v40 = vld [vmem:[%s6736_s0 + $0xa] sm:$0xff] }
   0xe   :  { %4059 = vmatprep.subr.mxu1 %v6747_v0  ;;  %4029 = vmatpush3.msra.mxu0 %v3736_v13  ;;  %v37_v35 = vld [vmem:[%s6737_s1] sm:$0xff]  ;;  %v40_v41 = vld [vmem:[%s6737_s1 + $0x18] sm:$0xff]  ;;  %v4730_v47 = vld [vmem:[%s6738_s8 + $0x70] sm:$0xff] }
   0xf   :  { %4060 = vmatpush3.msra.mxu1 %v65_v14  ;;  %4030 = vmatprep.subr.mxu0 %v6747_v0  ;;  %v41_v42 = vld [vmem:[%s6737_s1 + $0x20] sm:$0x3]  ;;  %v299_v43 = vld [vmem:[%s6736_s0 + $0x12] sm:$0xff]  ;;  %v301_v45 = vld [vmem:[%s6736_s0 + $0x22] sm:$0x3]  ;;  %s4443_s1 = smov 16  }
  0x10   :  { %4031 = vmatpush3.msra.mxu0 %v3735_v15  ;;  %4061 = vmatprep.subr.mxu1 %v6747_v0  ;;  %v300_v44 = vld [vmem:[%s6736_s0 + $0x1a] sm:$0xff]  ;;  %v4739_v48 = vld [vmem:[%s6738_s8 + $0x68] sm:$0xff]  ;;  %v4766_v51 = vld [vmem:[%s6738_s8 + $0x50] sm:$0xff] }
  0x11   :  { %4033 = vmatmul.mubr.msk.f32.vlgmr.msra.gmra.mxu0 %vm86_vm0, %v72_v16  ;;  %4062 = vmatpush3.msra.mxu1 %v64_v17  ;;  %v4722_v46 = vld [vmem:[%s6738_s8 + $0x78] sm:$0xff]  ;;  %v4748_v49 = vld [vmem:[%s6738_s8 + $0x60] sm:$0xff]  ;;  %v4775_v52 = vld [vmem:[%s6738_s8 + $0x48] sm:$0xff] }
  0x12   :  { %4063 = vmatprep.mubr.msk.f32.mxu1 %vm4434_vm1, %v6747_v0  ;;  %4078 = vmatprep.subr.mxu0 %v6747_v0  ;;  %v4757_v50 = vld [vmem:[%s6738_s8 + $0x58] sm:$0xff]  ;;  %v4784_v53 = vld [vmem:[%s6738_s8 + $0x40] sm:$0xff]  ;;  %v4802_v55 = vld [vmem:[%s6738_s8 + $0x30] sm:$0xff] }
  0x13   :  { %4064 = vmatmul.mubr.msk.f32.vlgmr.msra.gmra.mxu1 %vm86_vm0, %v59_v18  ;;  %4079 = vmatpush3.msra.mxu0 %v3760_v19  ;;  %v4793_v54 = vld [vmem:[%s6738_s8 + $0x38] sm:$0xff]  ;;  %v4811_v56 = vld [vmem:[%s6738_s8 + $0x28] sm:$0xff]  ;;  %v4820_v57 = vld [vmem:[%s6738_s8 + $0x20] sm:$0xff] }
  0x14   :  { %4035 = vmatprep.mubr.msk.f32.mxu0 %vm4434_vm1, %v6747_v0  ;;  %4080 = vmatprep.subr.mxu0 %v6747_v0  ;;  %v4829_v58 = vld [vmem:[%s6738_s8 + $0x18] sm:$0xff]  ;;  %v4838_v59 = vld [vmem:[%s6738_s8 + $0x10] sm:$0xff]  ;;  %v4847_v60 = vld [vmem:[%s6738_s8 + $0x8] sm:$0xff] }
  0x15   :  { %4036 = vmatmul.mubr.msk.f32.gmra.mxu0 %vm86_vm0, %v73_v20  ;;  %4066 = vmatprep.mubr.msk.f32.mxu1 %vm4434_vm1, %v6747_v0  ;;  %v4853_v61 = vld [vmem:[%s6738_s8] sm:$0xff] }
  0x16   :  { %4081 = vmatpush3.msra.mxu0 %v3759_v21  ;;  %4038 = vmatprep.mubr.msk.f32.mxu0 %vm4434_vm1, %v6747_v0 }
  0x17   :  { %4067 = vmatmul.mubr.msk.f32.gmra.mxu1 %vm86_vm0, %v60_v22  ;;  %4082 = vmatprep.subr.mxu0 %v6747_v0 }
  0x18   :  { %4083 = vmatpush3.msra.mxu0 %v3758_v23  ;;  %4069 = vmatprep.mubr.msk.f32.mxu1 %vm4434_vm1, %v6747_v0 }
  0x19   :  { %4039 = vmatmul.mubr.msk.f32.gmra.mxu0 %vm86_vm0, %v74_v24  ;;  %4084 = vmatprep.subr.mxu0 %v6747_v0 }
  0x1a   :  { %4085 = vmatpush3.msra.mxu0 %v3757_v25  ;;  %4041 = vmatprep.mubr.msk.f32.mxu0 %vm4434_vm1, %v6747_v0 }
  0x1b   :  { %4070 = vmatmul.mubr.msk.f32.gmra.mxu1 %vm86_vm0, %v61_v26  ;;  %4086 = vmatprep.subr.mxu0 %v6747_v0 }
  0x1c   :  { %4087 = vmatpush3.msra.mxu0 %v3756_v27  ;;  %4072 = vmatprep.mubr.msk.f32.mxu1 %vm4434_vm1, %v6747_v0 }
  0x1d   :  { %4042 = vmatmul.mubr.msk.f32.gmra.mxu0 %vm86_vm0, %v75_v28  ;;  %4088 = vmatprep.subr.mxu0 %v6747_v0 }
  0x1e   :  { %4089 = vmatpush3.msra.mxu0 %v3755_v29  ;;  %4044 = vmatprep.mubr.msk.f32.mxu0 %vm4434_vm1, %v6747_v0 }
  0x1f   :  { %4073 = vmatmul.mubr.msk.f32.gmra.mxu1 %vm86_vm0, %v62_v30  ;;  %4090 = vmatprep.subr.mxu0 %v6747_v0 }
  0x20   :  { %4075 = vmatprep.mubr.msk.f32.mxu1 %vm4434_vm1, %v6747_v0  ;;  %4091 = vmatpush3.msra.mxu0 %v3754_v31 }
  0x21   :  { %4045 = vmatmul.mubr.msk.f32.gmra.mxu0 %vm86_vm0, %v76_v32  ;;  %4092 = vmatprep.subr.mxu0 %v6747_v0 }
  0x22   :  { %4093 = vmatpush3.msra.mxu0 %v3753_v33  ;;  %4094 = vmatprep.mubr.msk.f32.mxu0 %vm4434_vm1, %v6747_v0 }
  0x23   :  { %4076 = vmatmul.mubr.msk.f32.gmra.mxu1 %vm86_vm0, %v63_v34  ;;  %4427 = vset.pattern.permute.xlu0 %v4435_v38 }
  0x24   :  { %423 = vperm.xlu0 %4427, %v37_v35   ;;  %4428 = vset.pattern.permute.xlu1 %v4435_v38 }
  0x25   :  { %4095 = vmatmul.mubr.msk.f32.vlgmr.msra.gmra.mxu0 %vm86_vm0, %v297_v36  ;;  %433 = vperm.xlu1 %4428, %v39_v37  }
  0x26   :  { %4097 = vmatprep.mubr.msk.f32.mxu0 %vm4434_vm1, %v6747_v0  ;;  %4109 = vmatprep.subr.mxu1 %v6747_v0 }
  0x27   :  { %4144 = vmatprep.subr.mxu0 %v6747_v0  ;;  %4141 = vmatprep.mubr.msk.f32.mxu1 %vm4434_vm1, %v6747_v0 }
  0x28   :  { %428 = vperm.xlu0 %4427, %v38_v39   ;;  %4110 = vmatpush3.msra.mxu1 %v4722_v46 }
  0x29   :  { %4098 = vmatmul.mubr.msk.f32.gmra.mxu0 %vm86_vm0, %v298_v40  ;;  %438 = vperm.xlu1 %4428, %v40_v41  }
  0x2a   :  { %4100 = vmatprep.mubr.msk.f32.mxu0 %vm4434_vm1, %v6747_v0  ;;  %4145 = vmatpush3.msra.mxu0 %v4722_v46 }
  0x2b   :  { %4111 = vmatprep.subr.mxu1 %v6747_v0  ;;  %4146 = vmatprep.subr.mxu0 %v6747_v0 }
  0x2c   :  { %443 = vperm.xlu0 %4427, %v41_v42   ;;  %4112 = vmatpush3.msra.mxu1 %v4730_v47 }
  0x2d   :  { %4101 = vmatmul.mubr.msk.f32.gmra.mxu0 %vm86_vm0, %v299_v43  ;;  %4113 = vmatprep.subr.mxu1 %v6747_v0 }
  0x2e   :  { %4103 = vmatprep.mubr.msk.f32.mxu0 %vm4434_vm1, %v6747_v0  ;;  %4147 = vmatpush3.msra.mxu0 %v4730_v47 }
  0x2f   :  { %4148 = vmatprep.subr.mxu0 %v6747_v0  ;;  %4114 = vmatpush3.msra.mxu1 %v4739_v48 }
  0x30   :  { %4149 = vmatpush3.msra.mxu0 %v4739_v48  ;;  %4115 = vmatprep.subr.mxu1 %v6747_v0 }
  0x31   :  { %4104 = vmatmul.mubr.msk.f32.gmra.mxu0 %vm86_vm0, %v300_v44  ;;  %4150 = vmatprep.subr.mxu0 %v6747_v0 }
  0x32   :  { %4106 = vmatprep.mubr.msk.f32.mxu0 %vm4434_vm1, %v6747_v0  ;;  %4116 = vmatpush3.msra.mxu1 %v4748_v49 }
  0x33   :  { %4151 = vmatpush3.msra.mxu0 %v4748_v49  ;;  %4117 = vmatprep.subr.mxu1 %v6747_v0 }
  0x34   :  { %4152 = vmatprep.subr.mxu0 %v6747_v0  ;;  %4118 = vmatpush3.msra.mxu1 %v4757_v50 }
  0x35   :  { %4107 = vmatmul.mubr.msk.f32.gmra.mxu0 %vm86_vm0, %v301_v45  ;;  %4119 = vmatprep.subr.mxu1 %v6747_v0 }
  0x36   :  { %4176 = vmatprep.mubr.msk.f32.mxu0 %vm4434_vm1, %v6747_v0  ;;  %4153 = vmatpush3.msra.mxu0 %v4757_v50 }
  0x37   :  { %4154 = vmatprep.subr.mxu0 %v6747_v0  ;;  %4120 = vmatpush3.msra.mxu1 %v4766_v51 }
  0x38   :  { %4155 = vmatpush3.msra.mxu0 %v4766_v51  ;;  %4121 = vmatprep.subr.mxu1 %v6747_v0 }
  0x39   :  { %4156 = vmatprep.subr.mxu0 %v6747_v0  ;;  %4122 = vmatpush3.msra.mxu1 %v4775_v52 }
  0x3a   :  { %4157 = vmatpush3.msra.mxu0 %v4775_v52  ;;  %4123 = vmatprep.subr.mxu1 %v6747_v0 }
  0x3b   :  { %4158 = vmatprep.subr.mxu0 %v6747_v0  ;;  %4124 = vmatpush3.msra.mxu1 %v4784_v53 }
  0x3c   :  { %4159 = vmatpush3.msra.mxu0 %v4784_v53  ;;  %4125 = vmatprep.subr.mxu1 %v6747_v0 }
  0x3d   :  { %4160 = vmatprep.subr.mxu0 %v6747_v0  ;;  %4126 = vmatpush3.msra.mxu1 %v4793_v54 }
  0x3e   :  { %4161 = vmatpush3.msra.mxu0 %v4793_v54  ;;  %4127 = vmatprep.subr.mxu1 %v6747_v0 }
  0x3f   :  { %4162 = vmatprep.subr.mxu0 %v6747_v0  ;;  %4128 = vmatpush3.msra.mxu1 %v4802_v55 }
  0x40   :  { %4163 = vmatpush3.msra.mxu0 %v4802_v55  ;;  %4129 = vmatprep.subr.mxu1 %v6747_v0 }
  0x41   :  { %4164 = vmatprep.subr.mxu0 %v6747_v0  ;;  %4130 = vmatpush3.msra.mxu1 %v4811_v56 }
  0x42   :  { %4165 = vmatpush3.msra.mxu0 %v4811_v56  ;;  %4131 = vmatprep.subr.mxu1 %v6747_v0 }
  0x43   :  { %4166 = vmatprep.subr.mxu0 %v6747_v0  ;;  %4132 = vmatpush3.msra.mxu1 %v4820_v57 }
  0x44   :  { %4167 = vmatpush3.msra.mxu0 %v4820_v57  ;;  %4133 = vmatprep.subr.mxu1 %v6747_v0 }
  0x45   :  { %4168 = vmatprep.subr.mxu0 %v6747_v0  ;;  %4134 = vmatpush3.msra.mxu1 %v4829_v58 }
  0x46   :  { %4169 = vmatpush3.msra.mxu0 %v4829_v58  ;;  %4135 = vmatprep.subr.mxu1 %v6747_v0 }
  0x47   :  { %4170 = vmatprep.subr.mxu0 %v6747_v0  ;;  %4136 = vmatpush3.msra.mxu1 %v4838_v59 }
  0x48   :  { %4171 = vmatpush3.msra.mxu0 %v4838_v59  ;;  %4137 = vmatprep.subr.mxu1 %v6747_v0 }
  0x49   :  { %4172 = vmatprep.subr.mxu0 %v6747_v0  ;;  %4138 = vmatpush3.msra.mxu1 %v4847_v60 }
  0x4a   :  { %4173 = vmatpush3.msra.mxu0 %v4847_v60  ;;  %4139 = vmatprep.subr.mxu1 %v6747_v0 }
  0x4b   :  { %4174 = vmatprep.subr.mxu0 %v6747_v0  ;;  %4140 = vmatpush3.msra.mxu1 %v4853_v61 }
  0x4c   :  { %4175 = vmatpush3.msra.mxu0 %v4853_v61  ;;  %4184 = vmatprep.subr.mxu1 %v6747_v0 }
  0x4d   :  { %4179 = vmatprep.subr.mxu0 %v6747_v0 }
  0x9f   :  { %v4863_v20 = vpop.permute.xlu0 %423 }
  0xa0   :  { %v4867_v27 = vpop.permute.xlu1 %433 }
  0xa3   :  { %v4869_v29 = vpop.permute.xlu0 %428 }
  0xa4   :  { %v4881_v39 = vpop.permute.xlu1 %438 }
  0xd1   :  { %v168_v62 = vpop.f32.mrf.mxu0 }
  0xd3   :  { %v273_v63 = vpop.f32.mrf.mxu1  ;;  %v4034_v1 = vpop.f32.mrf.mxu0 }
  0xd4   :  { %v274_v24 = vadd.f32 %v273_v63, %v168_v62 }
  0xd5   :  { %v4065_v2 = vpop.f32.mrf.mxu1  ;;  %v173_v3 = vpop.f32.mrf.mxu0 }
  0xd7   :  { %v278_v4 = vpop.f32.mrf.mxu1  ;;  %v4037_v5 = vpop.f32.mrf.mxu0 }
  0xd8   :  { %v279_v22 = vadd.f32 %v278_v4, %v173_v3  ;;  %v4889_v5 = vpop.permute.xlu0 %443 }
  0xd9   :  { %v4068_v6 = vpop.f32.mrf.mxu1  ;;  %v178_v7 = vpop.f32.mrf.mxu0 }
  0xdb   :  { %v283_v8 = vpop.f32.mrf.mxu1  ;;  %v4040_v9 = vpop.f32.mrf.mxu0 }
  0xdc   :  { %v284_v28 = vadd.f32 %v283_v8, %v178_v7 }
  0xdd   :  { %v4071_v10 = vpop.f32.mrf.mxu1  ;;  %v183_v11 = vpop.f32.mrf.mxu0 }
  0xdf   :  { %v288_v12 = vpop.f32.mrf.mxu1  ;;  %v4043_v13 = vpop.f32.mrf.mxu0 }
  0xe0   :  { %v289_v35 = vadd.f32 %v288_v12, %v183_v11 }
  0xe1   :  { %v4074_v14 = vpop.f32.mrf.mxu1  ;;  %v188_v15 = vpop.f32.mrf.mxu0 }
  0xe3   :  { %v293_v16 = vpop.f32.mrf.mxu1  ;;  %v4046_v17 = vpop.f32.mrf.mxu0 }
  0xe4   :  { %v294_v43 = vadd.f32 %v293_v16, %v188_v15 }
  0xe5   :  { %v392_v18 = vpop.f32.mrf.mxu0  ;;  %v4077_v19 = vpop.f32.mrf.mxu1 }
  0xe6   :  { %v4871_v30 = vadd.f32 %v392_v18, %v274_v24 }
  0xe7   :  { %v4096_v21 = vpop.f32.mrf.mxu0 }
  0xe8   :  { %v446_v36 = vmul.f32 %v4863_v20, %v4871_v30 }
  0xe9   :  { %v397_v23 = vpop.f32.mrf.mxu0 }
  0xea   :  { %v4865_v25 = vadd.f32 %v397_v23, %v279_v22  ;;  %v463_v45 = vmul.f32 %v446_v36, %v446_v36 }
  0xeb   :  { %v4099_v26 = vpop.f32.mrf.mxu0 }
  0xec   :  { %v447_v33 = vmul.f32 %v4869_v29, %v4865_v25 }
  0xed   :  { %v402_v31 = vpop.f32.mrf.mxu0 }
  0xee   :  { %v4873_v32 = vadd.f32 %v402_v31, %v284_v28  ;;  %v464_v41 = vmul.f32 %v447_v33, %v447_v33  ;;  %v451_v62 = vadd.f32 %v447_v33, %v446_v36 }
  0xef   :  { %v4102_v34 = vpop.f32.mrf.mxu0 }
  0xf0   :  { %v448_v37 = vmul.f32 %v4867_v27, %v4873_v32  ;;  %v468_v3 = vadd.f32 %v464_v41, %v463_v45 }
  0xf1   :  { %v407_v38 = vpop.f32.mrf.mxu0 }
  0xf2   :  { %v4883_v40 = vadd.f32 %v407_v38, %v289_v35  ;;  %v465_v63 = vmul.f32 %v448_v37, %v448_v37  ;;  %v452_v4 = vadd.f32 %v451_v62, %v448_v37  ;;  %v4902_v35 = vld [vmem:[%s6739_s9] sm:$0xff] }
  0xf3   :  { %v4105_v42 = vpop.f32.mrf.mxu0 }
  0xf4   :  { %v449_v44 = vmul.f32 %v4881_v39, %v4883_v40  ;;  %v469_v9 = vadd.f32 %v468_v3, %v465_v63  ;;  %v623_v63 = vld [vmem:[%s6740_s4] sm:$0x1]  ;;  %s4439_s4 = smov 80  }
  0xf5   :  { %v412_v1 = vpop.f32.mrf.mxu0 }
  0xf6   :  { %v4887_v2 = vadd.f32 %v412_v1, %v294_v43  ;;  %v466_v6 = vmul.f32 %v449_v44, %v449_v44  ;;  %v453_v10 = vadd.f32 %v452_v4, %v449_v44  ;;  %v832_v4 = vld [vmem:[%s6742_s3 + $0x78] sm:$0xff] }
  0xf7   :  { %v4108_v7 = vpop.f32.mrf.mxu0 }
  0xf8   :  { %v450_v8 = vmul.f32 %v4889_v5, %v4887_v2  ;;  %v470_v14 = vadd.f32 %v469_v9, %v466_v6  ;;  %v627_v6 = vld [vmem:[%s6741_s5] sm:$0x1]  ;;  %s4442_s5 = smov 32  }
  0xfa   :  { %v455_v11 = vsel %vm454_vm2, %v450_v8, 0.0  ;;  %v467_v12 = vmul.f32 %v450_v8, %v450_v8  ;;  %v831_v8 = vld [vmem:[%s6742_s3 + $0x70] sm:$0xff] }
  0xfb   :  { %v456_v13 = vadd.f32 %v455_v11, %v453_v10  ;;  %v3783_v10 = vld [vmem:[%s6742_s3 + $0xf8] sm:$0xff]  ;;  %v830_v11 = vld [vmem:[%s6742_s3 + $0x68] sm:$0xff] }
  0xfc   :  { %v471_v15 = vsel %vm454_vm2, %v467_v12, 0.0  ;;  %v3782_v12 = vld [vmem:[%s6742_s3 + $0xf0] sm:$0xff] }
  0xfd   :  { %v457_v16 = vrot.slane %v456_v13, 4  ;;  %v472_v17 = vadd.f32 %v471_v15, %v470_v14  ;;  %v3781_v14 = vld [vmem:[%s6742_s3 + $0xe8] sm:$0xff]  ;;  %v828_v15 = vld [vmem:[%s6742_s3 + $0x58] sm:$0xff] }
  0xff   :  { %v458_v18 = vadd.f32 %v457_v16, %v456_v13  ;;  %v473_v19 = vrot.slane %v472_v17, 4  ;;  %v829_v13 = vld [vmem:[%s6742_s3 + $0x60] sm:$0xff] }
 0x100   :  { %v3780_v16 = vld [vmem:[%s6742_s3 + $0xe0] sm:$0xff] }
 0x101   :  { %v459_v21 = vrot.slane %v458_v18, 2  ;;  %v474_v22 = vadd.f32 %v473_v19, %v472_v17  ;;  %v3779_v17 = vld [vmem:[%s6742_s3 + $0xd8] sm:$0xff]  ;;  %v3777_v19 = vld [vmem:[%s6742_s3 + $0xc8] sm:$0xff] }
 0x103   :  { %v460_v23 = vadd.f32 %v459_v21, %v458_v18  ;;  %v475_v24 = vrot.slane %v474_v22, 2  ;;  %v3778_v18 = vld [vmem:[%s6742_s3 + $0xd0] sm:$0xff]  ;;  %v3776_v21 = vld [vmem:[%s6742_s3 + $0xc0] sm:$0xff] }
 0x105   :  { %v461_v26 = vrot.slane %v460_v23, 1  ;;  %v476_v28 = vadd.f32 %v475_v24, %v474_v22  ;;  %v3775_v22 = vld [vmem:[%s6742_s3 + $0xb8] sm:$0xff]  ;;  %v827_v24 = vld [vmem:[%s6742_s3 + $0x50] sm:$0xff] }
 0x107   :  { %v462_v31 = vadd.f32 %v461_v26, %v460_v23  ;;  %v477_v33 = vrot.slane %v476_v28, 1  ;;  %v3774_v23 = vld [vmem:[%s6742_s3 + $0xb0] sm:$0xff]  ;;  %v3773_v26 = vld [vmem:[%s6742_s3 + $0xa8] sm:$0xff] }
 0x109   :  { %4142 = vmatmul.mubr.f32.vlgmr.msra.gmra.mxu1 %v462_v31  ;;  %v478_v34 = vadd.f32 %v477_v33, %v476_v28  ;;  %v826_v28 = vld [vmem:[%s6742_s3 + $0x48] sm:$0xff]  ;;  %v3772_v31 = vld [vmem:[%s6742_s3 + $0xa0] sm:$0xff] }
 0x10a   :  { %4186 = vmatprep.mubr.msk.f32.mxu1 %vm4434_vm1, %v6747_v0  ;;  %4185 = vmatpush3.msra.mxu1 %v4902_v35  ;;  %v825_v33 = vld [vmem:[%s6742_s3 + $0x40] sm:$0xff] }
 0x10b   :  { %4177 = vmatmul.mubr.f32.vlgmr.msra.gmra.mxu0 %v478_v34  ;;  %4189 = vmatprep.subr.mxu1 %v6747_v0  ;;  %v3771_v34 = vld [vmem:[%s6742_s3 + $0x98] sm:$0xff] }
 0x10c   :  { %4181 = vmatprep.mubr.msk.f32.mxu0 %vm4434_vm1, %v6747_v0  ;;  %4180 = vmatpush3.msra.mxu0 %v4902_v35 }
 0x10d   :  { %4236 = vmatprep.subr.mxu0 %v6747_v0 }
 0x1c9   :  { %v545_v36 = vpop.f32.mrf.mxu1 }
 0x1ca   :  { %v549_v37 = vmul.f32 0.001953125, %v545_v36  ;;  %v824_v36 = vld [vmem:[%s6742_s3 + $0x38] sm:$0xff] }
 0x1cb   :  { %v4143_v38 = vpop.f32.mrf.mxu1  ;;  %v616_v41 = vpop.f32.mrf.mxu0 }
 0x1cc   :  { %v621_v42 = vmul.f32 %v549_v37, %v549_v37  ;;  %v620_v43 = vmul.f32 0.001953125, %v616_v41  ;;  %v823_v38 = vld [vmem:[%s6742_s3 + $0x30] sm:$0xff]  ;;  %v3769_v41 = vld [vmem:[%s6742_s3 + $0x88] sm:$0xff] }
 0x1cd   :  { %v4178_v44 = vpop.f32.mrf.mxu0 }
 0x1ce   :  { %v622_v45 = vsub.f32 %v620_v43, %v621_v42  ;;  %v822_v42 = vld [vmem:[%s6742_s3 + $0x28] sm:$0xff]  ;;  %v3768_v43 = vld [vmem:[%s6742_s3 + $0x80] sm:$0xff] }
 0x1cf   :  { %v821_v44 = vld [vmem:[%s6742_s3 + $0x20] sm:$0xff] }
 0x1d0   :  { %v624_v62 = vadd.f32 1e-05, %v622_v45  ;;  %v820_v45 = vld [vmem:[%s6742_s3 + $0x18] sm:$0xff] }
 0x1d2   :  { %4429 = vrsqrt.f32 %v624_v62  ;;  %v819_v62 = vld [vmem:[%s6742_s3 + $0x10] sm:$0xff] }
 0x1df   :  { %v4430_v1 = vpop.eup %4429 }
 0x1e0   :  { %v626_v3 = vmul.f32 %v4430_v1, %v623_v63  ;;  %v818_v63 = vld [vmem:[%s6742_s3 + $0x8] sm:$0xff]  ;;  %v817_v1 = vld [vmem:[%s6742_s3] sm:$0xff] }
 0x1e2   :  { %4182 = vmatmul.mubr.msk.f32.vlgmr.msra.gmra.mxu0 %vm630_vm3, %v626_v3  ;;  %v628_v7 = vmul.f32 %v626_v3, %v549_v37  ;;  %v3770_v37 = vld [vmem:[%s6742_s3 + $0x90] sm:$0xff]  ;;  %v777_v3 = vlaneseq }
 0x1e3   :  { %4237 = vmatpush3.msra.mxu0 %v832_v4  ;;  %4268 = vmatprep.mubr.msk.f32.mxu0 %vm4434_vm1, %v6747_v0 }
 0x1e4   :  { %v629_v9 = vsub.f32 %v627_v6, %v628_v7  ;;  %4238 = vmatprep.subr.mxu0 %v6747_v0  ;;  %v5048_v4 = vshrl.u32 %v777_v3, 7 }
 0x1e5   :  { %4239 = vmatpush3.msra.mxu0 %v831_v8 }
 0x1e6   :  { %4187 = vmatmul.mubr.msk.f32.vlgmr.msra.gmra.mxu1 %vm630_vm3, %v629_v9  ;;  %4240 = vmatprep.subr.mxu0 %v6747_v0  ;;  %v5051_v6 = vsub.s32 0, %v5048_v4 }
 0x1e7   :  { %4190 = vmatpush3.msra.mxu1 %v3783_v10  ;;  %4241 = vmatpush3.msra.mxu0 %v830_v11 }
 0x1e8   :  { %4191 = vmatprep.subr.mxu1 %v6747_v0  ;;  %4242 = vmatprep.subr.mxu0 %v6747_v0 }
 0x1e9   :  { %4192 = vmatpush3.msra.mxu1 %v3782_v12  ;;  %4243 = vmatpush3.msra.mxu0 %v829_v13 }
 0x1ea   :  { %4193 = vmatprep.subr.mxu1 %v6747_v0  ;;  %4244 = vmatprep.subr.mxu0 %v6747_v0 }
 0x1eb   :  { %4194 = vmatpush3.msra.mxu1 %v3781_v14  ;;  %4245 = vmatpush3.msra.mxu0 %v828_v15 }
 0x1ec   :  { %4195 = vmatprep.subr.mxu1 %v6747_v0  ;;  %4246 = vmatprep.subr.mxu0 %v6747_v0 }
 0x1ed   :  { %4196 = vmatpush3.msra.mxu1 %v3780_v16  ;;  %4221 = vmatprep.mubr.msk.f32.mxu1 %vm4434_vm1, %v6747_v0 }
 0x1ee   :  { %4197 = vmatprep.subr.mxu1 %v6747_v0  ;;  %4247 = vmatpush3.msra.mxu0 %v827_v24 }
 0x1ef   :  { %4198 = vmatpush3.msra.mxu1 %v3779_v17  ;;  %4248 = vmatprep.subr.mxu0 %v6747_v0 }
 0x1f0   :  { %4199 = vmatprep.subr.mxu1 %v6747_v0  ;;  %4249 = vmatpush3.msra.mxu0 %v826_v28 }
 0x1f1   :  { %4200 = vmatpush3.msra.mxu1 %v3778_v18  ;;  %4250 = vmatprep.subr.mxu0 %v6747_v0 }
 0x1f2   :  { %4201 = vmatprep.subr.mxu1 %v6747_v0  ;;  %4251 = vmatpush3.msra.mxu0 %v825_v33 }
 0x1f3   :  { %4202 = vmatpush3.msra.mxu1 %v3777_v19  ;;  %4252 = vmatprep.subr.mxu0 %v6747_v0 }
 0x1f4   :  { %4203 = vmatprep.subr.mxu1 %v6747_v0  ;;  %4253 = vmatpush3.msra.mxu0 %v824_v36  ;;  %v3798_v36 = vld [vmem:[%s6742_s3 + $0x170] sm:$0xff] }
 0x1f5   :  { %4204 = vmatpush3.msra.mxu1 %v3776_v21  ;;  %4254 = vmatprep.subr.mxu0 %v6747_v0 }
 0x1f6   :  { %4205 = vmatprep.subr.mxu1 %v6747_v0  ;;  %4255 = vmatpush3.msra.mxu0 %v823_v38  ;;  %v3796_v38 = vld [vmem:[%s6742_s3 + $0x160] sm:$0xff] }
 0x1f7   :  { %4206 = vmatpush3.msra.mxu1 %v3775_v22  ;;  %4256 = vmatprep.subr.mxu0 %v6747_v0 }
 0x1f8   :  { %4207 = vmatprep.subr.mxu1 %v6747_v0  ;;  %4257 = vmatpush3.msra.mxu0 %v822_v42  ;;  %v3795_v42 = vld [vmem:[%s6742_s3 + $0x158] sm:$0xff] }
 0x1f9   :  { %4208 = vmatpush3.msra.mxu1 %v3774_v23  ;;  %4258 = vmatprep.subr.mxu0 %v6747_v0 }
 0x1fa   :  { %4209 = vmatprep.subr.mxu1 %v6747_v0  ;;  %4259 = vmatpush3.msra.mxu0 %v821_v44 }
 0x1fb   :  { %4210 = vmatpush3.msra.mxu1 %v3773_v26  ;;  %4260 = vmatprep.subr.mxu0 %v6747_v0 }
 0x1fc   :  { %4211 = vmatprep.subr.mxu1 %v6747_v0  ;;  %4261 = vmatpush3.msra.mxu0 %v820_v45  ;;  %v3793_v45 = vld [vmem:[%s6742_s3 + $0x148] sm:$0xff] }
 0x1fd   :  { %4212 = vmatpush3.msra.mxu1 %v3772_v31  ;;  %4262 = vmatprep.subr.mxu0 %v6747_v0 }
 0x1fe   :  { %4213 = vmatprep.subr.mxu1 %v6747_v0  ;;  %4263 = vmatpush3.msra.mxu0 %v819_v62  ;;  %v3792_v62 = vld [vmem:[%s6742_s3 + $0x140] sm:$0xff] }
 0x1ff   :  { %4214 = vmatpush3.msra.mxu1 %v3771_v34  ;;  %4264 = vmatprep.subr.mxu0 %v6747_v0 }
 0x200   :  { %4215 = vmatprep.subr.mxu1 %v6747_v0  ;;  %4265 = vmatpush3.msra.mxu0 %v818_v63 }
 0x201   :  { %4216 = vmatpush3.msra.mxu1 %v3770_v37  ;;  %4266 = vmatprep.subr.mxu0 %v6747_v0  ;;  %v3797_v37 = vld [vmem:[%s6742_s3 + $0x168] sm:$0xff] }
 0x202   :  { %4217 = vmatprep.subr.mxu1 %v6747_v0  ;;  %4267 = vmatpush3.msra.mxu0 %v817_v1  ;;  %v3791_v1 = vld [vmem:[%s6742_s3 + $0x138] sm:$0xff] }
 0x203   :  { %4218 = vmatpush3.msra.mxu1 %v3769_v41  ;;  %4330 = vmatprep.subr.mxu0 %v6747_v0 }
 0x204   :  { %4219 = vmatprep.subr.mxu1 %v6747_v0 }
 0x205   :  { %4220 = vmatpush3.msra.mxu1 %v3768_v43  ;;  %v3794_v43 = vld [vmem:[%s6742_s3 + $0x150] sm:$0xff] }
 0x206   :  { %4283 = vmatprep.subr.mxu1 %v6747_v0 }
 0x2a2   :  { %v700_v7 = vpop.f32.mrf.mxu0 }
 0x2a3   :  { %v780_v8 = vrot.slane %v700_v7, %v5051_v6  ;;  %v3790_v7 = vld [vmem:[%s6742_s3 + $0x130] sm:$0xff] }
 0x2a4   :  { %v4183_v9 = vpop.f32.mrf.mxu0 }
 0x2a5   :  { %v781_v10 = vmul.f32 %v780_v8, %v4871_v30  ;;  %v782_v12 = vmul.f32 %v780_v8, %v4865_v25  ;;  %v783_v13 = vmul.f32 %v780_v8, %v4873_v32  ;;  %v784_v14 = vmul.f32 %v780_v8, %v4883_v40  ;;  %v3789_v9 = vld [vmem:[%s6742_s3 + $0x128] sm:$0xff] }
 0x2a6   :  { %v773_v11 = vpop.f32.mrf.mxu1  ;;  %v785_v16 = vmul.f32 %v780_v8, %v4887_v2  ;;  %v3799_v2 = vld [vmem:[%s6742_s3 + $0x178] sm:$0xff] }
 0x2a7   :  { %v789_v15 = vrot.slane %v773_v11, %v5051_v6 }
 0x2a8   :  { %v4188_v17 = vpop.f32.mrf.mxu1 }
 0x2a9   :  { %v790_v18 = vadd.f32 %v789_v15, %v781_v10  ;;  %v791_v19 = vadd.f32 %v789_v15, %v782_v12  ;;  %v792_v21 = vadd.f32 %v789_v15, %v783_v13  ;;  %v793_v22 = vadd.f32 %v789_v15, %v784_v14  ;;  %v3788_v10 = vld [vmem:[%s6742_s3 + $0x120] sm:$0xff]  ;;  %v3787_v12 = vld [vmem:[%s6742_s3 + $0x118] sm:$0xff]  ;;  %v3786_v13 = vld [vmem:[%s6742_s3 + $0x110] sm:$0xff] }
 0x2aa   :  { %v794_v23 = vadd.f32 %v789_v15, %v785_v16  ;;  %v3785_v14 = vld [vmem:[%s6742_s3 + $0x108] sm:$0xff]  ;;  %v3784_v15 = vld [vmem:[%s6742_s3 + $0x100] sm:$0xff] }
 0x2ab   :  { %v795_v24 = vmax.f32 %v790_v18, 0.0  ;;  %v796_v26 = vmax.f32 %v791_v19, 0.0  ;;  %v797_v30 = vmax.f32 %v792_v21, 0.0  ;;  %v798_v28 = vmax.f32 %v793_v22, 0.0 }
 0x2ac   :  { %v799_v31 = vmax.f32 %v794_v23, 0.0 }
 0x2ad   :  { %v800_v25 = vmul.f32 %v795_v24, %v4863_v20  ;;  %v801_v32 = vmul.f32 %v796_v26, %v4869_v29  ;;  %v802_v40 = vmul.f32 %v797_v30, %v4867_v27  ;;  %v803_v33 = vmul.f32 %v798_v28, %v4881_v39 }
 0x2ae   :  { %v804_v34 = vmul.f32 %v799_v31, %v4889_v5 }
 0x2af   :  { %807 = vst [vmem:[#allocation2 + $0x1] sm:$0xff] %v800_v25  ;;  %808 = vst [vmem:[#allocation2 + $0x9] sm:$0xff] %v801_v32  ;;  %4222 = vmatmul.mubr.f32.vlgmr.msra.gmra.mxu1 %v800_v25 }
 0x2b0   :  { %809 = vst [vmem:[#allocation2 + $0x11] sm:$0xff] %v802_v40  ;;  %810 = vst [vmem:[#allocation2 + $0x19] sm:$0xff] %v803_v33  ;;  %4284 = vmatpush3.msra.mxu1 %v3799_v2  ;;  %4224 = vmatprep.mubr.msk.f32.mxu1 %vm4434_vm1, %v6747_v0 }
 0x2b1   :  { %811 = vst [vmem:[#allocation2 + $0x21] sm:$0x3] %v804_v34  ;;  %4285 = vmatprep.subr.mxu1 %v6747_v0 }
 0x2b2   :  { %4286 = vmatpush3.msra.mxu1 %v3798_v36 }
 0x2b3   :  { %4287 = vmatprep.subr.mxu1 %v6747_v0  ;;  %4225 = vmatmul.mubr.f32.gmra.mxu1 %v801_v32 }
 0x2b4   :  { %4288 = vmatpush3.msra.mxu1 %v3797_v37  ;;  %4227 = vmatprep.mubr.msk.f32.mxu1 %vm4434_vm1, %v6747_v0 }
 0x2b5   :  { %4289 = vmatprep.subr.mxu1 %v6747_v0 }
 0x2b6   :  { %v812_v41 = vld [vmem:[#allocation2] sm:$0xff]  ;;  %4290 = vmatpush3.msra.mxu1 %v3796_v38  ;;  %v813_v44 = vld [vmem:[#allocation2 + $0x8] sm:$0xff] }
 0x2b7   :  { %4269 = vmatmul.mubr.f32.vlgmr.msra.gmra.mxu0 %v812_v41  ;;  %4291 = vmatprep.subr.mxu1 %v6747_v0  ;;  %v814_v63 = vld [vmem:[#allocation2 + $0x10] sm:$0xff]  ;;  %v815_v8 = vld [vmem:[#allocation2 + $0x18] sm:$0xff]  ;;  %v1035_v16 = vld [vmem:[#allocation2 + $0x2] sm:$0xff] }
 0x2b8   :  { %4271 = vmatprep.mubr.msk.f32.mxu0 %vm4434_vm1, %v6747_v0  ;;  %4228 = vmatmul.mubr.f32.gmra.mxu1 %v802_v40  ;;  %v837_v3 = vld [vmem:[#allocation2 + $0x21] sm:$0x3]  ;;  %v1036_v17 = vld [vmem:[#allocation2 + $0xa] sm:$0xff] }
 0x2b9   :  { %4292 = vmatpush3.msra.mxu1 %v3795_v42  ;;  %4230 = vmatprep.mubr.msk.f32.mxu1 %vm4434_vm1, %v6747_v0  ;;  %v816_v11 = vld [vmem:[#allocation2 + $0x20] sm:$0x3] }
 0x2ba   :  { %4293 = vmatprep.subr.mxu1 %v6747_v0  ;;  %4331 = vmatpush3.msra.mxu0 %v4722_v46 }
 0x2bb   :  { %4272 = vmatmul.mubr.f32.gmra.mxu0 %v813_v44  ;;  %4294 = vmatpush3.msra.mxu1 %v3794_v43 }
 0x2bc   :  { %4274 = vmatprep.mubr.msk.f32.mxu0 %vm4434_vm1, %v6747_v0  ;;  %4295 = vmatprep.subr.mxu1 %v6747_v0 }
 0x2bd   :  { %4231 = vmatmul.mubr.f32.gmra.mxu1 %v803_v33  ;;  %4332 = vmatprep.subr.mxu0 %v6747_v0 }
 0x2be   :  { %4296 = vmatpush3.msra.mxu1 %v3793_v45  ;;  %4233 = vmatprep.mubr.msk.f32.mxu1 %vm4434_vm1, %v6747_v0 }
 0x2bf   :  { %4275 = vmatmul.mubr.f32.gmra.mxu0 %v814_v63  ;;  %4297 = vmatprep.subr.mxu1 %v6747_v0 }
 0x2c0   :  { %4277 = vmatprep.mubr.msk.f32.mxu0 %vm4434_vm1, %v6747_v0  ;;  %4298 = vmatpush3.msra.mxu1 %v3792_v62 }
 0x2c1   :  { %4299 = vmatprep.subr.mxu1 %v6747_v0  ;;  %4234 = vmatmul.mubr.f32.gmra.mxu1 %v837_v3 }
 0x2c2   :  { %4300 = vmatpush3.msra.mxu1 %v3791_v1  ;;  %4315 = vmatprep.mubr.msk.f32.mxu1 %vm4434_vm1, %v6747_v0 }
 0x2c3   :  { %4278 = vmatmul.mubr.f32.gmra.mxu0 %v815_v8  ;;  %4301 = vmatprep.subr.mxu1 %v6747_v0 }
 0x2c4   :  { %4280 = vmatprep.mubr.msk.f32.mxu0 %vm4434_vm1, %v6747_v0  ;;  %4302 = vmatpush3.msra.mxu1 %v3790_v7 }
 0x2c5   :  { %4303 = vmatprep.subr.mxu1 %v6747_v0  ;;  %4333 = vmatpush3.msra.mxu0 %v4730_v47 }
 0x2c6   :  { %4304 = vmatpush3.msra.mxu1 %v3789_v9  ;;  %4334 = vmatprep.subr.mxu0 %v6747_v0 }
 0x2c7   :  { %4281 = vmatmul.mubr.f32.gmra.mxu0 %v816_v11  ;;  %4305 = vmatprep.subr.mxu1 %v6747_v0 }
 0x2c8   :  { %4306 = vmatpush3.msra.mxu1 %v3788_v10  ;;  %4335 = vmatpush3.msra.mxu0 %v4739_v48 }
 0x2c9   :  { %4307 = vmatprep.subr.mxu1 %v6747_v0  ;;  %4336 = vmatprep.subr.mxu0 %v6747_v0 }
 0x2ca   :  { %4308 = vmatpush3.msra.mxu1 %v3787_v12  ;;  %4337 = vmatpush3.msra.mxu0 %v4748_v49 }
 0x2cb   :  { %4309 = vmatprep.subr.mxu1 %v6747_v0  ;;  %4338 = vmatprep.subr.mxu0 %v6747_v0 }
 0x2cc   :  { %4310 = vmatpush3.msra.mxu1 %v3786_v13  ;;  %4339 = vmatpush3.msra.mxu0 %v4757_v50 }
 0x2cd   :  { %4311 = vmatprep.subr.mxu1 %v6747_v0  ;;  %4340 = vmatprep.subr.mxu0 %v6747_v0 }
 0x2ce   :  { %4312 = vmatpush3.msra.mxu1 %v3785_v14  ;;  %4341 = vmatpush3.msra.mxu0 %v4766_v51 }
 0x2cf   :  { %4313 = vmatprep.subr.mxu1 %v6747_v0  ;;  %4342 = vmatprep.subr.mxu0 %v6747_v0 }
 0x2d0   :  { %4314 = vmatpush3.msra.mxu1 %v3784_v15  ;;  %4343 = vmatpush3.msra.mxu0 %v4775_v52 }
 0x2d1   :  { %4316 = vmatmul.mubr.f32.vlgmr.msra.gmra.mxu1 %v1035_v16  ;;  %4365 = vmatprep.subr.mxu1 %v6747_v0 }
 0x2d2   :  { %4318 = vmatprep.mubr.msk.f32.mxu1 %vm4434_vm1, %v6747_v0  ;;  %4366 = vmatpush3.msra.mxu1 %v4722_v46  ;;  %v1037_v46 = vld [vmem:[#allocation2 + $0x12] sm:$0xff] }
 0x2d3   :  { %4367 = vmatprep.subr.mxu1 %v6747_v0  ;;  %4344 = vmatprep.subr.mxu0 %v6747_v0 }
 0x2d4   :  { %4368 = vmatpush3.msra.mxu1 %v4730_v47  ;;  %4345 = vmatpush3.msra.mxu0 %v4784_v53  ;;  %v1038_v47 = vld [vmem:[#allocation2 + $0x1a] sm:$0xff] }
 0x2d5   :  { %4319 = vmatmul.mubr.f32.gmra.mxu1 %v1036_v17  ;;  %4369 = vmatprep.subr.mxu1 %v6747_v0 }
 0x2d6   :  { %4321 = vmatprep.mubr.msk.f32.mxu1 %vm4434_vm1, %v6747_v0  ;;  %4370 = vmatpush3.msra.mxu1 %v4739_v48  ;;  %v1039_v48 = vld [vmem:[#allocation2 + $0x22] sm:$0x3] }
 0x2d7   :  { %4371 = vmatprep.subr.mxu1 %v6747_v0  ;;  %4346 = vmatprep.subr.mxu0 %v6747_v0 }
 0x2d8   :  { %4372 = vmatpush3.msra.mxu1 %v4748_v49  ;;  %4347 = vmatpush3.msra.mxu0 %v4793_v54 }
 0x2d9   :  { %4322 = vmatmul.mubr.f32.gmra.mxu1 %v1037_v46  ;;  %4373 = vmatprep.subr.mxu1 %v6747_v0 }
 0x2da   :  { %4324 = vmatprep.mubr.msk.f32.mxu1 %vm4434_vm1, %v6747_v0  ;;  %4374 = vmatpush3.msra.mxu1 %v4757_v50 }
 0x2db   :  { %4375 = vmatprep.subr.mxu1 %v6747_v0  ;;  %4348 = vmatprep.subr.mxu0 %v6747_v0 }
 0x2dc   :  { %4376 = vmatpush3.msra.mxu1 %v4766_v51  ;;  %4349 = vmatpush3.msra.mxu0 %v4802_v55 }
 0x2dd   :  { %4325 = vmatmul.mubr.f32.gmra.mxu1 %v1038_v47  ;;  %4377 = vmatprep.subr.mxu1 %v6747_v0 }
 0x2de   :  { %4327 = vmatprep.mubr.msk.f32.mxu1 %vm4434_vm1, %v6747_v0  ;;  %4378 = vmatpush3.msra.mxu1 %v4775_v52 }
 0x2df   :  { %4379 = vmatprep.subr.mxu1 %v6747_v0  ;;  %4350 = vmatprep.subr.mxu0 %v6747_v0 }
 0x2e0   :  { %4380 = vmatpush3.msra.mxu1 %v4784_v53  ;;  %4351 = vmatpush3.msra.mxu0 %v4811_v56 }
 0x2e1   :  { %4328 = vmatmul.mubr.f32.gmra.mxu1 %v1039_v48  ;;  %4381 = vmatprep.subr.mxu1 %v6747_v0 }
 0x2e2   :  { %4382 = vmatpush3.msra.mxu1 %v4793_v54  ;;  %4352 = vmatprep.subr.mxu0 %v6747_v0 }
 0x2e3   :  { %4383 = vmatprep.subr.mxu1 %v6747_v0  ;;  %4353 = vmatpush3.msra.mxu0 %v4820_v57 }
 0x2e4   :  { %4384 = vmatpush3.msra.mxu1 %v4802_v55  ;;  %4354 = vmatprep.subr.mxu0 %v6747_v0 }
 0x2e5   :  { %4385 = vmatprep.subr.mxu1 %v6747_v0  ;;  %4355 = vmatpush3.msra.mxu0 %v4829_v58 }
 0x2e6   :  { %4386 = vmatpush3.msra.mxu1 %v4811_v56  ;;  %4356 = vmatprep.subr.mxu0 %v6747_v0 }
 0x2e7   :  { %4387 = vmatprep.subr.mxu1 %v6747_v0  ;;  %4357 = vmatpush3.msra.mxu0 %v4838_v59 }
 0x2e8   :  { %4388 = vmatpush3.msra.mxu1 %v4820_v57  ;;  %4358 = vmatprep.subr.mxu0 %v6747_v0 }
 0x2e9   :  { %4389 = vmatprep.subr.mxu1 %v6747_v0  ;;  %4359 = vmatpush3.msra.mxu0 %v4847_v60 }
 0x2ea   :  { %4390 = vmatpush3.msra.mxu1 %v4829_v58  ;;  %4360 = vmatprep.subr.mxu0 %v6747_v0 }
 0x2eb   :  { %4391 = vmatprep.subr.mxu1 %v6747_v0  ;;  %4361 = vmatpush3.msra.mxu0 %v4853_v61 }
 0x2ec   :  { %4392 = vmatpush3.msra.mxu1 %v4838_v59  ;;  %4362 = vmatprep.mubr.msk.f32.mxu0 %vm4434_vm1, %v6747_v0 }
 0x2ed   :  { %4393 = vmatprep.subr.mxu1 %v6747_v0  ;;  %4397 = vmatprep.mubr.msk.f32.mxu1 %vm4434_vm1, %v6747_v0 }
 0x2ee   :  { %4394 = vmatpush3.msra.mxu1 %v4847_v60  ;;  %4400 = vmatprep.subr.mxu0 %v6747_v0 }
 0x2ef   :  { %4395 = vmatprep.subr.mxu1 %v6747_v0 }
 0x2f0   :  { %4396 = vmatpush3.msra.mxu1 %v4853_v61 }
 0x36f   :  { %v921_v49 = vpop.f32.mrf.mxu1 }
 0x371   :  { %v4223_v50 = vpop.f32.mrf.mxu1 }
 0x373   :  { %v926_v51 = vpop.f32.mrf.mxu1 }
 0x375   :  { %v4226_v52 = vpop.f32.mrf.mxu1 }
 0x377   :  { %v1011_v53 = vpop.f32.mrf.mxu0 }
 0x378   :  { %v931_v54 = vpop.f32.mrf.mxu1  ;;  %v1012_v32 = vadd.f32 %v1011_v53, %v921_v49 }
 0x379   :  { %v4270_v55 = vpop.f32.mrf.mxu0 }
 0x37a   :  { %v4229_v56 = vpop.f32.mrf.mxu1 }
 0x37b   :  { %v1016_v57 = vpop.f32.mrf.mxu0 }
 0x37c   :  { %v1017_v31 = vadd.f32 %v1016_v57, %v926_v51 }
 0x37d   :  { %v4273_v58 = vpop.f32.mrf.mxu0  ;;  %v936_v59 = vpop.f32.mrf.mxu1 }
 0x37f   :  { %v1021_v18 = vpop.f32.mrf.mxu0  ;;  %v4232_v19 = vpop.f32.mrf.mxu1 }
 0x380   :  { %v1022_v2 = vadd.f32 %v1021_v18, %v931_v54 }
 0x381   :  { %v4276_v60 = vpop.f32.mrf.mxu0  ;;  %v941_v21 = vpop.f32.mrf.mxu1 }
 0x383   :  { %v1026_v22 = vpop.f32.mrf.mxu0  ;;  %v4235_v23 = vpop.f32.mrf.mxu1 }
 0x384   :  { %v1027_v42 = vadd.f32 %v1026_v22, %v936_v59 }
 0x385   :  { %v4279_v24 = vpop.f32.mrf.mxu0 }
 0x387   :  { %v1031_v26 = vpop.f32.mrf.mxu0 }
 0x388   :  { %v1032_v3 = vadd.f32 %v1031_v26, %v941_v21 }
 0x389   :  { %v4282_v61 = vpop.f32.mrf.mxu0 }
 0x391   :  { %v1123_v30 = vpop.f32.mrf.mxu1 }
 0x392   :  { %v5224_v34 = vadd.f32 %v1123_v30, %v1012_v32  ;;  %v1332_v32 = vld [vmem:[%s6744_s7] sm:$0x1] }
 0x393   :  { %v4317_v28 = vpop.f32.mrf.mxu1 }
 0x394   :  { %v1152_v43 = vmul.f32 %v5224_v34, %v4863_v20  ;;  %v1328_v28 = vld [vmem:[%s6743_s6] sm:$0x1] }
 0x395   :  { %v1128_v25 = vpop.f32.mrf.mxu1 }
 0x396   :  { %v5222_v40 = vadd.f32 %v1128_v25, %v1017_v31  ;;  %v1168_v8 = vmul.f32 %v1152_v43, %v1152_v43 }
 0x397   :  { %v4320_v33 = vpop.f32.mrf.mxu1 }
 0x398   :  { %v1153_v38 = vmul.f32 %v5222_v40, %v4869_v29 }
 0x399   :  { %v1133_v36 = vpop.f32.mrf.mxu1 }
 0x39a   :  { %v5226_v37 = vadd.f32 %v1133_v36, %v1022_v2  ;;  %v1169_v63 = vmul.f32 %v1153_v38, %v1153_v38  ;;  %v1157_v9 = vadd.f32 %v1153_v38, %v1152_v43  ;;  %v4436_v36 = vmov 1983009808  }
 0x39b   :  { %v4323_v41 = vpop.f32.mrf.mxu1  ;;  %v1510_v38 = vunpack.c.l.s4 %v4436_v36 }
 0x39c   :  { %v1154_v44 = vmul.f32 %v5226_v37, %v4867_v27  ;;  %v1173_v12 = vadd.f32 %v1169_v63, %v1168_v8 }
 0x39d   :  { %v1138_v45 = vpop.f32.mrf.mxu1  ;;  %v1511_v43 = vunpack.c.0.s8 %v1510_v38 }
 0x39e   :  { %v5234_v62 = vadd.f32 %v1138_v45, %v1027_v42  ;;  %v1170_v29 = vmul.f32 %v1154_v44, %v1154_v44  ;;  %v1158_v20 = vadd.f32 %v1157_v9, %v1154_v44 }
 0x39f   :  { %v4326_v1 = vpop.f32.mrf.mxu1  ;;  %v5266_v8 = vsub.s32 %v1511_v43, %v5048_v4 }
 0x3a0   :  { %v1155_v7 = vmul.f32 %v5234_v62, %v4881_v39  ;;  %v1174_v15 = vadd.f32 %v1173_v12, %v1170_v29 }
 0x3a1   :  { %v1143_v10 = vpop.f32.mrf.mxu1  ;;  %6786 = vst [vmem:[#allocation3_spill] sm:$0xff] %v5266_v8 }
 0x3a2   :  { %v5238_v11 = vadd.f32 %v1143_v10, %v1032_v3  ;;  %v1171_v13 = vmul.f32 %v1155_v7, %v1155_v7  ;;  %v1159_v16 = vadd.f32 %v1158_v20, %v1155_v7 }
 0x3a3   :  { %v4329_v14 = vpop.f32.mrf.mxu1 }
 0x3a4   :  { %v1156_v27 = vmul.f32 %v5238_v11, %v4889_v5  ;;  %v1175_v47 = vadd.f32 %v1174_v15, %v1171_v13 }
 0x3a6   :  { %v1160_v17 = vsel %vm454_vm2, %v1156_v27, 0.0  ;;  %v1172_v46 = vmul.f32 %v1156_v27, %v1156_v27 }
 0x3a7   :  { %v1161_v39 = vadd.f32 %v1160_v17, %v1159_v16 }
 0x3a8   :  { %v1176_v48 = vsel %vm454_vm2, %v1172_v46, 0.0 }
 0x3a9   :  { %v1162_v49 = vrot.slane %v1161_v39, 4  ;;  %v1177_v50 = vadd.f32 %v1176_v48, %v1175_v47 }
 0x3ab   :  { %v1163_v51 = vadd.f32 %v1162_v49, %v1161_v39  ;;  %v1178_v52 = vrot.slane %v1177_v50, 4 }
 0x3ad   :  { %v1164_v53 = vrot.slane %v1163_v51, 2  ;;  %v1179_v54 = vadd.f32 %v1178_v52, %v1177_v50 }
 0x3af   :  { %v1165_v55 = vadd.f32 %v1164_v53, %v1163_v51  ;;  %v1180_v56 = vrot.slane %v1179_v54, 2 }
 0x3b1   :  { %v1166_v57 = vrot.slane %v1165_v55, 1  ;;  %v1181_v58 = vadd.f32 %v1180_v56, %v1179_v54 }
 0x3b3   :  { %v1167_v5 = vadd.f32 %v1166_v57, %v1165_v55  ;;  %v1182_v59 = vrot.slane %v1181_v58, 1 }
 0x3b5   :  { %4363 = vmatmul.mubr.f32.vlgmr.msra.gmra.mxu0 %v1167_v5  ;;  %v1183_v18 = vadd.f32 %v1182_v59, %v1181_v58 }
 0x3b6   :  { %4401 = vmatpush3.msra.mxu0 %v4902_v35  ;;  %4402 = vmatprep.mubr.msk.f32.mxu0 %vm4434_vm1, %v6747_v0 }
 0x3b7   :  { %4398 = vmatmul.mubr.f32.vlgmr.msra.gmra.mxu1 %v1183_v18  ;;  %4405 = vmatprep.subr.mxu0 %v6747_v0 }
 0x475   :  { %v1250_v19 = vpop.f32.mrf.mxu0 }
 0x476   :  { %v1254_v60 = vmul.f32 0.001953125, %v1250_v19 }
 0x477   :  { %v4364_v21 = vpop.f32.mrf.mxu0  ;;  %v1321_v22 = vpop.f32.mrf.mxu1 }
 0x478   :  { %v1326_v23 = vmul.f32 %v1254_v60, %v1254_v60  ;;  %v1325_v24 = vmul.f32 0.001953125, %v1321_v22 }
 0x479   :  { %v4399_v26 = vpop.f32.mrf.mxu1 }
 0x47a   :  { %v1327_v61 = vsub.f32 %v1325_v24, %v1326_v23 }
 0x47c   :  { %v1329_v30 = vadd.f32 1e-05, %v1327_v61 }
 0x47e   :  { %4431 = vrsqrt.f32 %v1329_v30 }
 0x48b   :  { %v4432_v31 = vpop.eup %4431 }
 0x48c   :  { %v1331_v25 = vmul.f32 %v4432_v31, %v1328_v28 }
 0x48e   :  { %4403 = vmatmul.mubr.msk.f32.vlgmr.msra.gmra.mxu0 %vm630_vm3, %v1331_v25  ;;  %v1333_v33 = vmul.f32 %v1331_v25, %v1254_v60 }
 0x48f   :  { %4406 = vmatpush3.msra.mxu0 %v4902_v35  ;;  %4407 = vmatprep.mubr.msk.f32.mxu0 %vm4434_vm1, %v6747_v0 }
 0x490   :  { %v1334_v2 = vsub.f32 %v1332_v32, %v1333_v33 }
 0x492   :  { %4408 = vmatmul.mubr.msk.f32.vlgmr.msra.gmra.mxu0 %vm630_vm3, %v1334_v2 }
 0x54e   :  { %v1404_v41 = vpop.f32.mrf.mxu0 }
 0x54f   :  { %v1484_v42 = vrot.slane %v1404_v41, %v5051_v6 }
 0x550   :  { %v4404_v44 = vpop.f32.mrf.mxu0 }
 0x551   :  { %v1485_v45 = vmul.f32 %v1484_v42, %v5224_v34  ;;  %v1486_v1 = vmul.f32 %v1484_v42, %v5222_v40  ;;  %v1487_v35 = vmul.f32 %v1484_v42, %v5226_v37  ;;  %v1488_v3 = vmul.f32 %v1484_v42, %v5234_v62 }
 0x552   :  { %v1477_v63 = vpop.f32.mrf.mxu0  ;;  %v1489_v9 = vmul.f32 %v1484_v42, %v5238_v11 }
 0x553   :  { %v1493_v7 = vrot.slane %v1477_v63, %v5051_v6 }
 0x554   :  { %v4409_v29 = vpop.f32.mrf.mxu0 }
 0x555   :  { %v1494_v10 = vadd.f32 %v1493_v7, %v1485_v45  ;;  %v1495_v12 = vadd.f32 %v1493_v7, %v1486_v1  ;;  %v1496_v20 = vadd.f32 %v1493_v7, %v1487_v35  ;;  %v1497_v13 = vadd.f32 %v1493_v7, %v1488_v3 }
 0x556   :  { %v1498_v34 = vadd.f32 %v1493_v7, %v1489_v9 }
 0x557   :  { %v1499_v14 = vmax.f32 %v1494_v10, 0.0  ;;  %v1500_v27 = vmax.f32 %v1495_v12, 0.0  ;;  %v5269_v40 = vmax.f32 %v1496_v20, 0.0  ;;  %v5271_v37 = vmax.f32 %v1497_v13, 0.0 }
 0x558   :  { %v1503_v62 = vmax.f32 %v1498_v34, 0.0 }
 0x559   :  { %1504 = vst [vmem:[%s6745_s10] sm:$0xff] %v1499_v14  ;;  %1505 = vst [vmem:[%s6745_s10 + $0x8] sm:$0xff] %v1500_v27  ;;  %v1515_v6 = vrot.slane %v1499_v14, %v5266_v8  ;;  %v1532_v11 = vrot.slane %v1500_v27, %v5266_v8  ;;  %v5296_v46 = vrot.slane %v5271_v37, %v5266_v8 }
 0x55a   :  { %3818 = vst [vmem:[%s6745_s10 + $0xe] sm:$0xfc] %v5269_v40  ;;  %3819 = vst [vmem:[%s6745_s10 + $0x16] sm:$0xff] %v5271_v37  ;;  %v2663_v47 = vrot.slane %v1503_v62, %v5266_v8  ;;  %v1508_v52 = vcombine.high %v1499_v14, %v1499_v14  ;;  %v1525_v54 = vcombine.high %v1500_v27, %v1500_v27 }
 0x55b   :  { %3820 = vst [vmem:[%s6745_s10 + $0x1e] sm:$0x3] %v1503_v62  ;;  %v3802_v15 = vrot.slane %v1515_v6, 9  ;;  %v3806_v16 = vrot.slane %v1532_v11, 9  ;;  %v3824_v48 = vrot.slane %v5296_v46, 9  ;;  %s4438_s10 = smov 96   ;;  %v1523_v57 = vcombine.high %v1515_v6, %v1515_v6 }
 0x55c   :  { %v3828_v49 = vrot.slane %v2663_v47, 9  ;;  %v1522_v53 = vrot.slane %v1508_v52, %v5266_v8  ;;  %v1539_v55 = vrot.slane %v1525_v54, %v5266_v8  ;;  %v1540_v59 = vcombine.high %v1532_v11, %v1532_v11 }
 0x55d   :  { %v5292_v17 = vmax.f32 %v1515_v6, %v3802_v15  ;;  %v5301_v39 = vmax.f32 %v1532_v11, %v3806_v16  ;;  %v5307_v50 = vmax.f32 %v5296_v46, %v3824_v48  ;;  %v3803_v18 = vrot.slane %v1523_v57, 9 }
 0x55e   :  { %v5313_v51 = vmax.f32 %v2663_v47, %v3828_v49  ;;  %v3804_v56 = vrot.slane %v1522_v53, 9  ;;  %v3808_v58 = vrot.slane %v1539_v55, 9  ;;  %v3807_v60 = vrot.slane %v1540_v59, 9 }
 0x55f   :  { %1590 = vrot.lane.b32.xlu1 %v5292_v17, %s4437_s23  ;;  %2718 = vrot.lane.b32.xlu0 %v5307_v50, %s4437_s23  ;;  %v5373_v21 = vmax.f32 %v1523_v57, %v3803_v18  ;;  %v2623_v23 = vcombine.high %v5269_v40, %v5269_v40  ;;  %v2640_v26 = vcombine.high %v5271_v37, %v5271_v37 }
 0x560   :  { %v5361_v5 = vmax.f32 %v1522_v53, %v3804_v56  ;;  %v5367_v19 = vmax.f32 %v1539_v55, %v3808_v58  ;;  %v5379_v22 = vmax.f32 %v1540_v59, %v3807_v60  ;;  %v1524_v28 = vcombine.high %v1522_v53, %v1522_v53 }
 0x561   :  { %v5420_v24 = vrot.slane %v2623_v23, %v5266_v8  ;;  %v5429_v61 = vrot.slane %v2640_v26, %v5266_v8  ;;  %v1541_v32 = vcombine.high %v1539_v55, %v1539_v55  ;;  %v2630_v45 = vrot.slane %v5269_v40, %v5266_v8 }
 0x562   :  { %6787 = vst [vmem:[#allocation4_spill] sm:$0xff] %v5361_v5  ;;  %6788 = vst [vmem:[#allocation5_spill] sm:$0xff] %v5367_v19  ;;  %v3805_v33 = vrot.slane %v1524_v28, 9  ;;  %v2655_v9 = vcombine.high %v5296_v46, %v5296_v46  ;;  %v1706_v0 = vrot.slane %v5373_v21, 7 }
 0x563   :  { %1598 = vrot.lane.b32.xlu1 %v5301_v39, %s4437_s23  ;;  %2726 = vrot.lane.b32.xlu0 %v5313_v51, %s4437_s23  ;;  %v3822_v30 = vrot.slane %v5420_v24, 9  ;;  %v3826_v31 = vrot.slane %v5429_v61, 9  ;;  %v3809_v38 = vrot.slane %v1541_v32, 9  ;;  %v2638_v35 = vcombine.high %v2630_v45, %v2630_v45 }
 0x564   :  { %v5453_v41 = vmax.f32 %v1524_v28, %v3805_v33  ;;  %v3825_v20 = vrot.slane %v2655_v9, 9  ;;  %v2639_v54 = vcombine.high %v5420_v24, %v5420_v24  ;;  %v2656_v57 = vcombine.high %v5429_v61, %v5429_v61 }
 0x565   :  { %v5438_v25 = vmax.f32 %v5420_v24, %v3822_v30  ;;  %v5445_v2 = vmax.f32 %v5429_v61, %v3826_v31  ;;  %v5461_v43 = vmax.f32 %v1541_v32, %v3809_v38  ;;  %v3821_v29 = vrot.slane %v2638_v35, 9 }
 0x566   :  { %6789 = vst [vmem:[#allocation6_spill] sm:$0xff] %v5453_v41  ;;  %v5503_v27 = vmax.f32 %v2655_v9, %v3825_v20  ;;  %v3823_v58 = vrot.slane %v2639_v54, 9  ;;  %v3827_v60 = vrot.slane %v2656_v57, 9 }
 0x567   :  { %1606 = vrot.lane.b32.xlu1 %v5292_v17, %s4438_s10  ;;  %2734 = vrot.lane.b32.xlu0 %v5307_v50, %s4438_s10  ;;  %6790 = vst [vmem:[#allocation7_spill] sm:$0xff] %v5461_v43  ;;  %v5493_v13 = vmax.f32 %v2638_v35, %v3821_v29 }
 0x568   :  { %v5579_v23 = vmax.f32 %v2639_v54, %v3823_v58  ;;  %v5589_v61 = vmax.f32 %v2656_v57, %v3827_v60 }
 0x56b   :  { %1614 = vrot.lane.b32.xlu1 %v5301_v39, %s4438_s10  ;;  %2742 = vrot.lane.b32.xlu0 %v5313_v51, %s4438_s10 }
 0x56f   :  { %1622 = vrot.lane.b32.xlu1 %v5292_v17, %s4439_s4  ;;  %2750 = vrot.lane.b32.xlu0 %v5307_v50, %s4439_s4 }
 0x573   :  { %1630 = vrot.lane.b32.xlu1 %v5301_v39, %s4439_s4  ;;  %2758 = vrot.lane.b32.xlu0 %v5313_v51, %s4439_s4 }
 0x577   :  { %1638 = vrot.lane.b32.xlu1 %v5292_v17, %s4440_s24  ;;  %2766 = vrot.lane.b32.xlu0 %v5307_v50, %s4440_s24 }
 0x57b   :  { %1646 = vrot.lane.b32.xlu1 %v5301_v39, %s4440_s24  ;;  %2774 = vrot.lane.b32.xlu0 %v5313_v51, %s4440_s24 }
 0x57f   :  { %1654 = vrot.lane.b32.xlu1 %v5292_v17, %s4441_s25  ;;  %2782 = vrot.lane.b32.xlu0 %v5307_v50, %s4441_s25 }
 0x583   :  { %1662 = vrot.lane.b32.xlu1 %v5301_v39, %s4441_s25  ;;  %2790 = vrot.lane.b32.xlu0 %v5313_v51, %s4441_s25 }
 0x587   :  { %1670 = vrot.lane.b32.xlu1 %v5292_v17, %s4442_s5  ;;  %2798 = vrot.lane.b32.xlu0 %v5307_v50, %s4442_s5 }
 0x58b   :  { %1678 = vrot.lane.b32.xlu1 %v5301_v39, %s4442_s5  ;;  %2806 = vrot.lane.b32.xlu0 %v5313_v51, %s4442_s5 }
 0x58f   :  { %1686 = vrot.lane.b32.xlu1 %v5292_v17, %s4443_s1  ;;  %2814 = vrot.lane.b32.xlu0 %v5307_v50, %s4443_s1 }
 0x593   :  { %1694 = vrot.lane.b32.xlu1 %v5301_v39, %s4443_s1  ;;  %2822 = vrot.lane.b32.xlu0 %v5313_v51, %s4443_s1 }
 0x597   :  { %1594 = vrot.lane.b32.xlu1 %v5361_v5, %s4437_s23  ;;  %1592 = vrot.lane.b32.xlu0 %v5373_v21, %s4437_s23 }
 0x59b   :  { %1602 = vrot.lane.b32.xlu1 %v5367_v19, %s4437_s23  ;;  %1600 = vrot.lane.b32.xlu0 %v5379_v22, %s4437_s23 }
 0x59f   :  { %1610 = vrot.lane.b32.xlu1 %v5361_v5, %s4438_s10  ;;  %1608 = vrot.lane.b32.xlu0 %v5373_v21, %s4438_s10 }
 0x5a3   :  { %1618 = vrot.lane.b32.xlu1 %v5367_v19, %s4438_s10  ;;  %1616 = vrot.lane.b32.xlu0 %v5379_v22, %s4438_s10 }
 0x5a7   :  { %1626 = vrot.lane.b32.xlu1 %v5361_v5, %s4439_s4  ;;  %1624 = vrot.lane.b32.xlu0 %v5373_v21, %s4439_s4 }
 0x5ab   :  { %1634 = vrot.lane.b32.xlu1 %v5367_v19, %s4439_s4  ;;  %1632 = vrot.lane.b32.xlu0 %v5379_v22, %s4439_s4 }
 0x5af   :  { %1642 = vrot.lane.b32.xlu1 %v5361_v5, %s4440_s24  ;;  %1640 = vrot.lane.b32.xlu0 %v5373_v21, %s4440_s24 }
 0x5b3   :  { %1650 = vrot.lane.b32.xlu1 %v5367_v19, %s4440_s24  ;;  %1648 = vrot.lane.b32.xlu0 %v5379_v22, %s4440_s24 }
 0x5b7   :  { %1658 = vrot.lane.b32.xlu1 %v5361_v5, %s4441_s25  ;;  %1656 = vrot.lane.b32.xlu0 %v5373_v21, %s4441_s25 }
 0x5bb   :  { %1666 = vrot.lane.b32.xlu1 %v5367_v19, %s4441_s25  ;;  %1664 = vrot.lane.b32.xlu0 %v5379_v22, %s4441_s25 }
 0x5bf   :  { %1674 = vrot.lane.b32.xlu1 %v5361_v5, %s4442_s5  ;;  %1672 = vrot.lane.b32.xlu0 %v5373_v21, %s4442_s5 }
 0x5c3   :  { %1682 = vrot.lane.b32.xlu1 %v5367_v19, %s4442_s5  ;;  %1680 = vrot.lane.b32.xlu0 %v5379_v22, %s4442_s5 }
 0x5c7   :  { %1690 = vrot.lane.b32.xlu1 %v5361_v5, %s4443_s1  ;;  %1688 = vrot.lane.b32.xlu0 %v5373_v21, %s4443_s1  ;;  %v1708_v21 = vsel %vm1707_vm4, %v1706_v0, %v5292_v17 }
 0x5c8   :  { %v1710_v5 = vsel %vm1709_vm5, %v1706_v0, %v1708_v21 }
 0x5cb   :  { %1698 = vrot.lane.b32.xlu1 %v5367_v19, %s4443_s1  ;;  %1696 = vrot.lane.b32.xlu0 %v5379_v22, %s4443_s1 }
 0x5cf   :  { %2714 = vrot.lane.b32.xlu1 %v5438_v25, %s4437_s23  ;;  %1596 = vrot.lane.b32.xlu0 %v5453_v41, %s4437_s23 }
 0x5d1   :  { %v5447_v36 = vpop.permute.xlu1 %1590  ;;  %v5463_v44 = vpop.permute.xlu0 %2718 }
 0x5d3   :  { %2722 = vrot.lane.b32.xlu1 %v5445_v2, %s4437_s23  ;;  %1604 = vrot.lane.b32.xlu0 %v5461_v43, %s4437_s23 }
 0x5d5   :  { %v5455_v42 = vpop.permute.xlu1 %1598  ;;  %v5473_v1 = vpop.permute.xlu0 %2726 }
 0x5d7   :  { %2730 = vrot.lane.b32.xlu1 %v5438_v25, %s4438_s10  ;;  %1612 = vrot.lane.b32.xlu0 %v5453_v41, %s4438_s10 }
 0x5d9   :  { %v5467_v63 = vpop.permute.xlu1 %1606  ;;  %v5481_v7 = vpop.permute.xlu0 %2734 }
 0x5db   :  { %2738 = vrot.lane.b32.xlu1 %v5445_v2, %s4438_s10  ;;  %1620 = vrot.lane.b32.xlu0 %v5461_v43, %s4438_s10 }
 0x5dd   :  { %v5475_v3 = vpop.permute.xlu1 %1614  ;;  %v5491_v12 = vpop.permute.xlu0 %2742 }
 0x5df   :  { %2746 = vrot.lane.b32.xlu1 %v5438_v25, %s4439_s4  ;;  %1628 = vrot.lane.b32.xlu0 %v5453_v41, %s4439_s4 }
 0x5e1   :  { %v5485_v10 = vpop.permute.xlu1 %1622  ;;  %v5501_v14 = vpop.permute.xlu0 %2750 }
 0x5e3   :  { %2754 = vrot.lane.b32.xlu1 %v5445_v2, %s4439_s4  ;;  %1636 = vrot.lane.b32.xlu0 %v5461_v43, %s4439_s4 }
 0x5e5   :  { %v5495_v34 = vpop.permute.xlu1 %1630  ;;  %v5511_v37 = vpop.permute.xlu0 %2758 }
 0x5e7   :  { %2712 = vrot.lane.b32.xlu1 %v5493_v13, %s4437_s23  ;;  %1644 = vrot.lane.b32.xlu0 %v5453_v41, %s4440_s24 }
 0x5e9   :  { %v5505_v40 = vpop.permute.xlu1 %1638  ;;  %v5519_v6 = vpop.permute.xlu0 %2766 }
 0x5eb   :  { %2720 = vrot.lane.b32.xlu1 %v5503_v27, %s4437_s23  ;;  %1652 = vrot.lane.b32.xlu0 %v5461_v43, %s4440_s24 }
 0x5ed   :  { %v5513_v62 = vpop.permute.xlu1 %1646  ;;  %v5527_v15 = vpop.permute.xlu0 %2774 }
 0x5ef   :  { %2728 = vrot.lane.b32.xlu1 %v5493_v13, %s4438_s10  ;;  %1660 = vrot.lane.b32.xlu0 %v5453_v41, %s4441_s25 }
 0x5f1   :  { %v5521_v11 = vpop.permute.xlu1 %1654  ;;  %v5535_v46 = vpop.permute.xlu0 %2782 }
 0x5f3   :  { %2736 = vrot.lane.b32.xlu1 %v5503_v27, %s4438_s10  ;;  %1668 = vrot.lane.b32.xlu0 %v5461_v43, %s4441_s25 }
 0x5f5   :  { %v5529_v16 = vpop.permute.xlu1 %1662  ;;  %v5543_v48 = vpop.permute.xlu0 %2790 }
 0x5f7   :  { %2744 = vrot.lane.b32.xlu1 %v5493_v13, %s4439_s4  ;;  %1676 = vrot.lane.b32.xlu0 %v5453_v41, %s4442_s5 }
 0x5f9   :  { %v5537_v47 = vpop.permute.xlu1 %1670  ;;  %v5551_v52 = vpop.permute.xlu0 %2798 }
 0x5fa   :  { %6791 = vst [vmem:[#allocation8_spill] sm:$0xff] %v5551_v52 }
 0x5fb   :  { %2752 = vrot.lane.b32.xlu1 %v5503_v27, %s4439_s4  ;;  %1684 = vrot.lane.b32.xlu0 %v5461_v43, %s4442_s5 }
 0x5fd   :  { %v5545_v49 = vpop.permute.xlu1 %1678  ;;  %v5561_v55 = vpop.permute.xlu0 %2806 }
 0x5fe   :  { %6792 = vst [vmem:[#allocation9_spill] sm:$0xff] %v5561_v55  ;;  %v4444_v55 = vmov 1934713408  }
 0x5ff   :  { %2762 = vrot.lane.b32.xlu1 %v5438_v25, %s4440_s24  ;;  %1692 = vrot.lane.b32.xlu0 %v5453_v41, %s4443_s1 }
 0x601   :  { %v5553_v53 = vpop.permute.xlu1 %1686  ;;  %v5571_v59 = vpop.permute.xlu0 %2814 }
 0x602   :  { %6793 = vst [vmem:[#allocation10_spill] sm:$0xff] %v5571_v59 }
 0x603   :  { %2770 = vrot.lane.b32.xlu1 %v5445_v2, %s4440_s24  ;;  %1700 = vrot.lane.b32.xlu0 %v5461_v43, %s4443_s1 }
 0x605   :  { %v5563_v56 = vpop.permute.xlu1 %1694  ;;  %v5581_v24 = vpop.permute.xlu0 %2822 }
 0x606   :  { %6795 = vst [vmem:[#allocation12_spill] sm:$0xff] %v5581_v24  ;;  %v1966_v24 = vunpack.c.l.s4 %v4444_v55 }
 0x607   :  { %2778 = vrot.lane.b32.xlu1 %v5438_v25, %s4441_s25  ;;  %2716 = vrot.lane.b32.xlu0 %v5579_v23, %s4437_s23 }
 0x609   :  { %v5573_v18 = vpop.permute.xlu1 %1594  ;;  %v1593_v30 = vpop.permute.xlu0 %1592 }
 0x60a   :  { %6794 = vst [vmem:[#allocation11_spill] sm:$0xff] %v5573_v18  ;;  %v1738_v57 = vrot.slane %v1593_v30, 7 }
 0x60b   :  { %2786 = vrot.lane.b32.xlu1 %v5445_v2, %s4441_s25  ;;  %2724 = vrot.lane.b32.xlu0 %v5589_v61, %s4437_s23 }
 0x60c   :  { %v1739_v8 = vsel %vm1707_vm4, %v1738_v57, %v5447_v36 }
 0x60d   :  { %v5583_v26 = vpop.permute.xlu1 %1602  ;;  %v1601_v31 = vpop.permute.xlu0 %1600  ;;  %v1740_v43 = vsel %vm1709_vm5, %v1738_v57, %v1739_v8 }
 0x60e   :  { %6796 = vst [vmem:[#allocation13_spill] sm:$0xff] %v5583_v26  ;;  %v1752_v30 = vrot.slane %v1601_v31, 7  ;;  %v1724_v26 = vrot.slane %v5379_v22, 7  ;;  %v1741_v18 = vsel %vm1711_vm6, %v1738_v57, %v1740_v43 }
 0x60f   :  { %2760 = vrot.lane.b32.xlu1 %v5493_v13, %s4440_s24  ;;  %2732 = vrot.lane.b32.xlu0 %v5579_v23, %s4438_s10 }
 0x610   :  { %v1753_v17 = vsel %vm1707_vm4, %v1752_v30, %v5455_v42  ;;  %v1725_v8 = vsel %vm1707_vm4, %v1724_v26, %v5301_v39  ;;  %v1742_v39 = vsel %vm1713_vm7, %v1738_v57, %v1741_v18 }
 0x611   :  { %v5591_v28 = vpop.permute.xlu1 %1610  ;;  %v1609_v33 = vpop.permute.xlu0 %1608  ;;  %v1754_v21 = vsel %vm1709_vm5, %v1752_v30, %v1753_v17 }
 0x612   :  { %v1766_v22 = vrot.slane %v1609_v33, 7 }
 0x613   :  { %2768 = vrot.lane.b32.xlu1 %v5503_v27, %s4440_s24  ;;  %2740 = vrot.lane.b32.xlu0 %v5589_v61, %s4438_s10 }
 0x615   :  { %v5597_v32 = vpop.permute.xlu1 %1618  ;;  %v5609_v45 = vpop.permute.xlu0 %1616 }
 0x616   :  { %v1780_v52 = vrot.slane %v5609_v45, 7 }
 0x617   :  { %2776 = vrot.lane.b32.xlu1 %v5493_v13, %s4441_s25  ;;  %2748 = vrot.lane.b32.xlu0 %v5579_v23, %s4439_s4 }
 0x619   :  { %v5603_v38 = vpop.permute.xlu1 %1626  ;;  %v1625_v9 = vpop.permute.xlu0 %1624 }
 0x61a   :  { %v1794_v36 = vrot.slane %v1625_v9, 7 }
 0x61b   :  { %2784 = vrot.lane.b32.xlu1 %v5503_v27, %s4441_s25  ;;  %2756 = vrot.lane.b32.xlu0 %v5589_v61, %s4439_s4 }
 0x61c   :  { %v1795_v42 = vsel %vm1707_vm4, %v1794_v36, %v5485_v10  ;;  %v1767_v10 = vsel %vm1707_vm4, %v1766_v22, %v5467_v63 }
 0x61d   :  { %v5611_v35 = vpop.permute.xlu1 %1634  ;;  %v1633_v20 = vpop.permute.xlu0 %1632 }
 0x61f   :  { %2794 = vrot.lane.b32.xlu1 %v5438_v25, %s4442_s5  ;;  %2764 = vrot.lane.b32.xlu0 %v5579_v23, %s4440_s24 }
 0x621   :  { %v5617_v29 = vpop.permute.xlu1 %1642  ;;  %v1641_v58 = vpop.permute.xlu0 %1640 }
 0x622   :  { %6797 = vst [vmem:[#allocation14_spill] sm:$0xff] %v5617_v29  ;;  %v1822_v29 = vrot.slane %v1641_v58, 7  ;;  %v1712_v58 = vsel %vm1711_vm6, %v1706_v0, %v1710_v5  ;;  %v1796_v5 = vsel %vm1709_vm5, %v1794_v36, %v1795_v42 }
 0x623   :  { %2802 = vrot.lane.b32.xlu1 %v5445_v2, %s4442_s5  ;;  %2772 = vrot.lane.b32.xlu0 %v5589_v61, %s4440_s24  ;;  %v1714_v17 = vsel %vm1713_vm7, %v1706_v0, %v1712_v58  ;;  %v1797_v0 = vsel %vm1711_vm6, %v1794_v36, %v1796_v5 }
 0x624   :  { %v1964_v63 = vcombine.low %v1714_v17, %v1742_v39 }
 0x625   :  { %v5623_v54 = vpop.permute.xlu1 %1650 }
 0x626   :  { %6798 = vst [vmem:[#allocation15_spill] sm:$0xff] %v5623_v54  ;;  %v1649_v54 = vpop.permute.xlu0 %1648 }
 0x627   :  { %2810 = vrot.lane.b32.xlu1 %v5438_v25, %s4443_s1  ;;  %2780 = vrot.lane.b32.xlu0 %v5579_v23, %s4441_s25  ;;  %v1836_v18 = vrot.slane %v1649_v54, 7 }
 0x629   :  { %v5629_v60 = vpop.permute.xlu1 %1658  ;;  %v1837_v39 = vsel %vm1707_vm4, %v1836_v18, %v5513_v62 }
 0x62a   :  { %6799 = vst [vmem:[#allocation16_spill] sm:$0xff] %v5629_v60  ;;  %v1657_v55 = vpop.permute.xlu0 %1656  ;;  %v1967_v60 = vunpack.c.0.s8 %v1966_v24  ;;  %v1823_v24 = vsel %vm1707_vm4, %v1822_v29, %v5505_v40 }
 0x62b   :  { %2818 = vrot.lane.b32.xlu1 %v5445_v2, %s4443_s1  ;;  %2788 = vrot.lane.b32.xlu0 %v5589_v61, %s4441_s25 }
 0x62c   :  { %v5674_v41 = vsub.s32 %v1967_v60, %v5048_v4  ;;  %v1755_v4 = vsel %vm1711_vm6, %v1752_v30, %v1754_v21  ;;  %v1808_v60 = vrot.slane %v1633_v20, 7 }
 0x62d   :  { %v5638_v19 = vpop.permute.xlu1 %1666  ;;  %v1756_v58 = vsel %vm1713_vm7, %v1752_v30, %v1755_v4  ;;  %v1798_v30 = vsel %vm1713_vm7, %v1794_v36, %v1797_v0 }
 0x62e   :  { %6800 = vst [vmem:[#allocation17_spill] sm:$0xff] %v5638_v19  ;;  %v1850_v19 = vrot.slane %v1657_v55, 7  ;;  %v1665_v33 = vpop.permute.xlu0 %1664  ;;  %v1809_v45 = vsel %vm1707_vm4, %v1808_v60, %v5495_v34  ;;  %v5716_v5 = vrot.slane %v1964_v63, %v5674_v41  ;;  %v1838_v34 = vsel %vm1709_vm5, %v1836_v18, %v1837_v39 }
 0x62f   :  { %2792 = vrot.lane.b32.xlu1 %v5493_v13, %s4442_s5  ;;  %v1864_v40 = vrot.slane %v1665_v33, 7  ;;  %2796 = vrot.lane.b32.xlu0 %v5579_v23, %s4442_s5  ;;  %v1768_v33 = vsel %vm1709_vm5, %v1766_v22, %v1767_v10  ;;  %v1810_v36 = vsel %vm1709_vm5, %v1808_v60, %v1809_v45 }
 0x630   :  { %v1851_v9 = vsel %vm1707_vm4, %v1850_v19, %v5521_v11  ;;  %v1726_v11 = vsel %vm1709_vm5, %v1724_v26, %v1725_v8  ;;  %v1769_v21 = vsel %vm1711_vm6, %v1766_v22, %v1768_v33  ;;  %6801 = vst [vmem:[#allocation18_spill] sm:$0xff] %v5716_v5  ;;  %v1811_v0 = vsel %vm1711_vm6, %v1808_v60, %v1810_v36 }
 0x631   :  { %v5648_v31 = vpop.permute.xlu1 %1674  ;;  %v1852_v43 = vsel %vm1709_vm5, %v1850_v19, %v1851_v9  ;;  %v1824_v9 = vsel %vm1709_vm5, %v1822_v29, %v1823_v24  ;;  %v1727_v24 = vsel %vm1711_vm6, %v1724_v26, %v1726_v11  ;;  %v1865_v54 = vsel %vm1707_vm4, %v1864_v40, %v5529_v16 }
 0x632   :  { %v1853_v57 = vsel %vm1711_vm6, %v1850_v19, %v1852_v43  ;;  %v1673_v8 = vpop.permute.xlu0 %1672  ;;  %v1825_v59 = vsel %vm1711_vm6, %v1822_v29, %v1824_v9  ;;  %v1728_v16 = vsel %vm1713_vm7, %v1724_v26, %v1727_v24  ;;  %v1866_v11 = vsel %vm1709_vm5, %v1864_v40, %v1865_v54 }
 0x633   :  { %2800 = vrot.lane.b32.xlu1 %v5503_v27, %s4442_s5  ;;  %v1878_v42 = vrot.slane %v1673_v8, 7  ;;  %v1854_v20 = vsel %vm1713_vm7, %v1850_v19, %v1853_v57  ;;  %2804 = vrot.lane.b32.xlu0 %v5589_v61, %s4442_s5  ;;  %v1826_v19 = vsel %vm1713_vm7, %v1822_v29, %v1825_v59  ;;  %v1781_v57 = vsel %vm1707_vm4, %v1780_v52, %v5475_v3 }
 0x634   :  { %v1982_v26 = vcombine.low %v1826_v19, %v1854_v20  ;;  %v2036_v59 = vcombine.low %v1728_v16, %v1756_v58  ;;  %v1770_v29 = vsel %vm1713_vm7, %v1766_v22, %v1769_v21  ;;  %v1782_v63 = vsel %vm1709_vm5, %v1780_v52, %v1781_v57 }
 0x635   :  { %v5670_v55 = vpop.permute.xlu1 %1682  ;;  %v1879_v62 = vsel %vm1707_vm4, %v1878_v42, %v5537_v47  ;;  %v1867_v47 = vsel %vm1711_vm6, %v1864_v40, %v1866_v11  ;;  %v1973_v8 = vcombine.low %v1770_v29, %v1798_v30  ;;  %v1839_v24 = vsel %vm1711_vm6, %v1836_v18, %v1838_v34 }
 0x636   :  { %v1681_v10 = vpop.permute.xlu0 %1680  ;;  %v1880_v4 = vsel %vm1709_vm5, %v1878_v42, %v1879_v62  ;;  %v5732_v22 = vrot.slane %v1982_v26, %v5674_v41  ;;  %v1868_v20 = vsel %vm1713_vm7, %v1864_v40, %v1867_v47  ;;  %v5746_v21 = vrot.slane %v2036_v59, %v5674_v41 }
 0x637   :  { %2808 = vrot.lane.b32.xlu1 %v5493_v13, %s4443_s1  ;;  %2812 = vrot.lane.b32.xlu0 %v5579_v23, %s4443_s1  ;;  %v1892_v17 = vrot.slane %v1681_v10, 7  ;;  %v1881_v58 = vsel %vm1711_vm6, %v1878_v42, %v1880_v4  ;;  %v1783_v45 = vsel %vm1711_vm6, %v1780_v52, %v1782_v63  ;;  %v1840_v40 = vsel %vm1713_vm7, %v1836_v18, %v1839_v24 }
 0x638   :  { %6802 = vst [vmem:[#allocation19_spill] sm:$0xff] %v5732_v22  ;;  %6803 = vst [vmem:[#allocation20_spill] sm:$0xff] %v5746_v21  ;;  %v5752_v10 = vrot.slane %v1973_v8, %v5674_v41  ;;  %v2054_v26 = vcombine.low %v1840_v40, %v1868_v20  ;;  %v1882_v57 = vsel %vm1713_vm7, %v1878_v42, %v1881_v58 }
 0x639   :  { %v5692_v43 = vpop.permute.xlu1 %1690  ;;  %v1893_v39 = vsel %vm1707_vm4, %v1892_v17, %v5545_v49  ;;  %v1812_v49 = vsel %vm1713_vm7, %v1808_v60, %v1811_v0  ;;  %v1784_v59 = vsel %vm1713_vm7, %v1780_v52, %v1783_v45 }
 0x63a   :  { %v1689_v3 = vpop.permute.xlu0 %1688  ;;  %6804 = vst [vmem:[#allocation21_spill] sm:$0xff] %v5752_v10  ;;  %v1894_v34 = vsel %vm1709_vm5, %v1892_v17, %v1893_v39  ;;  %v2045_v42 = vcombine.low %v1784_v59, %v1812_v49 }
 0x63b   :  { %2816 = vrot.lane.b32.xlu1 %v5503_v27, %s4443_s1  ;;  %v1906_v33 = vrot.slane %v1689_v3, 7  ;;  %2820 = vrot.lane.b32.xlu0 %v5589_v61, %s4443_s1  ;;  %v1895_v4 = vsel %vm1711_vm6, %v1892_v17, %v1894_v34 }
 0x63c   :  { %v1896_v24 = vsel %vm1713_vm7, %v1892_v17, %v1895_v4  ;;  %v5790_v0 = vrot.slane %v2045_v42, %v5674_v41 }
 0x63d   :  { %v5713_v9 = vpop.permute.xlu1 %1698  ;;  %v1907_v16 = vsel %vm1707_vm4, %v1906_v33, %v5553_v53 }
 0x63e   :  { %v1908_v19 = vsel %vm1709_vm5, %v1906_v33, %v1907_v16  ;;  %v1697_v11 = vpop.permute.xlu0 %1696  ;;  %v2826_v16 = vrot.slane %v5438_v25, 7 }
 0x63f   :  { %2140 = vrot.lane.b32.xlu1 %v5716_v5, %s4445_s26  ;;  %v1909_v53 = vsel %vm1711_vm6, %v1906_v33, %v1908_v19  ;;  %v1920_v30 = vrot.slane %v1697_v11, 7  ;;  %2142 = vrot.lane.b32.xlu0 %v5752_v10, %s4445_s26 }
 0x640   :  { %v1910_v18 = vsel %vm1713_vm7, %v1906_v33, %v1909_v53  ;;  %v2827_v11 = vsel %vm1707_vm4, %v2826_v16, %v5493_v13  ;;  %v6807_v53 = vmov 0.0  }
 0x641   :  { %v2715_v54 = vpop.permute.xlu1 %2714  ;;  %v1921_v60 = vsel %vm1707_vm4, %v1920_v30, %v5563_v56  ;;  %v1991_v29 = vcombine.low %v1882_v57, %v1910_v18  ;;  %v5779_v56 = vrot.slane %v2054_v26, %v5674_v41  ;;  %v5812_v25 = vcombine.high %v5752_v10, %v6807_v53 }
 0x642   :  { %v1922_v36 = vsel %vm1709_vm5, %v1920_v30, %v1921_v60  ;;  %v5769_v47 = vpop.permute.xlu0 %1596  ;;  %v2828_v26 = vsel %vm1709_vm5, %v2826_v16, %v2827_v11  ;;  %v2854_v57 = vrot.slane %v2715_v54, 7  ;;  %v2875_v10 = vrot.slane %v5473_v1, 7 }
 0x643   :  { %2144 = vrot.lane.b32.xlu1 %v5732_v22, %s4445_s26  ;;  %v1923_v3 = vsel %vm1711_vm6, %v1920_v30, %v1922_v36  ;;  %v5774_v8 = vrot.slane %v1991_v29, %v5674_v41  ;;  %6806 = vst [vmem:[#allocation23_spill] sm:$0xff] %v5779_v56  ;;  %6808 = vst [vmem:[#allocation24_spill] sm:$0xff] %v5812_v25  ;;  %v2829_v29 = vsel %vm1711_vm6, %v2826_v16, %v2828_v26 }
 0x644   :  { %v1924_v63 = vsel %vm1713_vm7, %v1920_v30, %v1923_v3  ;;  %v2830_v11 = vsel %vm1713_vm7, %v2826_v16, %v2829_v29  ;;  %v5930_v1 = vrot.slane %v5481_v7, 7 }
 0x645   :  { %v5756_v62 = vpop.permute.xlu1 %2722  ;;  %6805 = vst [vmem:[#allocation22_spill] sm:$0xff] %v5774_v8  ;;  %2146 = vrot.lane.b32.xlu0 %v5774_v8, %s4445_s26  ;;  %v2063_v20 = vcombine.low %v1896_v24, %v1924_v63  ;;  %v5822_v13 = vcombine.high %v5774_v8, %v6807_v53 }
 0x646   :  { %v5787_v33 = vpop.permute.xlu0 %1604 }
 0x647   :  { %2172 = vrot.lane.b32.xlu1 %v5746_v21, %s4445_s26  ;;  %v5798_v40 = vrot.slane %v2063_v20, %v5674_v41  ;;  %6809 = vst [vmem:[#allocation25_spill] sm:$0xff] %v5822_v13 }
 0x649   :  { %v5776_v52 = vpop.permute.xlu1 %2730  ;;  %2174 = vrot.lane.b32.xlu0 %v5790_v0, %s4445_s26 }
 0x64a   :  { %v1613_v39 = vpop.permute.xlu0 %1612 }
 0x64b   :  { %2176 = vrot.lane.b32.xlu1 %v5779_v56, %s4445_s26  ;;  %v1773_v45 = vrot.slane %v1613_v39, 7 }
 0x64d   :  { %v5792_v58 = vpop.permute.xlu1 %2738  ;;  %2178 = vrot.lane.b32.xlu0 %v5798_v40, %s4445_s26  ;;  %v1774_v49 = vsel %vm1707_vm4, %v1773_v45, %v5591_v28 }
 0x64e   :  { %v5804_v17 = vpop.permute.xlu0 %1620  ;;  %v1775_v34 = vsel %vm1709_vm5, %v1773_v45, %v1774_v49 }
 0x64f   :  { %v1776_v36 = vsel %vm1711_vm6, %v1773_v45, %v1775_v34  ;;  %v1787_v8 = vrot.slane %v5804_v17, 7 }
 0x650   :  { %v1777_v49 = vsel %vm1713_vm7, %v1773_v45, %v1776_v36 }
 0x651   :  { %v5800_v19 = vpop.permute.xlu1 %2746  ;;  %2150 = vrot.lane.b32.xlu0 %v5812_v25, %s4445_s26 }
 0x652   :  { %v1629_v18 = vpop.permute.xlu0 %1628 }
 0x653   :  { %v1801_v59 = vrot.slane %v1629_v18, 7 }
 0x655   :  { %v5814_v30 = vpop.permute.xlu1 %2754  ;;  %v1802_v42 = vsel %vm1707_vm4, %v1801_v59, %v5603_v38  ;;  %2154 = vrot.lane.b32.xlu0 %v5822_v13, %s4445_s26 }
 0x656   :  { %v1803_v4 = vsel %vm1709_vm5, %v1801_v59, %v1802_v42  ;;  %v1637_v3 = vpop.permute.xlu0 %1636 }
 0x657   :  { %v1804_v24 = vsel %vm1711_vm6, %v1801_v59, %v1803_v4 }
 0x658   :  { %v1805_v38 = vsel %vm1713_vm7, %v1801_v59, %v1804_v24  ;;  %v2833_v24 = vrot.slane %v5307_v50, 7 }
 0x659   :  { %v2713_v28 = vpop.permute.xlu1 %2712  ;;  %v2009_v34 = vcombine.low %v1777_v49, %v1805_v38 }
 0x65a   :  { %v2855_v60 = vsel %vm1707_vm4, %v2854_v57, %v2713_v28  ;;  %v5839_v18 = vpop.permute.xlu0 %1644 }
 0x65b   :  { %v2856_v54 = vsel %vm1709_vm5, %v2854_v57, %v2855_v60  ;;  %v5845_v60 = vrot.slane %v2009_v34, %v5674_v41  ;;  %v5874_v34 = vrot.slane %v5313_v51, 7 }
 0x65c   :  { %v2857_v63 = vsel %vm1711_vm6, %v2854_v57, %v2856_v54 }
 0x65d   :  { %v2858_v20 = vsel %vm1713_vm7, %v2854_v57, %v2857_v63  ;;  %v2721_v39 = vpop.permute.xlu1 %2720  ;;  %6810 = vst [vmem:[#allocation26_spill] sm:$0xff] %v5845_v60  ;;  %2158 = vrot.lane.b32.xlu0 %v5845_v60, %s4445_s26  ;;  %v2848_v50 = vsel %vm1707_vm4, %v5874_v34, %v5589_v61  ;;  %v2868_v60 = vrot.slane %v5756_v62, 7 }
 0x65e   :  { %v3080_v26 = vcombine.low %v2830_v11, %v2858_v20  ;;  %v5853_v16 = vpop.permute.xlu0 %1652  ;;  %v2834_v20 = vsel %vm1707_vm4, %v2833_v24, %v5579_v23  ;;  %v2840_v11 = vrot.slane %v5445_v2, 7 }
 0x65f   :  { %v2869_v61 = vsel %vm1707_vm4, %v2868_v60, %v2721_v39 }
 0x660   :  { %v5842_v28 = vrot.slane %v3080_v26, %v5674_v41  ;;  %v2841_v56 = vsel %vm1707_vm4, %v2840_v11, %v5503_v27  ;;  %v2849_v27 = vsel %vm1709_vm5, %v5874_v34, %v2848_v50 }
 0x661   :  { %v5847_v42 = vpop.permute.xlu1 %2728 }
 0x662   :  { %3256 = vrot.lane.b32.xlu1 %v5842_v28, %s4445_s26  ;;  %v5857_v57 = vpop.permute.xlu0 %1660 }
 0x665   :  { %v5855_v45 = vpop.permute.xlu1 %2736 }
 0x666   :  { %v5859_v29 = vpop.permute.xlu0 %1668 }
 0x669   :  { %v2745_v59 = vpop.permute.xlu1 %2744 }
 0x66a   :  { %v1677_v54 = vpop.permute.xlu0 %1676 }
 0x66b   :  { %v1885_v4 = vrot.slane %v1677_v54, 7  ;;  %v2835_v54 = vsel %vm1709_vm5, %v2833_v24, %v2834_v20  ;;  %v2842_v20 = vsel %vm1709_vm5, %v2840_v11, %v2841_v56 }
 0x66c   :  { %v2836_v51 = vsel %vm1711_vm6, %v2833_v24, %v2835_v54  ;;  %v2843_v39 = vsel %vm1711_vm6, %v2840_v11, %v2842_v20  ;;  %v2910_v20 = vrot.slane %v5800_v19, 7  ;;  %v2882_v19 = vrot.slane %v5776_v52, 7 }
 0x66d   :  { %v5861_v36 = vpop.permute.xlu1 %2752  ;;  %v1886_v38 = vsel %vm1707_vm4, %v1885_v4, %v5648_v31  ;;  %v1815_v31 = vrot.slane %v1637_v3, 7  ;;  %v2837_v25 = vsel %vm1713_vm7, %v2833_v24, %v2836_v51  ;;  %v2850_v24 = vsel %vm1711_vm6, %v5874_v34, %v2849_v27 }
 0x66e   :  { %v1685_v49 = vpop.permute.xlu0 %1684  ;;  %v1887_v2 = vsel %vm1709_vm5, %v1885_v4, %v1886_v38  ;;  %v2861_v51 = vrot.slane %v5463_v44, 7 }
 0x66f   :  { %v1888_v38 = vsel %vm1711_vm6, %v1885_v4, %v1887_v2  ;;  %v1816_v56 = vsel %vm1707_vm4, %v1815_v31, %v5611_v35  ;;  %v2870_v2 = vsel %vm1709_vm5, %v2868_v60, %v2869_v61  ;;  %v1788_v35 = vsel %vm1707_vm4, %v1787_v8, %v5597_v32 }
 0x670   :  { %v1817_v61 = vsel %vm1709_vm5, %v1815_v31, %v1816_v56 }
 0x671   :  { %v5863_v63 = vpop.permute.xlu1 %2762 }
 0x672   :  { %v1693_v23 = vpop.permute.xlu0 %1692 }
 0x673   :  { %v1913_v21 = vrot.slane %v1693_v23, 7 }
 0x675   :  { %v5871_v26 = vpop.permute.xlu1 %2770  ;;  %v1914_v62 = vsel %vm1707_vm4, %v1913_v21, %v5692_v43  ;;  %v1889_v43 = vsel %vm1713_vm7, %v1885_v4, %v1888_v38  ;;  %v2871_v38 = vsel %vm1711_vm6, %v2868_v60, %v2870_v2 }
 0x676   :  { %v1915_v3 = vsel %vm1709_vm5, %v1913_v21, %v1914_v62  ;;  %v1701_v23 = vpop.permute.xlu0 %1700  ;;  %v2872_v7 = vsel %vm1713_vm7, %v2868_v60, %v2871_v38 }
 0x677   :  { %v1916_v54 = vsel %vm1711_vm6, %v1913_v21, %v1915_v3  ;;  %v5900_v50 = vrot.slane %v1701_v23, 7  ;;  %v5913_v3 = vrot.slane %v1685_v49, 7 }
 0x678   :  { %v1917_v62 = vsel %vm1713_vm7, %v1913_v21, %v1916_v54  ;;  %v2844_v21 = vsel %vm1713_vm7, %v2840_v11, %v2843_v39  ;;  %v1789_v11 = vsel %vm1709_vm5, %v1787_v8, %v1788_v35  ;;  %v1818_v54 = vsel %vm1711_vm6, %v1815_v31, %v1817_v61 }
 0x679   :  { %v5884_v13 = vpop.permute.xlu1 %2778  ;;  %v2027_v23 = vcombine.low %v1889_v43, %v1917_v62  ;;  %v1928_v44 = vsel %vm1707_vm4, %v5900_v50, %v5713_v9  ;;  %v2911_v9 = vsel %vm1707_vm4, %v2910_v20, %v2745_v59  ;;  %v1900_v39 = vsel %vm1707_vm4, %v5913_v3, %v5670_v55 }
 0x67a   :  { %v2717_v4 = vpop.permute.xlu0 %2716  ;;  %v1929_v52 = vsel %vm1709_vm5, %v5900_v50, %v1928_v44  ;;  %v5949_v59 = vcombine.high %v5790_v0, %v6807_v53  ;;  %v1790_v35 = vsel %vm1711_vm6, %v1787_v8, %v1789_v11  ;;  %v2883_v55 = vsel %vm1707_vm4, %v2882_v19, %v5847_v42 }
 0x67b   :  { %v2862_v32 = vsel %vm1707_vm4, %v2861_v51, %v2717_v4  ;;  %v5925_v49 = vrot.slane %v2027_v23, %v5674_v41  ;;  %v1819_v60 = vsel %vm1713_vm7, %v1815_v31, %v1818_v54  ;;  %v2912_v38 = vsel %vm1709_vm5, %v2910_v20, %v2911_v9 }
 0x67c   :  { %v2863_v56 = vsel %vm1709_vm5, %v2861_v51, %v2862_v32  ;;  %v1930_v32 = vsel %vm1711_vm6, %v5900_v50, %v1929_v52  ;;  %v3152_v42 = vcombine.low %v2844_v21, %v2872_v7  ;;  %v1791_v31 = vsel %vm1713_vm7, %v1787_v8, %v1790_v35 }
 0x67d   :  { %v5902_v17 = vpop.permute.xlu1 %2786  ;;  %v2864_v2 = vsel %vm1711_vm6, %v2861_v51, %v2863_v56  ;;  %2162 = vrot.lane.b32.xlu0 %v5925_v49, %s4445_s26  ;;  %v2924_v56 = vrot.slane %v5814_v30, 7  ;;  %v2884_v54 = vsel %vm1709_vm5, %v2882_v19, %v2883_v55  ;;  %v5981_v21 = vcombine.high %v5798_v40, %v6807_v53 }
 0x67e   :  { %v2865_v43 = vsel %vm1713_vm7, %v2861_v51, %v2864_v2  ;;  %v2725_v62 = vpop.permute.xlu0 %2724  ;;  %v1901_v51 = vsel %vm1709_vm5, %v5913_v3, %v1900_v39  ;;  %v2913_v2 = vsel %vm1711_vm6, %v2910_v20, %v2912_v38  ;;  %v2081_v8 = vcombine.low %v1791_v31, %v1819_v60 }
 0x67f   :  { %v2876_v23 = vsel %vm1707_vm4, %v2875_v10, %v2725_v62  ;;  %v3116_v61 = vcombine.low %v2837_v25, %v2865_v43  ;;  %v1902_v52 = vsel %vm1711_vm6, %v5913_v3, %v1901_v51  ;;  %v2896_v30 = vrot.slane %v5792_v58, 7 }
 0x680   :  { %v2877_v44 = vsel %vm1709_vm5, %v2875_v10, %v2876_v23  ;;  %v1931_v43 = vsel %vm1713_vm7, %v5900_v50, %v1930_v32  ;;  %v2851_v62 = vsel %vm1713_vm7, %v5874_v34, %v2850_v24  ;;  %v2885_v35 = vsel %vm1711_vm6, %v2882_v19, %v2884_v54 }
 0x681   :  { %v5927_v27 = vpop.permute.xlu1 %2760  ;;  %v2878_v11 = vsel %vm1711_vm6, %v2875_v10, %v2877_v44  ;;  %2182 = vrot.lane.b32.xlu0 %v5949_v59, %s4445_s26  ;;  %v5968_v25 = vrot.slane %v3116_v61, %v5674_v41  ;;  %v5996_v23 = vrot.slane %v3152_v42, %v5674_v41  ;;  %v2914_v50 = vsel %vm1713_vm7, %v2910_v20, %v2913_v2 }
 0x682   :  { %v2879_v9 = vsel %vm1713_vm7, %v2875_v10, %v2878_v11  ;;  %v2733_v39 = vpop.permute.xlu0 %2732  ;;  %v2925_v10 = vsel %vm1707_vm4, %v2924_v56, %v5861_v36  ;;  %v2897_v36 = vsel %vm1707_vm4, %v2896_v30, %v5855_v45  ;;  %v1903_v34 = vsel %vm1713_vm7, %v5913_v3, %v1902_v52 }
 0x683   :  { %3272 = vrot.lane.b32.xlu1 %v5968_v25, %s4445_s26  ;;  %v2890_v55 = vsel %vm1707_vm4, %v5930_v1, %v2733_v39  ;;  %v3188_v58 = vcombine.low %v2851_v62, %v2879_v9  ;;  %v2926_v61 = vsel %vm1709_vm5, %v2924_v56, %v2925_v10  ;;  %v6007_v60 = vrot.slane %v2081_v8, %v5674_v41 }
 0x684   :  { %v2099_v38 = vcombine.low %v1903_v34, %v1931_v43  ;;  %v2903_v44 = vrot.slane %v5491_v12, 7  ;;  %v2886_v45 = vsel %vm1713_vm7, %v2882_v19, %v2885_v35  ;;  %v2891_v20 = vsel %vm1709_vm5, %v5930_v1, %v2890_v55 }
 0x685   :  { %v5955_v4 = vpop.permute.xlu1 %2768  ;;  %2186 = vrot.lane.b32.xlu0 %v5981_v21, %s4445_s26  ;;  %v2917_v3 = vrot.slane %v5501_v14, 7  ;;  %v2898_v32 = vsel %vm1709_vm5, %v2896_v30, %v2897_v36  ;;  %v6018_v11 = vrot.slane %v3188_v58, %v5674_v41  ;;  %v3089_v42 = vcombine.low %v2886_v45, %v2914_v50 }
 0x686   :  { %v2741_v24 = vpop.permute.xlu0 %2740  ;;  %v2927_v31 = vsel %vm1711_vm6, %v2924_v56, %v2926_v61  ;;  %v2966_v12 = vrot.slane %v5884_v13, 7  ;;  %v2892_v19 = vsel %vm1711_vm6, %v5930_v1, %v2891_v20  ;;  %v6029_v39 = vrot.slane %v2099_v38, %v5674_v41 }
 0x687   :  { %3288 = vrot.lane.b32.xlu1 %v5996_v23, %s4445_s26  ;;  %v2904_v9 = vsel %vm1707_vm4, %v2903_v44, %v2741_v24  ;;  %v2931_v52 = vrot.slane %v5511_v37, 7  ;;  %v2899_v13 = vsel %vm1711_vm6, %v2896_v30, %v2898_v32  ;;  %v2938_v10 = vrot.slane %v5863_v63, 7 }
 0x688   :  { %v6042_v35 = vrot.slane %v3089_v42, %v5674_v41  ;;  %v2928_v55 = vsel %vm1713_vm7, %v2924_v56, %v2927_v31  ;;  %v2893_v37 = vsel %vm1713_vm7, %v5930_v1, %v2892_v19  ;;  %v2905_v58 = vsel %vm1709_vm5, %v2903_v44, %v2904_v9 }
 0x689   :  { %v2777_v7 = vpop.permute.xlu1 %2776  ;;  %2190 = vrot.lane.b32.xlu0 %v6007_v60, %s4445_s26  ;;  %v6056_v34 = vcombine.high %v5842_v28, %v6807_v53  ;;  %v2900_v1 = vsel %vm1713_vm7, %v2896_v30, %v2899_v13  ;;  %v2980_v32 = vrot.slane %v5902_v17, 7  ;;  %v6079_v9 = vcombine.high %v5968_v25, %v6807_v53 }
 0x68a   :  { %v2749_v54 = vpop.permute.xlu0 %2748  ;;  %v2967_v43 = vsel %vm1707_vm4, %v2966_v12, %v2777_v7  ;;  %v2939_v7 = vsel %vm1707_vm4, %v2938_v10, %v5927_v27  ;;  %v2906_v27 = vsel %vm1711_vm6, %v2903_v44, %v2905_v58  ;;  %v2952_v13 = vrot.slane %v5871_v26, 7 }
 0x68b   :  { %v2918_v14 = vsel %vm1707_vm4, %v2917_v3, %v2749_v54  ;;  %3304 = vrot.lane.b32.xlu1 %v6018_v11, %s4445_s26  ;;  %v2968_v61 = vsel %vm1709_vm5, %v2966_v12, %v2967_v43  ;;  %v2940_v42 = vsel %vm1709_vm5, %v2938_v10, %v2939_v7  ;;  %v2945_v54 = vrot.slane %v5519_v6, 7 }
 0x68c   :  { %v2919_v8 = vsel %vm1709_vm5, %v2917_v3, %v2918_v14  ;;  %v2969_v19 = vsel %vm1711_vm6, %v2966_v12, %v2968_v61  ;;  %v2907_v17 = vsel %vm1713_vm7, %v2903_v44, %v2906_v27 }
 0x68d   :  { %v2785_v51 = vpop.permute.xlu1 %2784  ;;  %v2920_v62 = vsel %vm1711_vm6, %v2917_v3, %v2919_v8  ;;  %2194 = vrot.lane.b32.xlu0 %v6029_v39, %s4445_s26  ;;  %v2970_v26 = vsel %vm1713_vm7, %v2966_v12, %v2969_v19 }
 0x68e   :  { %v2921_v36 = vsel %vm1713_vm7, %v2917_v3, %v2920_v62  ;;  %v2757_v63 = vpop.permute.xlu0 %2756  ;;  %v3161_v3 = vcombine.low %v2900_v1, %v2928_v55  ;;  %v2981_v8 = vsel %vm1707_vm4, %v2980_v32, %v2785_v51  ;;  %v2953_v55 = vsel %vm1707_vm4, %v2952_v13, %v5955_v4 }
 0x68f   :  { %v2932_v50 = vsel %vm1707_vm4, %v2931_v52, %v2757_v63  ;;  %3258 = vrot.lane.b32.xlu1 %v6042_v35, %s4445_s26  ;;  %v3125_v56 = vcombine.low %v2893_v37, %v2921_v36  ;;  %v2982_v44 = vsel %vm1709_vm5, %v2980_v32, %v2981_v8  ;;  %v6099_v51 = vcombine.high %v5996_v23, %v6807_v53 }
 0x690   :  { %v2933_v38 = vsel %vm1709_vm5, %v2931_v52, %v2932_v50  ;;  %v6089_v43 = vrot.slane %v3161_v3, %v5674_v41  ;;  %v2959_v36 = vrot.slane %v5527_v15, 7  ;;  %v2973_v4 = vrot.slane %v5535_v46, 7 }
 0x691   :  { %v6031_v2 = vpop.permute.xlu1 %2794  ;;  %v2934_v45 = vsel %vm1711_vm6, %v2931_v52, %v2933_v38  ;;  %3264 = vrot.lane.b32.xlu0 %v6056_v34, %s4445_s26  ;;  %v6068_v20 = vrot.slane %v3125_v56, %v5674_v41  ;;  %v2954_v12 = vsel %vm1709_vm5, %v2952_v13, %v2953_v55  ;;  %v2983_v1 = vsel %vm1711_vm6, %v2980_v32, %v2982_v44 }
 0x692   :  { %v2935_v30 = vsel %vm1713_vm7, %v2931_v52, %v2934_v45  ;;  %v2765_v31 = vpop.permute.xlu0 %2764  ;;  %v2941_v52 = vsel %vm1711_vm6, %v2938_v10, %v2940_v42  ;;  %v6119_v46 = vcombine.high %v6018_v11, %v6807_v53  ;;  %v2955_v45 = vsel %vm1711_vm6, %v2952_v13, %v2954_v12 }
 0x693   :  { %3274 = vrot.lane.b32.xlu1 %v6068_v20, %s4445_s26  ;;  %v2946_v6 = vsel %vm1707_vm4, %v2945_v54, %v2765_v31  ;;  %v3197_v62 = vcombine.low %v2907_v17, %v2935_v30  ;;  %v2942_v63 = vsel %vm1713_vm7, %v2938_v10, %v2941_v52  ;;  %v2994_v3 = vrot.slane %v6031_v2, 7 }
 0x694   :  { %v2947_v7 = vsel %vm1709_vm5, %v2945_v54, %v2946_v6  ;;  %v3098_v56 = vcombine.low %v2942_v63, %v2970_v26  ;;  %v2987_v30 = vrot.slane %v5543_v48, 7  ;;  %v2984_v31 = vsel %vm1713_vm7, %v2980_v32, %v2983_v1 }
 0x695   :  { %v6058_v24 = vpop.permute.xlu1 %2802  ;;  %3280 = vrot.lane.b32.xlu0 %v6079_v9, %s4445_s26  ;;  %v6109_v50 = vrot.slane %v3197_v62, %v5674_v41  ;;  %v2948_v15 = vsel %vm1711_vm6, %v2945_v54, %v2947_v7  ;;  %v2956_v48 = vsel %vm1713_vm7, %v2952_v13, %v2955_v45  ;;  %v6142_v55 = vcombine.high %v6042_v35, %v6807_v53 }
 0x696   :  { %v2773_v37 = vpop.permute.xlu0 %2772  ;;  %v6130_v17 = vrot.slane %v3098_v56, %v5674_v41  ;;  %v2949_v8 = vsel %vm1713_vm7, %v2945_v54, %v2948_v15  ;;  %v3170_v44 = vcombine.low %v2956_v48, %v2984_v31 }
 0x697   :  { %3290 = vrot.lane.b32.xlu1 %v6089_v43, %s4445_s26  ;;  %v2960_v10 = vsel %vm1707_vm4, %v2959_v36, %v2773_v37 }
 0x698   :  { %v2961_v52 = vsel %vm1709_vm5, %v2959_v36, %v2960_v10  ;;  %v6159_v10 = vcombine.high %v6068_v20, %v6807_v53 }
 0x699   :  { %v2811_v14 = vpop.permute.xlu1 %2810  ;;  %3296 = vrot.lane.b32.xlu0 %v6099_v51, %s4445_s26  ;;  %v2962_v63 = vsel %vm1711_vm6, %v2959_v36, %v2961_v52 }
 0x69a   :  { %v2781_v61 = vpop.permute.xlu0 %2780  ;;  %v3022_v12 = vrot.slane %v2811_v14, 7 }
 0x69b   :  { %v2974_v38 = vsel %vm1707_vm4, %v2973_v4, %v2781_v61  ;;  %3306 = vrot.lane.b32.xlu1 %v6109_v50, %s4445_s26  ;;  %v6811_v61 = vld [vmem:[#allocation8_spill] sm:$0xff] }
 0x69c   :  { %v2975_v42 = vsel %vm1709_vm5, %v2973_v4, %v2974_v38  ;;  %v3001_v15 = vrot.slane %v6811_v61, 7 }
 0x69d   :  { %v2819_v58 = vpop.permute.xlu1 %2818  ;;  %v2976_v19 = vsel %vm1711_vm6, %v2973_v4, %v2975_v42  ;;  %3312 = vrot.lane.b32.xlu0 %v6119_v46, %s4445_s26  ;;  %v6164_v42 = vrot.slane %v3170_v44, %v5674_v41  ;;  %v6812_v44 = vld [vmem:[#allocation10_spill] sm:$0xff] }
 0x69e   :  { %v2977_v2 = vsel %vm1713_vm7, %v2973_v4, %v2976_v19  ;;  %v2789_v6 = vpop.permute.xlu0 %2788  ;;  %v3036_v52 = vrot.slane %v2819_v58, 7 }
 0x69f   :  { %v2988_v32 = vsel %vm1707_vm4, %v2987_v30, %v2789_v6  ;;  %3260 = vrot.lane.b32.xlu1 %v6130_v17, %s4445_s26  ;;  %v3134_v26 = vcombine.low %v2949_v8, %v2977_v2 }
 0x6a0   :  { %v2989_v37 = vsel %vm1709_vm5, %v2987_v30, %v2988_v32 }
 0x6a1   :  { %v2793_v27 = vpop.permute.xlu1 %2792  ;;  %v2990_v7 = vsel %vm1711_vm6, %v2987_v30, %v2989_v37  ;;  %3266 = vrot.lane.b32.xlu0 %v6142_v55, %s4445_s26  ;;  %v6151_v4 = vrot.slane %v3134_v26, %v5674_v41 }
 0x6a2   :  { %v2995_v62 = vsel %vm1707_vm4, %v2994_v3, %v2793_v27  ;;  %v2991_v56 = vsel %vm1713_vm7, %v2987_v30, %v2990_v7  ;;  %v2797_v1 = vpop.permute.xlu0 %2796  ;;  %v2963_v27 = vsel %vm1713_vm7, %v2959_v36, %v2962_v63  ;;  %v3008_v30 = vrot.slane %v6058_v24, 7 }
 0x6a3   :  { %v2996_v13 = vsel %vm1709_vm5, %v2994_v3, %v2995_v62  ;;  %3276 = vrot.lane.b32.xlu1 %v6151_v4, %s4445_s26  ;;  %v3002_v31 = vsel %vm1707_vm4, %v3001_v15, %v2797_v1  ;;  %v3206_v8 = vcombine.low %v2963_v27, %v2991_v56  ;;  %v6181_v24 = vcombine.high %v6089_v43, %v6807_v53 }
 0x6a4   :  { %v2997_v45 = vsel %vm1711_vm6, %v2994_v3, %v2996_v13  ;;  %v3003_v58 = vsel %vm1709_vm5, %v3001_v15, %v3002_v31  ;;  %v3029_v63 = vrot.slane %v6812_v44, 7 }
 0x6a5   :  { %v2801_v54 = vpop.permute.xlu1 %2800  ;;  %3282 = vrot.lane.b32.xlu0 %v6159_v10, %s4445_s26  ;;  %v2998_v6 = vsel %vm1713_vm7, %v2994_v3, %v2997_v45  ;;  %v6190_v3 = vrot.slane %v3206_v8, %v5674_v41  ;;  %v3004_v56 = vsel %vm1711_vm6, %v3001_v15, %v3003_v58  ;;  %v1745_v45 = vrot.slane %v5769_v47, 7 }
 0x6a6   :  { %v6172_v2 = vpop.permute.xlu0 %2804  ;;  %v3009_v62 = vsel %vm1707_vm4, %v3008_v30, %v2801_v54 }
 0x6a7   :  { %3292 = vrot.lane.b32.xlu1 %v6164_v42, %s4445_s26  ;;  %v3010_v7 = vsel %vm1709_vm5, %v3008_v30, %v3009_v62  ;;  %v6219_v62 = vcombine.high %v6130_v17, %v6807_v53 }
 0x6a9   :  { %v2809_v38 = vpop.permute.xlu1 %2808  ;;  %3298 = vrot.lane.b32.xlu0 %v6181_v24, %s4445_s26 }
 0x6aa   :  { %v3023_v14 = vsel %vm1707_vm4, %v3022_v12, %v2809_v38  ;;  %v2813_v13 = vpop.permute.xlu0 %2812 }
 0x6ab   :  { %v3024_v19 = vsel %vm1709_vm5, %v3022_v12, %v3023_v14  ;;  %v3030_v1 = vsel %vm1707_vm4, %v3029_v63, %v2813_v13  ;;  %3308 = vrot.lane.b32.xlu1 %v6190_v3, %s4445_s26  ;;  %v3011_v14 = vsel %vm1711_vm6, %v3008_v30, %v3010_v7  ;;  %v6236_v7 = vcombine.high %v6151_v4, %v6807_v53 }
 0x6ac   :  { %v3025_v36 = vsel %vm1711_vm6, %v3022_v12, %v3024_v19  ;;  %v3031_v27 = vsel %vm1709_vm5, %v3029_v63, %v3030_v1  ;;  %v3005_v19 = vsel %vm1713_vm7, %v3001_v15, %v3004_v56  ;;  %v3012_v58 = vsel %vm1713_vm7, %v3008_v30, %v3011_v14  ;;  %v6817_v30 = vld [vmem:[#allocation4_spill] sm:$0xff]  ;;  %v6820_v14 = vld [vmem:[#allocation14_spill] sm:$0xff] }
 0x6ad   :  { %v3026_v48 = vsel %vm1713_vm7, %v3022_v12, %v3025_v36  ;;  %v2817_v32 = vpop.permute.xlu1 %2816  ;;  %v6196_v12 = vcombine.high %v6109_v50, %v6807_v53  ;;  %v3032_v31 = vsel %vm1711_vm6, %v3029_v63, %v3031_v27  ;;  %v6818_v56 = vld [vmem:[#allocation16_spill] sm:$0xff] }
 0x6ae   :  { %v3037_v26 = vsel %vm1707_vm4, %v3036_v52, %v2817_v32  ;;  %v3107_v37 = vcombine.low %v2998_v6, %v3026_v48  ;;  %v3033_v8 = vsel %vm1713_vm7, %v3029_v63, %v3032_v31  ;;  %v6215_v6 = vpop.permute.xlu0 %2820  ;;  %v6814_v48 = vld [vmem:[#allocation6_spill] sm:$0xff] }
 0x6af   :  { %v3038_v54 = vsel %vm1709_vm5, %v3036_v52, %v3037_v26  ;;  %3314 = vrot.lane.b32.xlu0 %v6196_v12, %s4445_s26  ;;  %v3143_v47 = vcombine.low %v3005_v19, %v3033_v8  ;;  %v1717_v32 = vrot.slane %v6814_v48, 7  ;;  %v6815_v26 = vld [vmem:[#allocation11_spill] sm:$0xff]  ;;  %v6256_v8 = vcombine.high %v6164_v42, %v6807_v53 }
 0x6b0   :  { %v3039_v61 = vsel %vm1711_vm6, %v3036_v52, %v3038_v54  ;;  %v6204_v38 = vrot.slane %v3107_v37, %v5674_v41  ;;  %v1746_v15 = vsel %vm1707_vm4, %v1745_v45, %v6815_v26  ;;  %v1857_v37 = vrot.slane %v5857_v57, 7 }
 0x6b1   :  { %v3040_v36 = vsel %vm1713_vm7, %v3036_v52, %v3039_v61  ;;  %v6231_v52 = vrot.slane %v3143_v47, %v5674_v41  ;;  %v1829_v54 = vrot.slane %v5839_v18, 7  ;;  %v1718_v57 = vsel %vm1707_vm4, %v1717_v32, %v6817_v30 }
 0x6b2   :  { %6813 = vst [vmem:[#allocation8_spill] sm:$0xff] %v6204_v38  ;;  %3262 = vrot.lane.b32.xlu1 %v6204_v38, %s4445_s26  ;;  %v3179_v44 = vcombine.low %v3012_v58, %v3040_v36  ;;  %v2143_v63 = vpop.permute.xlu0 %2142  ;;  %v1747_v13 = vsel %vm1709_vm5, %v1745_v45, %v1746_v15  ;;  %v1858_v1 = vsel %vm1707_vm4, %v1857_v37, %v6818_v56 }
 0x6b3   :  { %3268 = vrot.lane.b32.xlu0 %v6219_v62, %s4445_s26  ;;  %6816 = vst [vmem:[#allocation10_spill] sm:$0xff] %v6231_v52  ;;  %v1719_v61 = vsel %vm1709_vm5, %v1717_v32, %v1718_v57  ;;  %v1748_v27 = vsel %vm1711_vm6, %v1745_v45, %v1747_v13  ;;  %v1830_v31 = vsel %vm1707_vm4, %v1829_v54, %v6820_v14  ;;  %v1759_v13 = vrot.slane %v5787_v33, 7  ;;  %v6823_v33 = vld [vmem:[#allocation7_spill] sm:$0xff] }
 0x6b4   :  { %v6248_v18 = vrot.slane %v3179_v44, %v5674_v41  ;;  %v1859_v36 = vsel %vm1709_vm5, %v1857_v37, %v1858_v1  ;;  %v6265_v47 = vcombine.high %v5716_v5, %v6807_v53  ;;  %v1720_v48 = vsel %vm1711_vm6, %v1717_v32, %v1719_v61 }
 0x6b5   :  { %v1749_v58 = vsel %vm1713_vm7, %v1745_v45, %v1748_v27  ;;  %v1831_v26 = vsel %vm1709_vm5, %v1829_v54, %v1830_v31  ;;  %v1860_v15 = vsel %vm1711_vm6, %v1857_v37, %v1859_v36  ;;  %v6275_v30 = vcombine.high %v6190_v3, %v6807_v53  ;;  %v6824_v36 = vld [vmem:[#allocation13_spill] sm:$0xff] }
 0x6b6   :  { %3278 = vrot.lane.b32.xlu1 %v6231_v52, %s4445_s26  ;;  %6819 = vst [vmem:[#allocation6_spill] sm:$0xff] %v6248_v18  ;;  %v1721_v57 = vsel %vm1713_vm7, %v1717_v32, %v1720_v48  ;;  %v1832_v56 = vsel %vm1711_vm6, %v1829_v54, %v1831_v26  ;;  %v6286_v45 = vcombine.high %v5732_v22, %v6807_v53  ;;  %v1731_v32 = vrot.slane %v6823_v33, 7  ;;  %v6833_v22 = vld [vmem:[#allocation9_spill] sm:$0xff] }
 0x6b7   :  { %3284 = vrot.lane.b32.xlu0 %v6236_v7, %s4445_s26  ;;  %v2147_v19 = vpop.permute.xlu0 %2146  ;;  %v2000_v1 = vcombine.low %v1721_v57, %v1749_v58  ;;  %v1861_v61 = vsel %vm1713_vm7, %v1857_v37, %v1860_v15  ;;  %v6293_v14 = vcombine.high %v6204_v38, %v6807_v53  ;;  %v1833_v31 = vsel %vm1713_vm7, %v1829_v54, %v1832_v56  ;;  %v6827_v54 = vld [vmem:[#allocation5_spill] sm:$0xff] }
 0x6b8   :  { %6821 = vst [vmem:[#allocation11_spill] sm:$0xff] %v6286_v45  ;;  %v1760_v48 = vsel %vm1707_vm4, %v1759_v13, %v6824_v36  ;;  %v1871_v58 = vrot.slane %v5859_v29, 7  ;;  %v2018_v26 = vcombine.low %v1833_v31, %v1861_v61  ;;  %v1843_v15 = vrot.slane %v5853_v16, 7  ;;  %v6828_v36 = vld [vmem:[#allocation21_spill] sm:$0xff]  ;;  %v6830_v61 = vld [vmem:[#allocation12_spill] sm:$0xff] }
 0x6b9   :  { %6822 = vst [vmem:[#allocation4_spill] sm:$0xff] %v6293_v14  ;;  %v6305_v37 = vrot.slane %v2000_v1, %v5674_v41  ;;  %v6310_v33 = vcombine.high %v6231_v52, %v6807_v53  ;;  %v1732_v29 = vsel %vm1707_vm4, %v1731_v32, %v6827_v54  ;;  %v1761_v56 = vsel %vm1709_vm5, %v1759_v13, %v1760_v48  ;;  %v6829_v1 = vld [vmem:[#allocation24_spill] sm:$0xff]  ;;  %v6831_v16 = vld [vmem:[#allocation17_spill] sm:$0xff] }
 0x6ba   :  { %3294 = vrot.lane.b32.xlu1 %v6248_v18, %s4445_s26  ;;  %v2237_v38 = vmax.f32 %v6828_v36, %v2143_v63  ;;  %v3043_v31 = vrot.slane %v6830_v61, 7  ;;  %v6325_v52 = vrot.slane %v2018_v26, %v5674_v41  ;;  %v3015_v5 = vrot.slane %v6833_v22, 7  ;;  %v6837_v26 = vld [vmem:[#allocation25_spill] sm:$0xff] }
 0x6bb   :  { %3300 = vrot.lane.b32.xlu0 %v6256_v8, %s4445_s26  ;;  %v6271_v44 = vpop.permute.xlu0 %2174  ;;  %6825 = vst [vmem:[#allocation16_spill] sm:$0xff] %v6305_v37  ;;  %6826 = vst [vmem:[#allocation14_spill] sm:$0xff] %v6310_v33  ;;  %v1733_v48 = vsel %vm1709_vm5, %v1731_v32, %v1732_v29  ;;  %v1762_v63 = vsel %vm1711_vm6, %v1759_v13, %v1761_v56 }
 0x6bc   :  { %6832 = vst [vmem:[#allocation7_spill] sm:$0xff] %v6325_v52  ;;  %v3016_v56 = vsel %vm1707_vm4, %v3015_v5, %v6172_v2  ;;  %v6840_v2 = vld [vmem:[#allocation26_spill] sm:$0xff] }
 0x6be   :  { %2148 = vrot.lane.b32.xlu1 %v6265_v47, %s4445_s26 }
 0x6bf   :  { %3316 = vrot.lane.b32.xlu0 %v6275_v30, %s4445_s26  ;;  %v6289_v27 = vpop.permute.xlu0 %2178 }
 0x6c2   :  { %2152 = vrot.lane.b32.xlu1 %v6286_v45, %s4445_s26  ;;  %v1872_v45 = vsel %vm1707_vm4, %v1871_v58, %v6831_v16  ;;  %v6338_v16 = vcombine.high %v6248_v18, %v6807_v53  ;;  %v1734_v18 = vsel %vm1711_vm6, %v1731_v32, %v1733_v48 }
 0x6c3   :  { %3270 = vrot.lane.b32.xlu0 %v6293_v14, %s4445_s26  ;;  %v2151_v57 = vpop.permute.xlu0 %2150  ;;  %v1873_v22 = vsel %vm1709_vm5, %v1871_v58, %v1872_v45  ;;  %v1735_v48 = vsel %vm1713_vm7, %v1731_v32, %v1734_v18 }
 0x6c4   :  { %v2241_v14 = vmax.f32 %v6829_v1, %v2151_v57  ;;  %v6834_v57 = vld [vmem:[#allocation15_spill] sm:$0xff]  ;;  %v3044_v1 = vsel %vm1707_vm4, %v3043_v31, %v6215_v6  ;;  %6835 = vst [vmem:[#allocation13_spill] sm:$0xff] %v6338_v16  ;;  %v6838_v6 = vld [vmem:[#allocation20_spill] sm:$0xff] }
 0x6c5   :  { %v1844_v36 = vsel %vm1707_vm4, %v1843_v15, %v6834_v57  ;;  %v6351_v57 = vcombine.high %v6838_v6, %v6807_v53 }
 0x6c6   :  { %2156 = vrot.lane.b32.xlu1 %v6305_v37, %s4445_s26  ;;  %v6328_v54 = vcombine.low %v2237_v38, %v2241_v14  ;;  %v6836_v38 = vld [vmem:[#allocation22_spill] sm:$0xff]  ;;  %v1845_v45 = vsel %vm1709_vm5, %v1843_v15, %v1844_v36  ;;  %v6841_v36 = vld [vmem:[#allocation23_spill] sm:$0xff] }
 0x6c7   :  { %3286 = vrot.lane.b32.xlu0 %v6310_v33, %s4445_s26  ;;  %v2155_v61 = vpop.permute.xlu0 %2154  ;;  %v2239_v14 = vmax.f32 %v6836_v38, %v2147_v19  ;;  %6839 = vst [vmem:[#allocation5_spill] sm:$0xff] %v6351_v57  ;;  %v1763_v33 = vsel %vm1713_vm7, %v1759_v13, %v1762_v63  ;;  %v3045_v19 = vsel %vm1709_vm5, %v3043_v31, %v3044_v1 }
 0x6c8   :  { %v2243_v29 = vmax.f32 %v6837_v26, %v2155_v61  ;;  %v1874_v61 = vsel %vm1711_vm6, %v1871_v58, %v1873_v22  ;;  %v6362_v26 = vcombine.high %v6840_v2, %v6807_v53  ;;  %v1846_v13 = vsel %vm1711_vm6, %v1843_v15, %v1845_v45 }
 0x6c9   :  { %v3046_v63 = vsel %vm1711_vm6, %v3043_v31, %v3045_v19  ;;  %v6374_v1 = vcombine.high %v6841_v36, %v6807_v53  ;;  %v2072_v22 = vcombine.low %v1735_v48, %v1763_v33  ;;  %v1847_v18 = vsel %vm1713_vm7, %v1843_v15, %v1846_v13  ;;  %v6418_v48 = vpop.permute.xlu1 %2140 }
 0x6ca   :  { %2160 = vrot.lane.b32.xlu1 %v6325_v52, %s4445_s26  ;;  %v6357_v38 = vcombine.low %v2239_v14, %v2243_v29  ;;  %v1875_v14 = vsel %vm1713_vm7, %v1871_v58, %v1874_v61  ;;  %v3047_v32 = vsel %vm1713_vm7, %v3043_v31, %v3046_v63  ;;  %v6394_v19 = vcombine.high %v6007_v60, %v6807_v53 }
 0x6cb   :  { %3302 = vrot.lane.b32.xlu0 %v6338_v16, %s4445_s26  ;;  %v3017_v16 = vsel %vm1709_vm5, %v3015_v5, %v3016_v56  ;;  %6842 = vst [vmem:[#allocation21_spill] sm:$0xff] %v6374_v1  ;;  %v6380_v56 = vcombine.high %v5925_v49, %v6807_v53  ;;  %v6389_v33 = vrot.slane %v2072_v22, %v5674_v41 }
 0x6cc   :  { %v3018_v29 = vsel %vm1711_vm6, %v3015_v5, %v3017_v16  ;;  %v2090_v58 = vcombine.low %v1847_v18, %v1875_v14  ;;  %v6416_v61 = vcombine.high %v6305_v37, %v6807_v53  ;;  %v6430_v63 = vcombine.high %v6325_v52, %v6807_v53 }
 0x6cd   :  { %6843 = vst [vmem:[#allocation24_spill] sm:$0xff] %v6389_v33  ;;  %v3019_v16 = vsel %vm1713_vm7, %v3015_v5, %v3018_v29  ;;  %v6408_v5 = vcombine.high %v6029_v39, %v6807_v53  ;;  %v6434_v22 = vpop.permute.xlu1 %2144  ;;  %v6438_v14 = vcombine.high %v6389_v33, %v6807_v53 }
 0x6ce   :  { %2180 = vrot.lane.b32.xlu1 %v6351_v57, %s4445_s26  ;;  %v3215_v45 = vcombine.low %v3019_v16, %v3047_v32  ;;  %v6401_v15 = vrot.slane %v2090_v58, %v5674_v41  ;;  %6846 = vst [vmem:[#allocation9_spill] sm:$0xff] %v6416_v61  ;;  %6848 = vst [vmem:[#allocation22_spill] sm:$0xff] %v6430_v63 }
 0x6cf   :  { %2166 = vrot.lane.b32.xlu0 %v6362_v26, %s4445_s26  ;;  %6849 = vst [vmem:[#allocation25_spill] sm:$0xff] %v6438_v14  ;;  %v6450_v32 = vpop.permute.xlu0 %2158 }
 0x6d0   :  { %6844 = vst [vmem:[#allocation12_spill] sm:$0xff] %v6401_v15  ;;  %v6404_v31 = vrot.slane %v3215_v45, %v5674_v41  ;;  %v6444_v29 = vcombine.high %v6401_v15, %v6807_v53 }
 0x6d1   :  { %v6446_v18 = vpop.permute.xlu1 %2172 }
 0x6d2   :  { %2184 = vrot.lane.b32.xlu1 %v6374_v1, %s4445_s26  ;;  %6845 = vst [vmem:[#allocation17_spill] sm:$0xff] %v6404_v31  ;;  %v6422_v13 = vcombine.high %v6404_v31, %v6807_v53  ;;  %6850 = vst [vmem:[#allocation26_spill] sm:$0xff] %v6444_v29  ;;  %v2253_v53 = vmax.f32 %v5790_v0, %v6271_v44  ;;  %v2255_v1 = vmax.f32 %v5798_v40, %v6289_v27 }
 0x6d3   :  { %2170 = vrot.lane.b32.xlu0 %v6380_v56, %s4445_s26 }
 0x6d4   :  { %6847 = vst [vmem:[#allocation15_spill] sm:$0xff] %v6422_v13 }
 0x6d5   :  { %v6454_v58 = vpop.permute.xlu1 %2176 }
 0x6d6   :  { %2188 = vrot.lane.b32.xlu1 %v6389_v33, %s4445_s26  ;;  %6851 = vst [vmem:[#allocation27_spill] sm:$0xff] %v6454_v58 }
 0x6d7   :  { %2198 = vrot.lane.b32.xlu0 %v6394_v19, %s4445_s26 }
 0x6d9   :  { %v3257_v45 = vpop.permute.xlu1 %3256 }
 0x6da   :  { %2192 = vrot.lane.b32.xlu1 %v6401_v15, %s4445_s26 }
 0x6db   :  { %2202 = vrot.lane.b32.xlu0 %v6408_v5, %s4445_s26 }
 0x6de   :  { %2164 = vrot.lane.b32.xlu1 %v6416_v61, %s4445_s26 }
 0x6df   :  { %3318 = vrot.lane.b32.xlu0 %v6422_v13, %s4445_s26 }
 0x6e2   :  { %2168 = vrot.lane.b32.xlu1 %v6430_v63, %s4445_s26 }
 0x6e6   :  { %2196 = vrot.lane.b32.xlu1 %v6438_v14, %s4445_s26 }
 0x6ea   :  { %2200 = vrot.lane.b32.xlu1 %v6444_v29, %s4445_s26 }
 0x6ee   :  { %3310 = vrot.lane.b32.xlu1 %v6404_v31, %s4445_s26 }
 0x6ef   :  { %v6456_v16 = vpop.permute.xlu0 %2162 }
 0x6f3   :  { %v2183_v13 = vpop.permute.xlu0 %2182 }
 0x6f4   :  { %v2257_v15 = vmax.f32 %v5949_v59, %v2183_v13  ;;  %v3352_v13 = vmax.f32 %v5842_v28, %v3257_v45 }
 0x6f5   :  { %v3273_v14 = vpop.permute.xlu1 %3272 }
 0x6f6   :  { %v6461_v33 = vcombine.low %v2253_v53, %v2257_v15  ;;  %v3360_v40 = vmax.f32 %v5968_v25, %v3273_v14 }
 0x6f7   :  { %v2187_v29 = vpop.permute.xlu0 %2186 }
 0x6f8   :  { %v2259_v31 = vmax.f32 %v5981_v21, %v2187_v29 }
 0x6f9   :  { %v3289_v52 = vpop.permute.xlu1 %3288 }
 0x6fa   :  { %v6466_v63 = vcombine.low %v2255_v1, %v2259_v31 }
 0x6fb   :  { %v6468_v57 = vpop.permute.xlu0 %2190 }
 0x6fc   :  { %6852 = vst [vmem:[#allocation28_spill] sm:$0xff] %v6466_v63 }
 0x6fd   :  { %v3305_v37 = vpop.permute.xlu1 %3304 }
 0x6fe   :  { %v3376_v45 = vmax.f32 %v6018_v11, %v3305_v37 }
 0x6ff   :  { %v6470_v61 = vpop.permute.xlu0 %2194 }
 0x701   :  { %v3259_v0 = vpop.permute.xlu1 %3258 }
 0x703   :  { %v3265_v44 = vpop.permute.xlu0 %3264 }
 0x704   :  { %v3356_v59 = vmax.f32 %v6056_v34, %v3265_v44  ;;  %v3368_v34 = vmax.f32 %v5996_v23, %v3289_v52  ;;  %v6853_v23 = vld [vmem:[#allocation3_spill] sm:$0xff] }
 0x705   :  { %v3275_v15 = vpop.permute.xlu1 %3274 }
 0x706   :  { %v3384_v27 = vcombine.low %v3352_v13, %v3356_v59 }
 0x707   :  { %v3281_v53 = vpop.permute.xlu0 %3280 }
 0x708   :  { %v3364_v21 = vmax.f32 %v6079_v9, %v3281_v53  ;;  %v3391_v63 = vrot.slane %v3384_v27, %v5674_v41 }
 0x709   :  { %v3291_v1 = vpop.permute.xlu1 %3290 }
 0x70a   :  { %v3393_v31 = vcombine.low %v3360_v40, %v3364_v21 }
 0x70b   :  { %v3297_v29 = vpop.permute.xlu0 %3296 }
 0x70c   :  { %v3400_v36 = vrot.slane %v3393_v31, %v5674_v41  ;;  %v3372_v58 = vmax.f32 %v6099_v51, %v3297_v29 }
 0x70d   :  { %v3307_v6 = vpop.permute.xlu1 %3306 }
 0x70e   :  { %v3532_v44 = vcombine.low %v3391_v63, %v3400_v36  ;;  %v3402_v25 = vcombine.low %v3368_v34, %v3372_v58  ;;  %v3829_v13 = vcombine.high %v3391_v63, %v3400_v36  ;;  %v3361_v58 = vmax.f32 %v6068_v20, %v3275_v15 }
 0x70f   :  { %v3313_v28 = vpop.permute.xlu0 %3312 }
 0x710   :  { %v3380_v14 = vmax.f32 %v6119_v46, %v3313_v28  ;;  %v3409_v40 = vrot.slane %v3402_v25, %v5674_v41  ;;  %v3562_v52 = vrot.slane %v3829_v13, %v6853_v23  ;;  %v6490_v46 = vrot.slane %v3532_v44, %v6853_v23 }
 0x711   :  { %v6482_v9 = vpop.permute.xlu1 %3260  ;;  %v3369_v13 = vmax.f32 %v6089_v43, %v3291_v1 }
 0x712   :  { %v3411_v59 = vcombine.low %v3376_v45, %v3380_v14  ;;  %v3353_v14 = vmax.f32 %v6042_v35, %v3259_v0 }
 0x713   :  { %v3267_v53 = vpop.permute.xlu0 %3266 }
 0x714   :  { %v3418_v27 = vrot.slane %v3411_v59, %v5674_v41  ;;  %v3357_v34 = vmax.f32 %v6142_v55, %v3267_v53  ;;  %v3377_v55 = vmax.f32 %v6109_v50, %v3307_v6 }
 0x715   :  { %v3277_v51 = vpop.permute.xlu1 %3276 }
 0x716   :  { %v3533_v21 = vcombine.low %v3409_v40, %v3418_v27  ;;  %v3830_v31 = vcombine.high %v3409_v40, %v3418_v27  ;;  %v3420_v40 = vcombine.low %v3353_v14, %v3357_v34 }
 0x717   :  { %v3283_v29 = vpop.permute.xlu0 %3282 }
 0x718   :  { %v3569_v11 = vrot.slane %v3830_v31, %v6853_v23  ;;  %v3365_v37 = vmax.f32 %v6159_v10, %v3283_v29  ;;  %v6493_v36 = vrot.slane %v3533_v21, %v6853_v23  ;;  %v3427_v35 = vrot.slane %v3420_v40, %v5674_v41 }
 0x719   :  { %v3293_v63 = vpop.permute.xlu1 %3292 }
 0x71a   :  { %v3570_v28 = vcombine.low %v3562_v52, %v3569_v11  ;;  %v3548_v45 = vcombine.low %v6490_v46, %v6493_v36  ;;  %v3429_v59 = vcombine.low %v3361_v58, %v3365_v37 }
 0x71b   :  { %v3299_v25 = vpop.permute.xlu0 %3298 }
 0x71c   :  { %v3373_v10 = vmax.f32 %v6181_v24, %v3299_v25  ;;  %3571 = vrot.lane.b32.xlu0 %v3570_v28, %s4446_s27  ;;  %v3436_v15 = vrot.slane %v3429_v59, %v5674_v41  ;;  %v3362_v28 = vmax.f32 %v6151_v4, %v3277_v51 }
 0x71d   :  { %v3309_v44 = vpop.permute.xlu1 %3308 }
 0x71e   :  { %v3438_v53 = vcombine.low %v3369_v13, %v3373_v10  ;;  %v3578_v31 = vcombine.low %v3427_v35, %v3436_v15  ;;  %v3831_v37 = vcombine.high %v3427_v35, %v3436_v15  ;;  %v3354_v13 = vmax.f32 %v6130_v17, %v6482_v9 }
 0x71f   :  { %v3370_v15 = vmax.f32 %v6164_v42, %v3293_v63 }
 0x720   :  { %v3445_v52 = vrot.slane %v3438_v53, %v5674_v41  ;;  %v3586_v11 = vrot.slane %v3578_v31, %v6853_v23  ;;  %v3610_v40 = vrot.slane %v3831_v37, %v6853_v23 }
 0x721   :  { %v3315_v20 = vpop.permute.xlu0 %3314 }
 0x722   :  { %v3381_v27 = vmax.f32 %v6196_v12, %v3315_v20 }
 0x724   :  { %v6506_v21 = vpop.permute.xlu1 %3262  ;;  %v3447_v24 = vcombine.low %v3377_v55, %v3381_v27 }
 0x725   :  { %v3269_v0 = vpop.permute.xlu0 %3268 }
 0x726   :  { %v3454_v43 = vrot.slane %v3447_v24, %v5674_v41  ;;  %v3358_v14 = vmax.f32 %v6219_v62, %v3269_v0  ;;  %v3378_v62 = vmax.f32 %v6190_v3, %v3309_v44 }
 0x728   :  { %v6511_v1 = vpop.permute.xlu1 %3278  ;;  %v3579_v29 = vcombine.low %v3445_v52, %v3454_v43  ;;  %v3832_v50 = vcombine.high %v3445_v52, %v3454_v43  ;;  %v3456_v4 = vcombine.low %v3354_v13, %v3358_v14 }
 0x729   :  { %v3285_v6 = vpop.permute.xlu0 %3284 }
 0x72a   :  { %v3593_v12 = vrot.slane %v3579_v29, %v6853_v23  ;;  %v3366_v58 = vmax.f32 %v6236_v7, %v3285_v6  ;;  %v3617_v25 = vrot.slane %v3832_v50, %v6853_v23 }
 0x72c   :  { %v6516_v34 = vpop.permute.xlu1 %3294  ;;  %v3594_v59 = vcombine.low %v3586_v11, %v3593_v12  ;;  %v3465_v20 = vcombine.low %v3362_v28, %v3366_v58  ;;  %v3618_v51 = vcombine.low %v3610_v40, %v3617_v25 }
 0x72d   :  { %v3301_v10 = vpop.permute.xlu0 %3300 }
 0x72e   :  { %v3374_v55 = vmax.f32 %v6256_v8, %v3301_v10  ;;  %3595 = vrot.lane.b32.xlu0 %v3594_v59, %s4443_s1  ;;  %v3472_v27 = vrot.slane %v3465_v20, %v5674_v41  ;;  %v3463_v8 = vrot.slane %v3456_v4, %v5674_v41  ;;  %v2245_v59 = vmax.f32 %v6840_v2, %v6450_v32 }
 0x730   :  { %v2149_v7 = vpop.permute.xlu1 %2148  ;;  %v3474_v35 = vcombine.low %v3370_v15, %v3374_v55  ;;  %v3626_v42 = vcombine.low %v3463_v8, %v3472_v27  ;;  %v3833_v29 = vcombine.high %v3463_v8, %v3472_v27  ;;  %v2311_v55 = vrot.slane %v6328_v54, %v5674_v41 }
 0x731   :  { %v3317_v53 = vpop.permute.xlu0 %3316  ;;  %v2247_v15 = vmax.f32 %v5925_v49, %v6456_v16  ;;  %v2261_v54 = vmax.f32 %v6007_v60, %v6468_v57  ;;  %v2263_v60 = vmax.f32 %v6029_v39, %v6470_v61  ;;  %v6860_v39 = vld [vmem:[#allocation28_spill] sm:$0xff] }
 0x732   :  { %v3382_v17 = vmax.f32 %v6275_v30, %v3317_v53  ;;  %3619 = vrot.lane.b32.xlu0 %v3618_v51, %s4447_s28  ;;  %v3481_v63 = vrot.slane %v3474_v35, %v5674_v41  ;;  %v3634_v43 = vrot.slane %v3626_v42, %v6853_v23  ;;  %v3658_v58 = vrot.slane %v3833_v29, %v6853_v23  ;;  %v6858_v29 = vld [vmem:[#allocation23_spill] sm:$0xff] }
 0x733   :  { %v2383_v35 = vrot.slane %v6357_v38, %v5674_v41  ;;  %v2329_v38 = vrot.slane %v6461_v33, %v5674_v41  ;;  %v2401_v61 = vrot.slane %v6860_v39, %v5674_v41 }
 0x734   :  { %v6531_v9 = vpop.permute.xlu1 %2152  ;;  %v3483_v24 = vcombine.low %v3378_v62, %v3382_v17  ;;  %v2240_v62 = vmax.f32 %v6265_v47, %v2149_v7 }
 0x735   :  { %v6534_v0 = vpop.permute.xlu0 %3270 }
 0x736   :  { %v3490_v3 = vrot.slane %v3483_v24, %v5674_v41 }
 0x738   :  { %v6538_v44 = vpop.permute.xlu1 %2156  ;;  %v3627_v31 = vcombine.low %v3481_v63, %v3490_v3  ;;  %v3834_v52 = vcombine.high %v3481_v63, %v3490_v3  ;;  %v6855_v3 = vld [vmem:[#allocation19_spill] sm:$0xff] }
 0x739   :  { %v6540_v30 = vpop.permute.xlu0 %3286 }
 0x73a   :  { %v3641_v50 = vrot.slane %v3627_v31, %v6853_v23  ;;  %v3665_v11 = vrot.slane %v3834_v52, %v6853_v23  ;;  %v6856_v31 = vld [vmem:[#allocation20_spill] sm:$0xff] }
 0x73b   :  { %v2252_v52 = vmax.f32 %v6856_v31, %v6446_v18  ;;  %v6862_v18 = vld [vmem:[#allocation16_spill] sm:$0xff] }
 0x73c   :  { %v6544_v6 = vpop.permute.xlu1 %2160  ;;  %v3642_v37 = vcombine.low %v3634_v43, %v3641_v50  ;;  %v3666_v25 = vcombine.low %v3658_v58, %v3665_v11  ;;  %v6857_v43 = vld [vmem:[#allocation27_spill] sm:$0xff] }
 0x73d   :  { %v6547_v12 = vpop.permute.xlu0 %3302  ;;  %v2254_v50 = vmax.f32 %v6858_v29, %v6857_v43  ;;  %v6870_v29 = vld [vmem:[#allocation25_spill] sm:$0xff] }
 0x73e   :  { %3643 = vrot.lane.b32.xlu0 %v3642_v37, %s4442_s5 }
 0x740   :  { %v6551_v28 = vpop.permute.xlu1 %2180 }
 0x741   :  { %v2167_v14 = vpop.permute.xlu0 %2166 }
 0x742   :  { %v2249_v10 = vmax.f32 %v6362_v26, %v2167_v14  ;;  %3667 = vrot.lane.b32.xlu0 %v3666_v25, %s4448_s29  ;;  %v6859_v25 = vld [vmem:[#allocation9_spill] sm:$0xff] }
 0x744   :  { %v6557_v13 = vpop.permute.xlu1 %2184  ;;  %v2313_v40 = vcombine.low %v2245_v59, %v2249_v10  ;;  %v2244_v10 = vmax.f32 %v6862_v18, %v6538_v44  ;;  %v6874_v18 = vld [vmem:[#allocation6_spill] sm:$0xff] }
 0x745   :  { %v2171_v20 = vpop.permute.xlu0 %2170 }
 0x746   :  { %v2320_v4 = vrot.slane %v2313_v40, %v5674_v41  ;;  %v2251_v51 = vmax.f32 %v6380_v56, %v2171_v20  ;;  %v6854_v56 = vld [vmem:[#allocation18_spill] sm:$0xff] }
 0x747   :  { %v2236_v17 = vmax.f32 %v6854_v56, %v6418_v48  ;;  %v2238_v48 = vmax.f32 %v6855_v3, %v6434_v22  ;;  %v6861_v22 = vld [vmem:[#allocation11_spill] sm:$0xff] }
 0x748   :  { %v6565_v2 = vpop.permute.xlu1 %2188  ;;  %v2462_v26 = vcombine.low %v2311_v55, %v2320_v4  ;;  %v3812_v32 = vcombine.high %v2311_v55, %v2320_v4  ;;  %v2385_v53 = vcombine.low %v2247_v15, %v2251_v51  ;;  %v2242_v59 = vmax.f32 %v6861_v22, %v6531_v9  ;;  %v6863_v4 = vld [vmem:[#allocation14_spill] sm:$0xff]  ;;  %v6864_v9 = vld [vmem:[#allocation5_spill] sm:$0xff]  ;;  %v6866_v56 = vld [vmem:[#allocation7_spill] sm:$0xff] }
 0x749   :  { %v2199_v27 = vpop.permute.xlu0 %2198  ;;  %v2268_v47 = vcombine.low %v2236_v17, %v2240_v62  ;;  %v3367_v51 = vmax.f32 %v6863_v4, %v6540_v30  ;;  %v2256_v44 = vmax.f32 %v6864_v9, %v6551_v28  ;;  %v2246_v17 = vmax.f32 %v6866_v56, %v6544_v6  ;;  %v6867_v30 = vld [vmem:[#allocation21_spill] sm:$0xff]  ;;  %v6868_v6 = vld [vmem:[#allocation10_spill] sm:$0xff] }
 0x74a   :  { %v2392_v49 = vrot.slane %v2385_v53, %v5674_v41  ;;  %v2265_v16 = vmax.f32 %v6394_v19, %v2199_v27  ;;  %v6601_v40 = vrot.slane %v2462_v26, %v6853_v23  ;;  %v6613_v53 = vrot.slane %v3812_v32, %v6853_v23 }
 0x74c   :  { %v6576_v8 = vpop.permute.xlu1 %2192  ;;  %v2558_v24 = vcombine.low %v2383_v35, %v2392_v49  ;;  %v3816_v42 = vcombine.high %v2383_v35, %v2392_v49  ;;  %v2331_v63 = vcombine.low %v2261_v54, %v2265_v16  ;;  %v6865_v54 = vld [vmem:[#allocation22_spill] sm:$0xff] }
 0x74d   :  { %v2203_v7 = vpop.permute.xlu0 %2202 }
 0x74e   :  { %v2338_v57 = vrot.slane %v2331_v63, %v5674_v41  ;;  %v2267_v19 = vmax.f32 %v6408_v5, %v2203_v7  ;;  %v6594_v5 = vrot.slane %v2268_v47, %v5674_v41  ;;  %v2258_v63 = vmax.f32 %v6867_v30, %v6557_v13 }
 0x74f   :  { %v6628_v47 = vrot.slane %v2558_v24, %v6853_v23  ;;  %v6631_v7 = vrot.slane %v3816_v42, %v6853_v23  ;;  %v3363_v13 = vmax.f32 %v6868_v6, %v6511_v1  ;;  %v6869_v24 = vld [vmem:[#allocation24_spill] sm:$0xff]  ;;  %v2340_v1 = vcombine.low %v2238_v48, %v2242_v59 }
 0x750   :  { %v2165_v11 = vpop.permute.xlu1 %2164  ;;  %v2463_v37 = vcombine.low %v2329_v38, %v2338_v57  ;;  %v3813_v58 = vcombine.high %v2329_v38, %v2338_v57  ;;  %v2403_v33 = vcombine.low %v2263_v60, %v2267_v19  ;;  %v2286_v57 = vcombine.low %v2252_v52, %v2256_v44  ;;  %v6875_v48 = vld [vmem:[#allocation12_spill] sm:$0xff] }
 0x751   :  { %v2248_v14 = vmax.f32 %v6859_v25, %v2165_v11  ;;  %v2260_v43 = vmax.f32 %v6869_v24, %v6565_v2  ;;  %v3501_v52 = vcombine.low %v3363_v13, %v3367_v51  ;;  %v6872_v25 = vld [vmem:[#allocation13_spill] sm:$0xff]  ;;  %v2358_v39 = vcombine.low %v2254_v50, %v2258_v63  ;;  %v6873_v2 = vld [vmem:[#allocation8_spill] sm:$0xff]  ;;  %v3319_v51 = vpop.permute.xlu0 %3318  ;;  %v6876_v50 = vld [vmem:[#allocation26_spill] sm:$0xff] }
 0x752   :  { %v6604_v20 = vrot.slane %v2463_v37, %v6853_v23  ;;  %v6607_v55 = vrot.slane %v3813_v58, %v6853_v23  ;;  %v2410_v15 = vrot.slane %v2403_v33, %v5674_v41  ;;  %v6871_v58 = vld [vmem:[#allocation4_spill] sm:$0xff]  ;;  %v3355_v22 = vmax.f32 %v6873_v2, %v6506_v21  ;;  %v6878_v13 = vld [vmem:[#allocation17_spill] sm:$0xff] }
 0x753   :  { %v2277_v62 = vcombine.low %v2244_v10, %v2248_v14  ;;  %v3359_v33 = vmax.f32 %v6871_v58, %v6534_v0  ;;  %v3375_v14 = vmax.f32 %v6872_v25, %v6547_v12  ;;  %v3371_v10 = vmax.f32 %v6874_v18, %v6516_v34 }
 0x754   :  { %v2169_v26 = vpop.permute.xlu1 %2168  ;;  %v2559_v27 = vcombine.low %v2401_v61, %v2410_v15  ;;  %v3817_v35 = vcombine.high %v2401_v61, %v2410_v15  ;;  %v2478_v16 = vcombine.low %v6601_v40, %v6604_v20  ;;  %v2502_v28 = vcombine.low %v6613_v53, %v6607_v55 }
 0x755   :  { %v2250_v49 = vmax.f32 %v6865_v54, %v2169_v26  ;;  %v2284_v32 = vrot.slane %v2277_v62, %v5674_v41  ;;  %v2293_v0 = vrot.slane %v2286_v57, %v5674_v41  ;;  %v2262_v59 = vmax.f32 %v6875_v48, %v6576_v8 }
 0x756   :  { %v6634_v38 = vrot.slane %v2559_v27, %v6853_v23  ;;  %v6637_v60 = vrot.slane %v3817_v35, %v6853_v23  ;;  %v3492_v62 = vcombine.low %v3355_v22, %v3359_v33  ;;  %v2347_v21 = vrot.slane %v2340_v1, %v5674_v41 }
 0x757   :  { %v2416_v19 = vcombine.low %v6594_v5, %v2284_v32  ;;  %v2349_v3 = vcombine.low %v2246_v17, %v2250_v49  ;;  %v3810_v15 = vcombine.high %v6594_v5, %v2284_v32  ;;  %v3508_v34 = vrot.slane %v3501_v52, %v5674_v41  ;;  %v6877_v49 = vld [vmem:[#allocation15_spill] sm:$0xff] }
 0x758   :  { %v2197_v31 = vpop.permute.xlu1 %2196  ;;  %v2574_v11 = vcombine.low %v6628_v47, %v6634_v38  ;;  %v2598_v37 = vcombine.low %v6631_v7, %v6637_v60  ;;  %v3510_v26 = vcombine.low %v3371_v10, %v3375_v14  ;;  %v2365_v5 = vrot.slane %v2358_v39, %v5674_v41 }
 0x759   :  { %v2264_v42 = vmax.f32 %v6870_v29, %v2197_v31  ;;  %v2356_v4 = vrot.slane %v2349_v3, %v5674_v41  ;;  %v3383_v56 = vmax.f32 %v6877_v49, %v3319_v51  ;;  %v2446_v8 = vrot.slane %v3810_v15, %v6853_v23 }
 0x75a   :  { %v3499_v31 = vrot.slane %v3492_v62, %v5674_v41  ;;  %v6677_v24 = vrot.slane %v2416_v19, %v6853_v23  ;;  %v3517_v1 = vrot.slane %v3510_v26, %v5674_v41 }
 0x75b   :  { %v2295_v61 = vcombine.low %v2260_v43, %v2264_v42  ;;  %v2510_v17 = vcombine.low %v2347_v21, %v2356_v4  ;;  %v3814_v30 = vcombine.high %v2347_v21, %v2356_v4 }
 0x75c   :  { %v2201_v9 = vpop.permute.xlu1 %2200  ;;  %v3674_v33 = vcombine.low %v3499_v31, %v3508_v34  ;;  %v3835_v4 = vcombine.high %v3499_v31, %v3508_v34 }
 0x75d   :  { %v2302_v12 = vrot.slane %v2295_v61, %v5674_v41  ;;  %v2266_v44 = vmax.f32 %v6876_v50, %v2201_v9  ;;  %v2518_v52 = vrot.slane %v2510_v17, %v6853_v23  ;;  %v2542_v14 = vrot.slane %v3814_v30, %v6853_v23 }
 0x75e   :  { %v3682_v15 = vrot.slane %v3674_v33, %v6853_v23 }
 0x75f   :  { %v2417_v27 = vcombine.low %v2293_v0, %v2302_v12  ;;  %v3811_v35 = vcombine.high %v2293_v0, %v2302_v12  ;;  %v2367_v54 = vcombine.low %v2262_v59, %v2266_v44 }
 0x760   :  { %v3311_v63 = vpop.permute.xlu1 %3310 }
 0x761   :  { %v2453_v32 = vrot.slane %v3811_v35, %v6853_v23  ;;  %v2374_v6 = vrot.slane %v2367_v54, %v5674_v41  ;;  %v3379_v57 = vmax.f32 %v6878_v13, %v3311_v63  ;;  %v6673_v3 = vrot.slane %v2417_v27, %v6853_v23 }
 0x763   :  { %v2511_v43 = vcombine.low %v2365_v5, %v2374_v6  ;;  %v3815_v29 = vcombine.high %v2365_v5, %v2374_v6  ;;  %v3519_v42 = vcombine.low %v3379_v57, %v3383_v56  ;;  %v2454_v58 = vcombine.low %v2446_v8, %v2453_v32 }
 0x764   :  { %v2432_v25 = vcombine.low %v6677_v24, %v6673_v3 }
 0x765   :  { %v2525_v39 = vrot.slane %v2511_v43, %v6853_v23  ;;  %v2549_v61 = vrot.slane %v3815_v29, %v6853_v23  ;;  %v3526_v19 = vrot.slane %v3519_v42, %v5674_v41  ;;  %2455 = vrot.lane.b32.xlu1 %v2454_v58, %s4446_s27  ;;  %v3706_v41 = vrot.slane %v3835_v4, %v6853_v23 }
 0x767   :  { %v3675_v2 = vcombine.low %v3517_v1, %v3526_v19  ;;  %v3836_v22 = vcombine.high %v3517_v1, %v3526_v19  ;;  %v2526_v18 = vcombine.low %v2518_v52, %v2525_v39  ;;  %v2550_v10 = vcombine.low %v2542_v14, %v2549_v61 }
 0x769   :  { %v3689_v9 = vrot.slane %v3675_v2, %v6853_v23  ;;  %2479 = vrot.lane.b32.xlu1 %v2478_v16, %s4443_s1  ;;  %v3713_v0 = vrot.slane %v3836_v22, %v6853_v23 }
 0x76b   :  { %v3690_v48 = vcombine.low %v3682_v15, %v3689_v9  ;;  %v3714_v59 = vcombine.low %v3706_v41, %v3713_v0 }
 0x76d   :  { %2503 = vrot.lane.b32.xlu1 %v2502_v28, %s4447_s28  ;;  %3691 = vrot.lane.b32.xlu0 %v3690_v48, %s4441_s25 }
 0x771   :  { %2527 = vrot.lane.b32.xlu1 %v2526_v18, %s4442_s5  ;;  %3715 = vrot.lane.b32.xlu0 %v3714_v59, %s4449_s2 }
 0x775   :  { %2551 = vrot.lane.b32.xlu1 %v2550_v10, %s4448_s29 }
 0x779   :  { %2575 = vrot.lane.b32.xlu1 %v2574_v11, %s4441_s25 }
 0x77d   :  { %2599 = vrot.lane.b32.xlu1 %v2598_v37, %s4449_s2 }
 0x78e   :  { %v3572_v23 = vpop.permute.xlu0 %3571 }
 0x78f   :  { %v3718_v51 = vsel %vm630_vm3, %v3548_v45, %v3572_v23 }
 0x7a0   :  { %v3596_v40 = vpop.permute.xlu0 %3595 }
 0x7a1   :  { %v3719_v47 = vsel %vm2603_vm8, %v3718_v51, %v3596_v40 }
 0x7a4   :  { %v3620_v20 = vpop.permute.xlu0 %3619 }
 0x7a5   :  { %v3720_v60 = vsel %vm2605_vm9, %v3719_v47, %v3620_v20 }
 0x7b0   :  { %v3644_v55 = vpop.permute.xlu0 %3643 }
 0x7b1   :  { %v3721_v11 = vsel %vm2607_vm10, %v3720_v60, %v3644_v55 }
 0x7b4   :  { %v3668_v16 = vpop.permute.xlu0 %3667 }
 0x7b5   :  { %v3722_v37 = vsel %vm2609_vm11, %v3721_v11, %v3668_v16 }
 0x7d7   :  { %v2456_v53 = vpop.permute.xlu1 %2455 }
 0x7d8   :  { %v2602_v44 = vsel %vm630_vm3, %v2432_v25, %v2456_v53 }
 0x7db   :  { %v2480_v28 = vpop.permute.xlu1 %2479 }
 0x7dc   :  { %v2604_v62 = vsel %vm2603_vm8, %v2602_v44, %v2480_v28 }
 0x7df   :  { %v3692_v7 = vpop.permute.xlu0 %3691  ;;  %v2504_v38 = vpop.permute.xlu1 %2503 }
 0x7e0   :  { %v3723_v12 = vsel %vm2611_vm12, %v3722_v37, %v3692_v7  ;;  %v2606_v34 = vsel %vm2605_vm9, %v2604_v62, %v2504_v38 }
 0x7e3   :  { %v3716_v50 = vpop.permute.xlu0 %3715  ;;  %v2528_v46 = vpop.permute.xlu1 %2527 }
 0x7e4   :  { %v3724_v36 = vsel %vm2613_vm13, %v3723_v12, %v3716_v50  ;;  %v2608_v26 = vsel %vm2607_vm10, %v2606_v34, %v2528_v46 }
 0x7e5   :  { %3837 = vst.msk [vmem:[%s6746_s11 + $0x8] sm:$0xff] %vm86_vm0, %v3724_v36 }
 0x7e7   :  { %v2552_v45 = vpop.permute.xlu1 %2551 }
 0x7e8   :  { %v2610_v5 = vsel %vm2609_vm11, %v2608_v26, %v2552_v45 }
 0x7eb   :  { %v2576_v21 = vpop.permute.xlu1 %2575 }
 0x7ec   :  { %v2612_v27 = vsel %vm2611_vm12, %v2610_v5, %v2576_v21 }
 0x7ef   :  { %v2600_v35 = vpop.permute.xlu1 %2599 }
 0x7f0   :  { %v2614_v54 = vsel %vm2613_vm13, %v2612_v27, %v2600_v35 }
 0x7f1   :  { %2615 = vst.msk [vmem:[%s6746_s11] sm:$0xff] %vm86_vm0, %v2614_v54 }

</bundles_post_ra>
